<compile_context>
chip_gen: v7x
topology: tpu7x:2x2x1
jax: 0.10.0
libtpu: 0.0.40
codegen_flags: <defaults>
</compile_context>

<pallas_src>
import math
import functools

import numpy as np
import jax
import jax.numpy as jnp
from jax import lax
from jax.experimental import pallas as pl
from jax.experimental.pallas import tpu as pltpu

LAYER_NORM_EPS = 1e-5
NEG_INF = -1e20  # ParlAI neginf() for float32

_POST_NORM = ("aiayn", "xlm", "bart")


def _layer_norm(x, gamma, beta):
    mu = jnp.mean(x, axis=-1, keepdims=True)
    var = jnp.mean((x - mu) ** 2, axis=-1, keepdims=True)
    return (x - mu) * lax.rsqrt(var + LAYER_NORM_EPS) * gamma + beta


def _pick_tile(total, max_tile, align):
    """Largest divisor of `total` <= max_tile that is a multiple of `align`
    (falls back to a single full-extent tile)."""
    if total <= max_tile:
        return total
    for cand in range(max_tile, align - 1, -1):
        if total % cand == 0 and cand % align == 0:
            return cand
    return total


def encoder_layer_kernel(
    x_full_ref, x_tile_ref, negmask_ref, maskq_ref,
    wqkv_ref, bqkv_ref, wo_ref, bo_ref,
    g1_ref, be1_ref,
    w1_ref, bf1_ref, w2_ref, bf2_ref,
    g2_ref, be2_ref,
    o_ref,
    qkv_ref, att_ref,
    *, n_heads, heads_per_group, variant, softmax_dtype,
):
    qt = pl.program_id(1)

    T = x_full_ref.shape[1]
    Tq, D = x_tile_ref.shape[1], x_tile_ref.shape[2]
    dh = D // n_heads
    gw = heads_per_group * dh
    n_groups = n_heads // heads_per_group
    n_f_tiles = w1_ref.shape[0]

    g1 = g1_ref[...]; be1 = be1_ref[...]
    g2 = g2_ref[...]; be2 = be2_ref[...]

    # ---- qt == 0: fused, pre-scaled QKV projection for the whole sequence ----
    @pl.when(qt == 0)
    def _():
        xin = x_full_ref[0]                              # (T, D) f32
        if variant == "prelayernorm":
            xin = _layer_norm(xin, g1, be1)
        qkv = jnp.dot(xin.astype(jnp.bfloat16), wqkv_ref[...],
                      preferred_element_type=jnp.float32) + bqkv_ref[...]
        qkv_ref[...] = qkv.astype(jnp.bfloat16)          # [Q*1/sqrt(dh) | K | V]

    # ---- multi-head attention for this query tile ----
    neg_mask = negmask_ref[0]                            # (1, T) additive key mask
    row0 = pl.multiple_of(qt * Tq, Tq)

    # Static loop over head GROUPS; each group covers >=128 lanes so the store
    # into att_ref is lane-dense.  (See TODO above re: fori_loop conversion.)
    for g in range(n_groups):
        col = g * gw
        q_g = qkv_ref[pl.ds(row0, Tq), pl.ds(col, gw)]          # (Tq, gw) bf16, scaled
        k_g = qkv_ref[:, pl.ds(D + col, gw)]                    # (T, gw)  bf16
        v_g = qkv_ref[:, pl.ds(2 * D + col, gw)]                # (T, gw)  bf16
        pv_parts = []
        for j in range(heads_per_group):
            s0 = j * dh
            scores = lax.dot_general(q_g[:, s0:s0 + dh], k_g[:, s0:s0 + dh],
                                     (((1,), (1,)), ((), ())),
                                     preferred_element_type=jnp.float32)   # (Tq, T)
            scores = scores + neg_mask
            m = jnp.max(scores, axis=-1, keepdims=True)
            e = jnp.exp((scores - m).astype(softmax_dtype))     # unnormalized
            l = jnp.sum(e, axis=-1, keepdims=True, dtype=jnp.float32)
            inv_l = pl.reciprocal(l, approx=True)
            pv = jnp.dot(e.astype(jnp.bfloat16), v_g[:, s0:s0 + dh],
                         preferred_element_type=jnp.float32) * inv_l       # (Tq, dh)
            pv_parts.append(pv)
        grp = pv_parts[0] if heads_per_group == 1 else jnp.concatenate(pv_parts, axis=-1)
        att_ref[:, pl.ds(col, gw)] = grp.astype(jnp.bfloat16)   # lane-dense store

    attn_out = jnp.dot(att_ref[...], wo_ref[...],
                       preferred_element_type=jnp.float32) + bo_ref[...]

    x_t = x_tile_ref[0]                                   # (Tq, D) f32 residual
    tensor = x_t + attn_out
    if variant in _POST_NORM:
        tensor = _layer_norm(tensor, g1, be1)

    # ---- FFN (F-tiled; weights pre-reshaped so only the leading dim is indexed) ----
    residual = tensor
    fin = _layer_norm(tensor, g2, be2) if variant == "prelayernorm" else tensor
    fin_bf = fin.astype(jnp.bfloat16)

    def ffn_tile(ft, acc):
        h1 = jnp.maximum(
            jnp.dot(fin_bf, w1_ref[ft], preferred_element_type=jnp.float32) + bf1_ref[ft],
            0.0,
        ).astype(jnp.bfloat16)                            # (Tq, Ft) bf16, cast fused w/ ReLU
        return acc + jnp.dot(h1, w2_ref[ft], preferred_element_type=jnp.float32)

    ffn = lax.fori_loop(0, n_f_tiles, ffn_tile,
                        jnp.zeros((Tq, D), jnp.float32)) + bf2_ref[...]

    tensor = residual + ffn
    if variant in _POST_NORM:
        tensor = _layer_norm(tensor, g2, be2)

    # Final per-token masking: tensor *= mask.unsqueeze(-1)
    o_ref[0] = (tensor * maskq_ref[0]).astype(o_ref.dtype)


def transformer_encoder_layer(x, mask, params, *, n_heads, variant=None,
                              softmax_dtype=None, q_tile=None, f_tile=None,
                              single_buffer_weights=True):
    """x: (B, T, D) float32; mask: (B, T) float32 (1=attend, 0=blocked)."""
    B, T, D = x.shape
    F = params["w1"].shape[1]
    assert D % n_heads == 0, "embedding_size must be divisible by n_heads"
    dh = D // n_heads

    # Head grouping: pack heads into >=128-lane groups for lane-dense stores and
    # amortized MXU push/drain (dh=64 -> pairs, dh=32 -> quads, ...).
    if dh >= 128:
        hpg = 1
    else:
        hpg = max(1, min(n_heads, 128 // dh))
        while n_heads % hpg != 0:
            hpg -= 1

    # Query tile (aligned to the bf16 (16,128) packing of the QKV scratch).
    if q_tile is None:
        q_tile = _pick_tile(T, 256, 16)
    assert T % q_tile == 0 and (q_tile % 16 == 0 or q_tile == T)
    n_q_tiles = T // q_tile

    # FFN tile (lane-aligned).
    if f_tile is None:
        f_tile = _pick_tile(F, 1024, 128)
    assert F % f_tile == 0 and (f_tile % 128 == 0 or f_tile == F)
    n_f_tiles = F // f_tile

    mask = mask.astype(jnp.float32)
    # Additive key mask computed once on host (0 where attend, NEG_INF where blocked).
    neg_mask = jnp.where(mask == 0.0, jnp.float32(NEG_INF),
                         jnp.float32(0.0)).reshape(B, 1, T)
    mask_q = mask.reshape(B, T, 1)

    if softmax_dtype is None:
        # bf16 exp on v6e/v7x (bf16-capable EUP); f32 on v2-v5 (v5e and v5p both
        # match the "v5" substring and both lack a bf16 EUP, so f32 is correct).
        kind = jax.devices()[0].device_kind.lower()
        old_gen = any(s in kind for s in ("v2", "v3", "v4", "v5"))
        softmax_dtype = jnp.float32 if old_gen else jnp.bfloat16

    inv_scale = 1.0 / math.sqrt(dh)
    # Fold 1/sqrt(dh) into the Q weights/bias; fuse QKV; bf16 resident weights.
    wqkv = jnp.concatenate(
        [params["wq"] * inv_scale, params["wk"], params["wv"]], axis=1
    ).astype(jnp.bfloat16)
    bqkv = jnp.concatenate(
        [params["bq"] * inv_scale, params["bk"], params["bv"]], axis=1)
    wo = params["wo"].astype(jnp.bfloat16)
    # FFN weights reshaped to (n_f_tiles, ...) so the in-kernel F loop only
    # indexes the leading (untiled) dimension.
    w1 = params["w1"].reshape(D, n_f_tiles, f_tile).transpose(1, 0, 2).astype(jnp.bfloat16)
    bf1 = params["bf1"].reshape(1, n_f_tiles, f_tile).transpose(1, 0, 2)
    w2 = params["w2"].reshape(n_f_tiles, f_tile, D).astype(jnp.bfloat16)

    kernel = functools.partial(encoder_layer_kernel, n_heads=n_heads,
                               heads_per_group=hpg, variant=variant,
                               softmax_dtype=softmax_dtype)

    # Resident (grid-invariant) operands: single-buffered.
    res_mode = pl.Buffered(1) if single_buffer_weights else None

    def resident(shape):
        nd = len(shape)
        imap = lambda b, q, _nd=nd: (0,) * _nd
        if res_mode is None:
            return pl.BlockSpec(shape, imap)
        return pl.BlockSpec(shape, imap, pipeline_mode=res_mode)

    in_specs = [
        pl.BlockSpec((1, T, D), lambda b, q: (b, 0, 0)),        # x (full seq, resident per b)
        pl.BlockSpec((1, q_tile, D), lambda b, q: (b, q, 0)),   # x (query tile / residual)
        pl.BlockSpec((1, 1, T), lambda b, q: (b, 0, 0)),        # additive key mask
        pl.BlockSpec((1, q_tile, 1), lambda b, q: (b, q, 0)),   # per-token output mask
        resident((D, 3 * D)), resident((1, 3 * D)),             # wqkv, bqkv
        resident((D, D)), resident((1, D)),                     # wo, bo
        resident((1, D)), resident((1, D)),                     # norm1 gamma, beta
        resident((n_f_tiles, D, f_tile)),                       # lin1 W
        resident((n_f_tiles, 1, f_tile)),                       # lin1 b
        resident((n_f_tiles, f_tile, D)), resident((1, D)),     # lin2 W, b
        resident((1, D)), resident((1, D)),                     # norm2 gamma, beta
    ]

    # VMEM budget: 64 MiB/TC on v7x, 128 MiB on v5e/v6e; leave ~8 MiB headroom.
    kind = jax.devices()[0].device_kind.lower()
    vmem_cap = (64 if "v7" in kind else 128) * 1024 * 1024
    vmem_limit = min(vmem_cap - 8 * 1024 * 1024, 96 * 1024 * 1024)

    flops = 2 * B * T * D * (4 * D + 2 * F) + 4 * B * T * T * D
    bytes_accessed = int(
        2 * B * T * D * 4 + neg_mask.size * 4 + mask_q.size * 4
        + 2 * (wqkv.size + wo.size + w1.size + w2.size)
        + 4 * (bqkv.size + params["bo"].size + bf1.size + params["bf2"].size + 4 * D))
    cost = pl.CostEstimate(flops=int(flops),
                           transcendentals=int(B * n_heads * T * T),
                           bytes_accessed=bytes_accessed)

    out = pl.pallas_call(
        kernel,
        out_shape=jax.ShapeDtypeStruct((B, T, D), x.dtype),
        grid=(B, n_q_tiles),
        in_specs=in_specs,
        out_specs=pl.BlockSpec((1, q_tile, D), lambda b, q: (b, q, 0)),
        scratch_shapes=[
            pltpu.VMEM((T, 3 * D), jnp.bfloat16),   # [scaled Q | K | V], persists per sequence
            pltpu.VMEM((q_tile, D), jnp.bfloat16),  # attention head outputs (bf16)
        ],
        compiler_params=pltpu.CompilerParams(
            dimension_semantics=("parallel", "arbitrary"),
            vmem_limit_bytes=int(vmem_limit),
        ),
        cost_estimate=cost,
    )(
        x, x, neg_mask, mask_q,
        wqkv, bqkv, wo, params["bo"],
        params["g1"], params["be1"],
        w1, bf1, w2, params["bf2"],
        params["g2"], params["be2"],
    )
    return out


# --------------------- pure-JAX reference (for verification) ---------------------
def reference_layer(x, mask, params, *, n_heads, variant=None):
    B, T, D = x.shape
    dh = D // n_heads
    scale = math.sqrt(dh)
    mask = mask.astype(jnp.float32)

    def ln(t, g, b):
        mu = jnp.mean(t, axis=-1, keepdims=True)
        var = jnp.mean((t - mu) ** 2, axis=-1, keepdims=True)
        return (t - mu) / jnp.sqrt(var + LAYER_NORM_EPS) * g + b

    residual = x
    xin = ln(x, params["g1"], params["be1"]) if variant == "prelayernorm" else x

    def heads(t):  # (B,T,D) -> (B,H,T,dh)
        return t.reshape(B, T, n_heads, dh).transpose(0, 2, 1, 3)

    q = heads(xin @ params["wq"] + params["bq"]) / scale
    k = heads(xin @ params["wk"] + params["bk"])
    v = heads(xin @ params["wv"] + params["bv"])
    scores = jnp.einsum("bhqd,bhkd->bhqk", q, k)
    blocked = (mask == 0.0)[:, None, None, :]
    scores = jnp.where(blocked, NEG_INF, scores)
    p = jax.nn.softmax(scores, axis=-1)
    att = jnp.einsum("bhqk,bhkd->bhqd", p, v).transpose(0, 2, 1, 3).reshape(B, T, D)
    attn_out = att @ params["wo"] + params["bo"]

    t = residual + attn_out
    if variant in _POST_NORM:
        t = ln(t, params["g1"], params["be1"])
    residual = t
    fin = ln(t, params["g2"], params["be2"]) if variant == "prelayernorm" else t
    ffn = jnp.maximum(fin @ params["w1"] + params["bf1"], 0.0) @ params["w2"] + params["bf2"]
    t = residual + ffn
    if variant in _POST_NORM:
        t = ln(t, params["g2"], params["be2"])
    return t * mask[:, :, None]


def init_params(key, D, F):
    """Deterministic init matching the PyTorch shapes.
    Weights stored as (in, out) so the kernel does y = x @ W + b."""
    ks = jax.random.split(key, 12)
    xn_std = math.sqrt(2.0 / (D + D))                     # xavier_normal_

    def bias(k, fan_in, n):
        bound = 1.0 / math.sqrt(fan_in)
        return jax.random.uniform(k, (1, n), jnp.float32, -bound, bound)

    xu1 = math.sqrt(6.0 / (D + F))                        # xavier_uniform_
    params = {
        "wq": xn_std * jax.random.normal(ks[0], (D, D), jnp.float32),
        "bq": bias(ks[1], D, D),
        "wk": xn_std * jax.random.normal(ks[2], (D, D), jnp.float32),
        "bk": bias(ks[3], D, D),
        "wv": xn_std * jax.random.normal(ks[4], (D, D), jnp.float32),
        "bv": bias(ks[5], D, D),
        "wo": xn_std * jax.random.normal(ks[6], (D, D), jnp.float32),
        "bo": bias(ks[7], D, D),
        "g1": jnp.ones((1, D), jnp.float32),
        "be1": jnp.zeros((1, D), jnp.float32),
        "w1": jax.random.uniform(ks[8], (D, F), jnp.float32, -xu1, xu1),
        "bf1": bias(ks[9], D, F),
        "w2": jax.random.uniform(ks[10], (F, D), jnp.float32, -xu1, xu1),
        "bf2": bias(ks[11], F, D),
        "g2": jnp.ones((1, D), jnp.float32),
        "be2": jnp.zeros((1, D), jnp.float32),
    }
    return params


if __name__ == "__main__":
    configs = [
        # Toy shape (single query tile, single F tile).
        dict(B=2, T=8, H=2, D=32, F=64, q_tile=None, f_tile=None),
        # Exercises the query-tile grid axis (2 tiles) and the F-tile FFN loop (2 tiles).
        dict(B=2, T=32, H=2, D=32, F=256, q_tile=16, f_tile=128),
    ]

    ok = True
    single_buffer = True
    for cfg in configs:
        B, T, H, D, F = cfg["B"], cfg["T"], cfg["H"], cfg["D"], cfg["F"]
        key = jax.random.PRNGKey(0)
        kx, kp = jax.random.split(key)
        x = jax.random.normal(kx, (B, T, D), jnp.float32)
        mask = jnp.ones((B, T), jnp.float32).at[1, T - 2:].set(0.0)  # pad tail of batch 1
        params = init_params(kp, D, F)

        for variant in (None, "aiayn", "prelayernorm"):
            run = functools.partial(transformer_encoder_layer, x, mask, params,
                                    n_heads=H, variant=variant,
                                    q_tile=cfg["q_tile"], f_tile=cfg["f_tile"])
            try:
                out = jax.block_until_ready(run(single_buffer_weights=single_buffer))
            except Exception:
                if not single_buffer:
                    raise
                # pl.Buffered(1) unsupported on this jax/libtpu -> default buffering.
                single_buffer = False
                out = jax.block_until_ready(run(single_buffer_weights=False))
            ref = reference_layer(x, mask, params, n_heads=H, variant=variant)
            # bf16 weights / bf16 exp / approx reciprocal -> looser tolerance.
            if not np.allclose(np.asarray(out), np.asarray(ref), atol=5e-2, rtol=5e-2):
                ok = False

    print("KERNEL_OK" if ok else "MISMATCH")
</pallas_src>

<mosaic_0001>
module attributes {stable_mosaic.version = 11 : i64} {
  func.func @encoder_layer_kernel(%arg0: i32, %arg1: i32, %arg2: memref<1x8x32xf32, #tpu.memory_space<vmem>>, %arg3: memref<1x8x32xf32, #tpu.memory_space<vmem>>, %arg4: memref<1x1x8xf32, #tpu.memory_space<vmem>>, %arg5: memref<1x8x1xf32, #tpu.memory_space<vmem>>, %arg6: memref<32x96xbf16, #tpu.memory_space<vmem>>, %arg7: memref<1x96xf32, #tpu.memory_space<vmem>>, %arg8: memref<32x32xbf16, #tpu.memory_space<vmem>>, %arg9: memref<1x32xf32, #tpu.memory_space<vmem>>, %arg10: memref<1x32xf32, #tpu.memory_space<vmem>>, %arg11: memref<1x32xf32, #tpu.memory_space<vmem>>, %arg12: memref<1x32x64xbf16, #tpu.memory_space<vmem>>, %arg13: memref<1x1x64xf32, #tpu.memory_space<vmem>>, %arg14: memref<1x64x32xbf16, #tpu.memory_space<vmem>>, %arg15: memref<1x32xf32, #tpu.memory_space<vmem>>, %arg16: memref<1x32xf32, #tpu.memory_space<vmem>>, %arg17: memref<1x32xf32, #tpu.memory_space<vmem>>, %arg18: memref<1x8x32xf32, #tpu.memory_space<vmem>>, %arg19: memref<8x96xbf16, #tpu.memory_space<vmem>>, %arg20: memref<8x32xbf16, #tpu.memory_space<vmem>>) attributes {dimension_semantics = [#tpu.dimension_semantics<parallel>, #tpu.dimension_semantics<arbitrary>], iteration_bounds = array<i64: 2, 1>, scalar_prefetch = 0 : i64, scratch_operands = 2 : i64, tpu.core_type = #tpu.core_type<tc>, window_params = [{transform_indices = @transform_0, window_bounds = array<i64: 1, 8, 32>}, {transform_indices = @transform_1, window_bounds = array<i64: 1, 8, 32>}, {transform_indices = @transform_2, window_bounds = array<i64: 1, 1, 8>}, {transform_indices = @transform_3, window_bounds = array<i64: 1, 8, 1>}, {pipeline_mode = #tpu.pipeline_mode<synchronous>, transform_indices = @transform_4, window_bounds = array<i64: 32, 96>}, {pipeline_mode = #tpu.pipeline_mode<synchronous>, transform_indices = @transform_5, window_bounds = array<i64: 1, 96>}, {pipeline_mode = #tpu.pipeline_mode<synchronous>, transform_indices = @transform_6, window_bounds = array<i64: 32, 32>}, {pipeline_mode = #tpu.pipeline_mode<synchronous>, transform_indices = @transform_7, window_bounds = array<i64: 1, 32>}, {pipeline_mode = #tpu.pipeline_mode<synchronous>, transform_indices = @transform_8, window_bounds = array<i64: 1, 32>}, {pipeline_mode = #tpu.pipeline_mode<synchronous>, transform_indices = @transform_9, window_bounds = array<i64: 1, 32>}, {pipeline_mode = #tpu.pipeline_mode<synchronous>, transform_indices = @transform_10, window_bounds = array<i64: 1, 32, 64>}, {pipeline_mode = #tpu.pipeline_mode<synchronous>, transform_indices = @transform_11, window_bounds = array<i64: 1, 1, 64>}, {pipeline_mode = #tpu.pipeline_mode<synchronous>, transform_indices = @transform_12, window_bounds = array<i64: 1, 64, 32>}, {pipeline_mode = #tpu.pipeline_mode<synchronous>, transform_indices = @transform_13, window_bounds = array<i64: 1, 32>}, {pipeline_mode = #tpu.pipeline_mode<synchronous>, transform_indices = @transform_14, window_bounds = array<i64: 1, 32>}, {pipeline_mode = #tpu.pipeline_mode<synchronous>, transform_indices = @transform_15, window_bounds = array<i64: 1, 32>}, {transform_indices = @transform_16, window_bounds = array<i64: 1, 8, 32>}]} {
    %c0_i32 = arith.constant 0 : i32
    %0 = arith.cmpi eq, %arg1, %c0_i32 : i32
    %1 = arith.extui %0 : i1 to i32
    %c0_i32_0 = arith.constant 0 : i32
    %2 = arith.cmpi ne, %1, %c0_i32_0 : i32
    scf.if %2 {
      %c0_44 = arith.constant 0 : index
      %c0_45 = arith.constant 0 : index
      %c0_46 = arith.constant 0 : index
      %91 = vector.load %arg2[%c0_44, %c0_45, %c0_46] : memref<1x8x32xf32, #tpu.memory_space<vmem>>, vector<1x8x32xf32>
      %92 = vector.shape_cast %91 : vector<1x8x32xf32> to vector<8x32xf32>
      %93 = arith.truncf %92 : vector<8x32xf32> to vector<8x32xbf16>
      %c0_47 = arith.constant 0 : index
      %c0_48 = arith.constant 0 : index
      %94 = vector.load %arg6[%c0_47, %c0_48] : memref<32x96xbf16, #tpu.memory_space<vmem>>, vector<32x96xbf16>
      %cst_49 = arith.constant dense<0.000000e+00> : vector<8x96xf32>
      %95 = tpu.matmul %93, %94, %cst_49 {dimension_numbers = #tpu.dot_dimension_numbers<[1], [0], [0], [1], [0, 0, 1, 1], [], []>} : vector<8x32xbf16>, vector<32x96xbf16>, vector<8x96xf32> -> vector<8x96xf32>
      %c0_50 = arith.constant 0 : index
      %c0_51 = arith.constant 0 : index
      %96 = vector.load %arg7[%c0_50, %c0_51] : memref<1x96xf32, #tpu.memory_space<vmem>>, vector<1x96xf32>
      %97 = vector.broadcast %96 : vector<1x96xf32> to vector<8x96xf32>
      %98 = arith.addf %95, %97 : vector<8x96xf32>
      %99 = arith.truncf %98 : vector<8x96xf32> to vector<8x96xbf16>
      %c0_52 = arith.constant 0 : index
      %c0_53 = arith.constant 0 : index
      %100 = vector.load %arg19[%c0_52, %c0_53] : memref<8x96xbf16, #tpu.memory_space<vmem>>, vector<8x96xbf16>
      tpu.vector_store %arg19[%c0_52, %c0_53], %99 {strides = array<i32>} : memref<8x96xbf16, #tpu.memory_space<vmem>>, vector<8x96xbf16>,
    } else {
    }
    %c0 = arith.constant 0 : index
    %c0_1 = arith.constant 0 : index
    %c0_2 = arith.constant 0 : index
    %3 = vector.load %arg4[%c0, %c0_1, %c0_2] : memref<1x1x8xf32, #tpu.memory_space<vmem>>, vector<1x1x8xf32>
    %4 = vector.shape_cast %3 : vector<1x1x8xf32> to vector<1x8xf32>
    %c8_i32 = arith.constant 8 : i32
    %5 = arith.muli %arg1, %c8_i32 : i32
    %6 = tpu.assume_multiple %5, 8 : i32
    %7 = arith.index_cast %6 : i32 to index
    %c0_3 = arith.constant 0 : index
    %8 = vector.load %arg19[%7, %c0_3] : memref<8x96xbf16, #tpu.memory_space<vmem>>, vector<8x32xbf16>
    %c0_4 = arith.constant 0 : index
    %c32 = arith.constant 32 : index
    %9 = vector.load %arg19[%c0_4, %c32] : memref<8x96xbf16, #tpu.memory_space<vmem>>, vector<8x32xbf16>
    %c0_5 = arith.constant 0 : index
    %c64 = arith.constant 64 : index
    %10 = vector.load %arg19[%c0_5, %c64] : memref<8x96xbf16, #tpu.memory_space<vmem>>, vector<8x32xbf16>
    %11 = vector.extract_strided_slice %8 {offsets = [0, 0], sizes = [8, 16], strides = [1, 1]} : vector<8x32xbf16> to vector<8x16xbf16>
    %12 = vector.extract_strided_slice %9 {offsets = [0, 0], sizes = [8, 16], strides = [1, 1]} : vector<8x32xbf16> to vector<8x16xbf16>
    %cst = arith.constant dense<0.000000e+00> : vector<8x8xf32>
    %13 = tpu.matmul %11, %12, %cst {dimension_numbers = #tpu.dot_dimension_numbers<[1], [1], [0], [0], [0, 0, 1, 0], [], []>} : vector<8x16xbf16>, vector<8x16xbf16>, vector<8x8xf32> -> vector<8x8xf32>
    %14 = vector.broadcast %4 : vector<1x8xf32> to vector<8x8xf32>
    %15 = arith.addf %13, %14 : vector<8x8xf32>
    %cst_6 = arith.constant dense<0xFF800000> : vector<8xf32>
    %16 = vector.multi_reduction <maximumf>, %15, %cst_6 [1] : vector<8x8xf32> to vector<8xf32>
    %17 = vector.shape_cast %16 : vector<8xf32> to vector<8x1xf32>
    %18 = vector.broadcast %17 : vector<8x1xf32> to vector<8x8xf32>
    %19 = arith.subf %15, %18 : vector<8x8xf32>
    %20 = arith.truncf %19 : vector<8x8xf32> to vector<8x8xbf16>
    %21 = math.exp %20 : vector<8x8xbf16>
    %22 = arith.extf %21 : vector<8x8xbf16> to vector<8x8xf32>
    %cst_7 = arith.constant dense<0.000000e+00> : vector<8xf32>
    %23 = vector.multi_reduction <add>, %22, %cst_7 [1] : vector<8x8xf32> to vector<8xf32>
    %24 = vector.shape_cast %23 : vector<8xf32> to vector<8x1xf32>
    %25 = tpu.reciprocal %24 {approx = true} : vector<8x1xf32> -> vector<8x1xf32>
    %26 = vector.extract_strided_slice %10 {offsets = [0, 0], sizes = [8, 16], strides = [1, 1]} : vector<8x32xbf16> to vector<8x16xbf16>
    %cst_8 = arith.constant dense<0.000000e+00> : vector<8x16xf32>
    %27 = tpu.matmul %21, %26, %cst_8 {dimension_numbers = #tpu.dot_dimension_numbers<[1], [0], [0], [1], [0, 0, 1, 1], [], []>} : vector<8x8xbf16>, vector<8x16xbf16>, vector<8x16xf32> -> vector<8x16xf32>
    %28 = vector.broadcast %25 : vector<8x1xf32> to vector<8x16xf32>
    %29 = arith.mulf %27, %28 : vector<8x16xf32>
    %30 = vector.extract_strided_slice %8 {offsets = [0, 16], sizes = [8, 16], strides = [1, 1]} : vector<8x32xbf16> to vector<8x16xbf16>
    %31 = vector.extract_strided_slice %9 {offsets = [0, 16], sizes = [8, 16], strides = [1, 1]} : vector<8x32xbf16> to vector<8x16xbf16>
    %cst_9 = arith.constant dense<0.000000e+00> : vector<8x8xf32>
    %32 = tpu.matmul %30, %31, %cst_9 {dimension_numbers = #tpu.dot_dimension_numbers<[1], [1], [0], [0], [0, 0, 1, 0], [], []>} : vector<8x16xbf16>, vector<8x16xbf16>, vector<8x8xf32> -> vector<8x8xf32>
    %33 = vector.broadcast %4 : vector<1x8xf32> to vector<8x8xf32>
    %34 = arith.addf %32, %33 : vector<8x8xf32>
    %cst_10 = arith.constant dense<0xFF800000> : vector<8xf32>
    %35 = vector.multi_reduction <maximumf>, %34, %cst_10 [1] : vector<8x8xf32> to vector<8xf32>
    %36 = vector.shape_cast %35 : vector<8xf32> to vector<8x1xf32>
    %37 = vector.broadcast %36 : vector<8x1xf32> to vector<8x8xf32>
    %38 = arith.subf %34, %37 : vector<8x8xf32>
    %39 = arith.truncf %38 : vector<8x8xf32> to vector<8x8xbf16>
    %40 = math.exp %39 : vector<8x8xbf16>
    %41 = arith.extf %40 : vector<8x8xbf16> to vector<8x8xf32>
    %cst_11 = arith.constant dense<0.000000e+00> : vector<8xf32>
    %42 = vector.multi_reduction <add>, %41, %cst_11 [1] : vector<8x8xf32> to vector<8xf32>
    %43 = vector.shape_cast %42 : vector<8xf32> to vector<8x1xf32>
    %44 = tpu.reciprocal %43 {approx = true} : vector<8x1xf32> -> vector<8x1xf32>
    %45 = vector.extract_strided_slice %10 {offsets = [0, 16], sizes = [8, 16], strides = [1, 1]} : vector<8x32xbf16> to vector<8x16xbf16>
    %cst_12 = arith.constant dense<0.000000e+00> : vector<8x16xf32>
    %46 = tpu.matmul %40, %45, %cst_12 {dimension_numbers = #tpu.dot_dimension_numbers<[1], [0], [0], [1], [0, 0, 1, 1], [], []>} : vector<8x8xbf16>, vector<8x16xbf16>, vector<8x16xf32> -> vector<8x16xf32>
    %47 = vector.broadcast %44 : vector<8x1xf32> to vector<8x16xf32>
    %48 = arith.mulf %46, %47 : vector<8x16xf32>
    %49 = tpu.concatenate %29, %48 in 1 : vector<8x16xf32>, vector<8x16xf32> -> vector<8x32xf32>
    %50 = arith.truncf %49 : vector<8x32xf32> to vector<8x32xbf16>
    %c0_13 = arith.constant 0 : index
    %c0_14 = arith.constant 0 : index
    %51 = vector.load %arg20[%c0_13, %c0_14] : memref<8x32xbf16, #tpu.memory_space<vmem>>, vector<8x32xbf16>
    tpu.vector_store %arg20[%c0_13, %c0_14], %50 {strides = array<i32>} : memref<8x32xbf16, #tpu.memory_space<vmem>>, vector<8x32xbf16>,
    %c0_15 = arith.constant 0 : index
    %c0_16 = arith.constant 0 : index
    %52 = vector.load %arg20[%c0_15, %c0_16] : memref<8x32xbf16, #tpu.memory_space<vmem>>, vector<8x32xbf16>
    %c0_17 = arith.constant 0 : index
    %c0_18 = arith.constant 0 : index
    %53 = vector.load %arg8[%c0_17, %c0_18] : memref<32x32xbf16, #tpu.memory_space<vmem>>, vector<32x32xbf16>
    %cst_19 = arith.constant dense<0.000000e+00> : vector<8x32xf32>
    %54 = tpu.matmul %52, %53, %cst_19 {dimension_numbers = #tpu.dot_dimension_numbers<[1], [0], [0], [1], [0, 0, 1, 1], [], []>} : vector<8x32xbf16>, vector<32x32xbf16>, vector<8x32xf32> -> vector<8x32xf32>
    %c0_20 = arith.constant 0 : index
    %c0_21 = arith.constant 0 : index
    %55 = vector.load %arg9[%c0_20, %c0_21] : memref<1x32xf32, #tpu.memory_space<vmem>>, vector<1x32xf32>
    %56 = vector.broadcast %55 : vector<1x32xf32> to vector<8x32xf32>
    %57 = arith.addf %54, %56 : vector<8x32xf32>
    %c0_22 = arith.constant 0 : index
    %c0_23 = arith.constant 0 : index
    %c0_24 = arith.constant 0 : index
    %58 = vector.load %arg3[%c0_22, %c0_23, %c0_24] : memref<1x8x32xf32, #tpu.memory_space<vmem>>, vector<1x8x32xf32>
    %59 = vector.shape_cast %58 : vector<1x8x32xf32> to vector<8x32xf32>
    %60 = arith.addf %59, %57 : vector<8x32xf32>
    %61 = arith.truncf %60 : vector<8x32xf32> to vector<8x32xbf16>
    %cst_25 = arith.constant 0.000000e+00 : f32
    %62 = vector.broadcast %cst_25 : f32 to vector<8x32xf32>
    %c0_i32_26 = arith.constant 0 : i32
    %63 = arith.index_cast %c0_i32_26 : i32 to index
    %c0_27 = arith.constant 0 : index
    %c0_28 = arith.constant 0 : index
    %64 = vector.load %arg12[%63, %c0_27, %c0_28] : memref<1x32x64xbf16, #tpu.memory_space<vmem>>, vector<1x32x64xbf16>
    %65 = vector.shape_cast %64 : vector<1x32x64xbf16> to vector<32x64xbf16>
    %cst_29 = arith.constant dense<0.000000e+00> : vector<8x64xf32>
    %66 = tpu.matmul %61, %65, %cst_29 {dimension_numbers = #tpu.dot_dimension_numbers<[1], [0], [0], [1], [0, 0, 1, 1], [], []>} : vector<8x32xbf16>, vector<32x64xbf16>, vector<8x64xf32> -> vector<8x64xf32>
    %67 = arith.index_cast %c0_i32_26 : i32 to index
    %c0_30 = arith.constant 0 : index
    %c0_31 = arith.constant 0 : index
    %68 = vector.load %arg13[%67, %c0_30, %c0_31] : memref<1x1x64xf32, #tpu.memory_space<vmem>>, vector<1x1x64xf32>
    %69 = vector.shape_cast %68 : vector<1x1x64xf32> to vector<1x64xf32>
    %70 = vector.broadcast %69 : vector<1x64xf32> to vector<8x64xf32>
    %71 = arith.addf %66, %70 : vector<8x64xf32>
    %cst_32 = arith.constant 0.000000e+00 : f32
    %72 = vector.broadcast %cst_32 : f32 to vector<8x64xf32>
    %73 = arith.maximumf %71, %72 : vector<8x64xf32>
    %74 = arith.truncf %73 : vector<8x64xf32> to vector<8x64xbf16>
    %75 = arith.index_cast %c0_i32_26 : i32 to index
    %c0_33 = arith.constant 0 : index
    %c0_34 = arith.constant 0 : index
    %76 = vector.load %arg14[%75, %c0_33, %c0_34] : memref<1x64x32xbf16, #tpu.memory_space<vmem>>, vector<1x64x32xbf16>
    %77 = vector.shape_cast %76 : vector<1x64x32xbf16> to vector<64x32xbf16>
    %cst_35 = arith.constant dense<0.000000e+00> : vector<8x32xf32>
    %78 = tpu.matmul %74, %77, %cst_35 {dimension_numbers = #tpu.dot_dimension_numbers<[1], [0], [0], [1], [0, 0, 1, 1], [], []>} : vector<8x64xbf16>, vector<64x32xbf16>, vector<8x32xf32> -> vector<8x32xf32>
    %79 = arith.addf %62, %78 : vector<8x32xf32>
    %c1_i32 = arith.constant 1 : i32
    %c0_36 = arith.constant 0 : index
    %c0_37 = arith.constant 0 : index
    %80 = vector.load %arg15[%c0_36, %c0_37] : memref<1x32xf32, #tpu.memory_space<vmem>>, vector<1x32xf32>
    %81 = vector.broadcast %80 : vector<1x32xf32> to vector<8x32xf32>
    %82 = arith.addf %79, %81 : vector<8x32xf32>
    %83 = arith.addf %60, %82 : vector<8x32xf32>
    %c0_38 = arith.constant 0 : index
    %c0_39 = arith.constant 0 : index
    %c0_40 = arith.constant 0 : index
    %84 = vector.load %arg5[%c0_38, %c0_39, %c0_40] : memref<1x8x1xf32, #tpu.memory_space<vmem>>, vector<1x8x1xf32>
    %85 = vector.shape_cast %84 : vector<1x8x1xf32> to vector<8x1xf32>
    %86 = vector.broadcast %85 : vector<8x1xf32> to vector<8x32xf32>
    %87 = arith.mulf %83, %86 : vector<8x32xf32>
    %c0_41 = arith.constant 0 : index
    %c0_42 = arith.constant 0 : index
    %c0_43 = arith.constant 0 : index
    %88 = vector.load %arg18[%c0_41, %c0_42, %c0_43] : memref<1x8x32xf32, #tpu.memory_space<vmem>>, vector<1x8x32xf32>
    %89 = vector.shape_cast %88 : vector<1x8x32xf32> to vector<8x32xf32>
    %90 = vector.shape_cast %87 : vector<8x32xf32> to vector<1x8x32xf32>
    tpu.vector_store %arg18[%c0_41, %c0_42, %c0_43], %90 {strides = array<i32>} : memref<1x8x32xf32, #tpu.memory_space<vmem>>, vector<1x8x32xf32>,
    return
  }
  func.func @transform_0(%arg0: i32, %arg1: i32) -> (i32, i32, i32) {
    %c0_i32 = arith.constant 0 : i32
    %c0_i32_0 = arith.constant 0 : i32
    %c0_i32_1 = arith.constant 0 : i32
    return %arg0, %c0_i32, %c0_i32_0 : i32, i32, i32
  }
  func.func @transform_1(%arg0: i32, %arg1: i32) -> (i32, i32, i32) {
    %c0_i32 = arith.constant 0 : i32
    %c0_i32_0 = arith.constant 0 : i32
    return %arg0, %arg1, %c0_i32 : i32, i32, i32
  }
  func.func @transform_2(%arg0: i32, %arg1: i32) -> (i32, i32, i32) {
    %c0_i32 = arith.constant 0 : i32
    %c0_i32_0 = arith.constant 0 : i32
    %c0_i32_1 = arith.constant 0 : i32
    return %arg0, %c0_i32, %c0_i32_0 : i32, i32, i32
  }
  func.func @transform_3(%arg0: i32, %arg1: i32) -> (i32, i32, i32) {
    %c0_i32 = arith.constant 0 : i32
    %c0_i32_0 = arith.constant 0 : i32
    return %arg0, %arg1, %c0_i32 : i32, i32, i32
  }
  func.func @transform_4(%arg0: i32, %arg1: i32) -> (i32, i32) {
    %c0_i32 = arith.constant 0 : i32
    %c0_i32_0 = arith.constant 0 : i32
    %c0_i32_1 = arith.constant 0 : i32
    return %c0_i32, %c0_i32_0 : i32, i32
  }
  func.func @transform_5(%arg0: i32, %arg1: i32) -> (i32, i32) {
    %c0_i32 = arith.constant 0 : i32
    %c0_i32_0 = arith.constant 0 : i32
    %c0_i32_1 = arith.constant 0 : i32
    return %c0_i32, %c0_i32_0 : i32, i32
  }
  func.func @transform_6(%arg0: i32, %arg1: i32) -> (i32, i32) {
    %c0_i32 = arith.constant 0 : i32
    %c0_i32_0 = arith.constant 0 : i32
    %c0_i32_1 = arith.constant 0 : i32
    return %c0_i32, %c0_i32_0 : i32, i32
  }
  func.func @transform_7(%arg0: i32, %arg1: i32) -> (i32, i32) {
    %c0_i32 = arith.constant 0 : i32
    %c0_i32_0 = arith.constant 0 : i32
    %c0_i32_1 = arith.constant 0 : i32
    return %c0_i32, %c0_i32_0 : i32, i32
  }
  func.func @transform_8(%arg0: i32, %arg1: i32) -> (i32, i32) {
    %c0_i32 = arith.constant 0 : i32
    %c0_i32_0 = arith.constant 0 : i32
    %c0_i32_1 = arith.constant 0 : i32
    return %c0_i32, %c0_i32_0 : i32, i32
  }
  func.func @transform_9(%arg0: i32, %arg1: i32) -> (i32, i32) {
    %c0_i32 = arith.constant 0 : i32
    %c0_i32_0 = arith.constant 0 : i32
    %c0_i32_1 = arith.constant 0 : i32
    return %c0_i32, %c0_i32_0 : i32, i32
  }
  func.func @transform_10(%arg0: i32, %arg1: i32) -> (i32, i32, i32) {
    %c0_i32 = arith.constant 0 : i32
    %c0_i32_0 = arith.constant 0 : i32
    %c0_i32_1 = arith.constant 0 : i32
    %c0_i32_2 = arith.constant 0 : i32
    return %c0_i32, %c0_i32_0, %c0_i32_1 : i32, i32, i32
  }
  func.func @transform_11(%arg0: i32, %arg1: i32) -> (i32, i32, i32) {
    %c0_i32 = arith.constant 0 : i32
    %c0_i32_0 = arith.constant 0 : i32
    %c0_i32_1 = arith.constant 0 : i32
    %c0_i32_2 = arith.constant 0 : i32
    return %c0_i32, %c0_i32_0, %c0_i32_1 : i32, i32, i32
  }
  func.func @transform_12(%arg0: i32, %arg1: i32) -> (i32, i32, i32) {
    %c0_i32 = arith.constant 0 : i32
    %c0_i32_0 = arith.constant 0 : i32
    %c0_i32_1 = arith.constant 0 : i32
    %c0_i32_2 = arith.constant 0 : i32
    return %c0_i32, %c0_i32_0, %c0_i32_1 : i32, i32, i32
  }
  func.func @transform_13(%arg0: i32, %arg1: i32) -> (i32, i32) {
    %c0_i32 = arith.constant 0 : i32
    %c0_i32_0 = arith.constant 0 : i32
    %c0_i32_1 = arith.constant 0 : i32
    return %c0_i32, %c0_i32_0 : i32, i32
  }
  func.func @transform_14(%arg0: i32, %arg1: i32) -> (i32, i32) {
    %c0_i32 = arith.constant 0 : i32
    %c0_i32_0 = arith.constant 0 : i32
    %c0_i32_1 = arith.constant 0 : i32
    return %c0_i32, %c0_i32_0 : i32, i32
  }
  func.func @transform_15(%arg0: i32, %arg1: i32) -> (i32, i32) {
    %c0_i32 = arith.constant 0 : i32
    %c0_i32_0 = arith.constant 0 : i32
    %c0_i32_1 = arith.constant 0 : i32
    return %c0_i32, %c0_i32_0 : i32, i32
  }
  func.func @transform_16(%arg0: i32, %arg1: i32) -> (i32, i32, i32) {
    %c0_i32 = arith.constant 0 : i32
    %c0_i32_0 = arith.constant 0 : i32
    return %arg0, %arg1, %c0_i32 : i32, i32, i32
  }
}

module attributes {stable_mosaic.version = 11 : i64} {
  func.func @encoder_layer_kernel(%arg0: i32, %arg1: i32, %arg2: memref<1x8x32xf32, #tpu.memory_space<vmem>>, %arg3: memref<1x8x32xf32, #tpu.memory_space<vmem>>, %arg4: memref<1x1x8xf32, #tpu.memory_space<vmem>>, %arg5: memref<1x8x1xf32, #tpu.memory_space<vmem>>, %arg6: memref<32x96xbf16, #tpu.memory_space<vmem>>, %arg7: memref<1x96xf32, #tpu.memory_space<vmem>>, %arg8: memref<32x32xbf16, #tpu.memory_space<vmem>>, %arg9: memref<1x32xf32, #tpu.memory_space<vmem>>, %arg10: memref<1x32xf32, #tpu.memory_space<vmem>>, %arg11: memref<1x32xf32, #tpu.memory_space<vmem>>, %arg12: memref<1x32x64xbf16, #tpu.memory_space<vmem>>, %arg13: memref<1x1x64xf32, #tpu.memory_space<vmem>>, %arg14: memref<1x64x32xbf16, #tpu.memory_space<vmem>>, %arg15: memref<1x32xf32, #tpu.memory_space<vmem>>, %arg16: memref<1x32xf32, #tpu.memory_space<vmem>>, %arg17: memref<1x32xf32, #tpu.memory_space<vmem>>, %arg18: memref<1x8x32xf32, #tpu.memory_space<vmem>>, %arg19: memref<8x96xbf16, #tpu.memory_space<vmem>>, %arg20: memref<8x32xbf16, #tpu.memory_space<vmem>>) attributes {dimension_semantics = [#tpu.dimension_semantics<parallel>, #tpu.dimension_semantics<arbitrary>], iteration_bounds = array<i64: 2, 1>, scalar_prefetch = 0 : i64, scratch_operands = 2 : i64, tpu.core_type = #tpu.core_type<tc>, window_params = [{transform_indices = @transform_0, window_bounds = array<i64: 1, 8, 32>}, {transform_indices = @transform_1, window_bounds = array<i64: 1, 8, 32>}, {transform_indices = @transform_2, window_bounds = array<i64: 1, 1, 8>}, {transform_indices = @transform_3, window_bounds = array<i64: 1, 8, 1>}, {pipeline_mode = #tpu.pipeline_mode<synchronous>, transform_indices = @transform_4, window_bounds = array<i64: 32, 96>}, {pipeline_mode = #tpu.pipeline_mode<synchronous>, transform_indices = @transform_5, window_bounds = array<i64: 1, 96>}, {pipeline_mode = #tpu.pipeline_mode<synchronous>, transform_indices = @transform_6, window_bounds = array<i64: 32, 32>}, {pipeline_mode = #tpu.pipeline_mode<synchronous>, transform_indices = @transform_7, window_bounds = array<i64: 1, 32>}, {pipeline_mode = #tpu.pipeline_mode<synchronous>, transform_indices = @transform_8, window_bounds = array<i64: 1, 32>}, {pipeline_mode = #tpu.pipeline_mode<synchronous>, transform_indices = @transform_9, window_bounds = array<i64: 1, 32>}, {pipeline_mode = #tpu.pipeline_mode<synchronous>, transform_indices = @transform_10, window_bounds = array<i64: 1, 32, 64>}, {pipeline_mode = #tpu.pipeline_mode<synchronous>, transform_indices = @transform_11, window_bounds = array<i64: 1, 1, 64>}, {pipeline_mode = #tpu.pipeline_mode<synchronous>, transform_indices = @transform_12, window_bounds = array<i64: 1, 64, 32>}, {pipeline_mode = #tpu.pipeline_mode<synchronous>, transform_indices = @transform_13, window_bounds = array<i64: 1, 32>}, {pipeline_mode = #tpu.pipeline_mode<synchronous>, transform_indices = @transform_14, window_bounds = array<i64: 1, 32>}, {pipeline_mode = #tpu.pipeline_mode<synchronous>, transform_indices = @transform_15, window_bounds = array<i64: 1, 32>}, {transform_indices = @transform_16, window_bounds = array<i64: 1, 8, 32>}]} {
    %c0_i32 = arith.constant 0 : i32
    %0 = arith.cmpi eq, %arg1, %c0_i32 : i32
    %1 = arith.extui %0 : i1 to i32
    %c0_i32_0 = arith.constant 0 : i32
    %2 = arith.cmpi ne, %1, %c0_i32_0 : i32
    scf.if %2 {
      %c0_44 = arith.constant 0 : index
      %c0_45 = arith.constant 0 : index
      %c0_46 = arith.constant 0 : index
      %91 = vector.load %arg2[%c0_44, %c0_45, %c0_46] : memref<1x8x32xf32, #tpu.memory_space<vmem>>, vector<1x8x32xf32>
      %92 = vector.shape_cast %91 : vector<1x8x32xf32> to vector<8x32xf32>
      %93 = arith.truncf %92 : vector<8x32xf32> to vector<8x32xbf16>
      %c0_47 = arith.constant 0 : index
      %c0_48 = arith.constant 0 : index
      %94 = vector.load %arg6[%c0_47, %c0_48] : memref<32x96xbf16, #tpu.memory_space<vmem>>, vector<32x96xbf16>
      %cst_49 = arith.constant dense<0.000000e+00> : vector<8x96xf32>
      %95 = tpu.matmul %93, %94, %cst_49 {dimension_numbers = #tpu.dot_dimension_numbers<[1], [0], [0], [1], [0, 0, 1, 1], [], []>} : vector<8x32xbf16>, vector<32x96xbf16>, vector<8x96xf32> -> vector<8x96xf32>
      %c0_50 = arith.constant 0 : index
      %c0_51 = arith.constant 0 : index
      %96 = vector.load %arg7[%c0_50, %c0_51] : memref<1x96xf32, #tpu.memory_space<vmem>>, vector<1x96xf32>
      %97 = vector.broadcast %96 : vector<1x96xf32> to vector<8x96xf32>
      %98 = arith.addf %95, %97 : vector<8x96xf32>
      %99 = arith.truncf %98 : vector<8x96xf32> to vector<8x96xbf16>
      %c0_52 = arith.constant 0 : index
      %c0_53 = arith.constant 0 : index
      %100 = vector.load %arg19[%c0_52, %c0_53] : memref<8x96xbf16, #tpu.memory_space<vmem>>, vector<8x96xbf16>
      tpu.vector_store %arg19[%c0_52, %c0_53], %99 {strides = array<i32>} : memref<8x96xbf16, #tpu.memory_space<vmem>>, vector<8x96xbf16>,
    } else {
    }
    %c0 = arith.constant 0 : index
    %c0_1 = arith.constant 0 : index
    %c0_2 = arith.constant 0 : index
    %3 = vector.load %arg4[%c0, %c0_1, %c0_2] : memref<1x1x8xf32, #tpu.memory_space<vmem>>, vector<1x1x8xf32>
    %4 = vector.shape_cast %3 : vector<1x1x8xf32> to vector<1x8xf32>
    %c8_i32 = arith.constant 8 : i32
    %5 = arith.muli %arg1, %c8_i32 : i32
    %6 = tpu.assume_multiple %5, 8 : i32
    %7 = arith.index_cast %6 : i32 to index
    %c0_3 = arith.constant 0 : index
    %8 = vector.load %arg19[%7, %c0_3] : memref<8x96xbf16, #tpu.memory_space<vmem>>, vector<8x32xbf16>
    %c0_4 = arith.constant 0 : index
    %c32 = arith.constant 32 : index
    %9 = vector.load %arg19[%c0_4, %c32] : memref<8x96xbf16, #tpu.memory_space<vmem>>, vector<8x32xbf16>
    %c0_5 = arith.constant 0 : index
    %c64 = arith.constant 64 : index
    %10 = vector.load %arg19[%c0_5, %c64] : memref<8x96xbf16, #tpu.memory_space<vmem>>, vector<8x32xbf16>
    %11 = vector.extract_strided_slice %8 {offsets = [0, 0], sizes = [8, 16], strides = [1, 1]} : vector<8x32xbf16> to vector<8x16xbf16>
    %12 = vector.extract_strided_slice %9 {offsets = [0, 0], sizes = [8, 16], strides = [1, 1]} : vector<8x32xbf16> to vector<8x16xbf16>
    %cst = arith.constant dense<0.000000e+00> : vector<8x8xf32>
    %13 = tpu.matmul %11, %12, %cst {dimension_numbers = #tpu.dot_dimension_numbers<[1], [1], [0], [0], [0, 0, 1, 0], [], []>} : vector<8x16xbf16>, vector<8x16xbf16>, vector<8x8xf32> -> vector<8x8xf32>
    %14 = vector.broadcast %4 : vector<1x8xf32> to vector<8x8xf32>
    %15 = arith.addf %13, %14 : vector<8x8xf32>
    %cst_6 = arith.constant dense<0xFF800000> : vector<8xf32>
    %16 = vector.multi_reduction <maximumf>, %15, %cst_6 [1] : vector<8x8xf32> to vector<8xf32>
    %17 = vector.shape_cast %16 : vector<8xf32> to vector<8x1xf32>
    %18 = vector.broadcast %17 : vector<8x1xf32> to vector<8x8xf32>
    %19 = arith.subf %15, %18 : vector<8x8xf32>
    %20 = arith.truncf %19 : vector<8x8xf32> to vector<8x8xbf16>
    %21 = math.exp %20 : vector<8x8xbf16>
    %22 = arith.extf %21 : vector<8x8xbf16> to vector<8x8xf32>
    %cst_7 = arith.constant dense<0.000000e+00> : vector<8xf32>
    %23 = vector.multi_reduction <add>, %22, %cst_7 [1] : vector<8x8xf32> to vector<8xf32>
    %24 = vector.shape_cast %23 : vector<8xf32> to vector<8x1xf32>
    %25 = tpu.reciprocal %24 {approx = true} : vector<8x1xf32> -> vector<8x1xf32>
    %26 = vector.extract_strided_slice %10 {offsets = [0, 0], sizes = [8, 16], strides = [1, 1]} : vector<8x32xbf16> to vector<8x16xbf16>
    %cst_8 = arith.constant dense<0.000000e+00> : vector<8x16xf32>
    %27 = tpu.matmul %21, %26, %cst_8 {dimension_numbers = #tpu.dot_dimension_numbers<[1], [0], [0], [1], [0, 0, 1, 1], [], []>} : vector<8x8xbf16>, vector<8x16xbf16>, vector<8x16xf32> -> vector<8x16xf32>
    %28 = vector.broadcast %25 : vector<8x1xf32> to vector<8x16xf32>
    %29 = arith.mulf %27, %28 : vector<8x16xf32>
    %30 = vector.extract_strided_slice %8 {offsets = [0, 16], sizes = [8, 16], strides = [1, 1]} : vector<8x32xbf16> to vector<8x16xbf16>
    %31 = vector.extract_strided_slice %9 {offsets = [0, 16], sizes = [8, 16], strides = [1, 1]} : vector<8x32xbf16> to vector<8x16xbf16>
    %cst_9 = arith.constant dense<0.000000e+00> : vector<8x8xf32>
    %32 = tpu.matmul %30, %31, %cst_9 {dimension_numbers = #tpu.dot_dimension_numbers<[1], [1], [0], [0], [0, 0, 1, 0], [], []>} : vector<8x16xbf16>, vector<8x16xbf16>, vector<8x8xf32> -> vector<8x8xf32>
    %33 = vector.broadcast %4 : vector<1x8xf32> to vector<8x8xf32>
    %34 = arith.addf %32, %33 : vector<8x8xf32>
    %cst_10 = arith.constant dense<0xFF800000> : vector<8xf32>
    %35 = vector.multi_reduction <maximumf>, %34, %cst_10 [1] : vector<8x8xf32> to vector<8xf32>
    %36 = vector.shape_cast %35 : vector<8xf32> to vector<8x1xf32>
    %37 = vector.broadcast %36 : vector<8x1xf32> to vector<8x8xf32>
    %38 = arith.subf %34, %37 : vector<8x8xf32>
    %39 = arith.truncf %38 : vector<8x8xf32> to vector<8x8xbf16>
    %40 = math.exp %39 : vector<8x8xbf16>
    %41 = arith.extf %40 : vector<8x8xbf16> to vector<8x8xf32>
    %cst_11 = arith.constant dense<0.000000e+00> : vector<8xf32>
    %42 = vector.multi_reduction <add>, %41, %cst_11 [1] : vector<8x8xf32> to vector<8xf32>
    %43 = vector.shape_cast %42 : vector<8xf32> to vector<8x1xf32>
    %44 = tpu.reciprocal %43 {approx = true} : vector<8x1xf32> -> vector<8x1xf32>
    %45 = vector.extract_strided_slice %10 {offsets = [0, 16], sizes = [8, 16], strides = [1, 1]} : vector<8x32xbf16> to vector<8x16xbf16>
    %cst_12 = arith.constant dense<0.000000e+00> : vector<8x16xf32>
    %46 = tpu.matmul %40, %45, %cst_12 {dimension_numbers = #tpu.dot_dimension_numbers<[1], [0], [0], [1], [0, 0, 1, 1], [], []>} : vector<8x8xbf16>, vector<8x16xbf16>, vector<8x16xf32> -> vector<8x16xf32>
    %47 = vector.broadcast %44 : vector<8x1xf32> to vector<8x16xf32>
    %48 = arith.mulf %46, %47 : vector<8x16xf32>
    %49 = tpu.concatenate %29, %48 in 1 : vector<8x16xf32>, vector<8x16xf32> -> vector<8x32xf32>
    %50 = arith.truncf %49 : vector<8x32xf32> to vector<8x32xbf16>
    %c0_13 = arith.constant 0 : index
    %c0_14 = arith.constant 0 : index
    %51 = vector.load %arg20[%c0_13, %c0_14] : memref<8x32xbf16, #tpu.memory_space<vmem>>, vector<8x32xbf16>
    tpu.vector_store %arg20[%c0_13, %c0_14], %50 {strides = array<i32>} : memref<8x32xbf16, #tpu.memory_space<vmem>>, vector<8x32xbf16>,
    %c0_15 = arith.constant 0 : index
    %c0_16 = arith.constant 0 : index
    %52 = vector.load %arg20[%c0_15, %c0_16] : memref<8x32xbf16, #tpu.memory_space<vmem>>, vector<8x32xbf16>
    %c0_17 = arith.constant 0 : index
    %c0_18 = arith.constant 0 : index
    %53 = vector.load %arg8[%c0_17, %c0_18] : memref<32x32xbf16, #tpu.memory_space<vmem>>, vector<32x32xbf16>
    %cst_19 = arith.constant dense<0.000000e+00> : vector<8x32xf32>
    %54 = tpu.matmul %52, %53, %cst_19 {dimension_numbers = #tpu.dot_dimension_numbers<[1], [0], [0], [1], [0, 0, 1, 1], [], []>} : vector<8x32xbf16>, vector<32x32xbf16>, vector<8x32xf32> -> vector<8x32xf32>
    %c0_20 = arith.constant 0 : index
    %c0_21 = arith.constant 0 : index
    %55 = vector.load %arg9[%c0_20, %c0_21] : memref<1x32xf32, #tpu.memory_space<vmem>>, vector<1x32xf32>
    %56 = vector.broadcast %55 : vector<1x32xf32> to vector<8x32xf32>
    %57 = arith.addf %54, %56 : vector<8x32xf32>
    %c0_22 = arith.constant 0 : index
    %c0_23 = arith.constant 0 : index
    %c0_24 = arith.constant 0 : index
    %58 = vector.load %arg3[%c0_22, %c0_23, %c0_24] : memref<1x8x32xf32, #tpu.memory_space<vmem>>, vector<1x8x32xf32>
    %59 = vector.shape_cast %58 : vector<1x8x32xf32> to vector<8x32xf32>
    %60 = arith.addf %59, %57 : vector<8x32xf32>
    %61 = arith.truncf %60 : vector<8x32xf32> to vector<8x32xbf16>
    %cst_25 = arith.constant 0.000000e+00 : f32
    %62 = vector.broadcast %cst_25 : f32 to vector<8x32xf32>
    %c0_i32_26 = arith.constant 0 : i32
    %63 = arith.index_cast %c0_i32_26 : i32 to index
    %c0_27 = arith.constant 0 : index
    %c0_28 = arith.constant 0 : index
    %64 = vector.load %arg12[%63, %c0_27, %c0_28] : memref<1x32x64xbf16, #tpu.memory_space<vmem>>, vector<1x32x64xbf16>
    %65 = vector.shape_cast %64 : vector<1x32x64xbf16> to vector<32x64xbf16>
    %cst_29 = arith.constant dense<0.000000e+00> : vector<8x64xf32>
    %66 = tpu.matmul %61, %65, %cst_29 {dimension_numbers = #tpu.dot_dimension_numbers<[1], [0], [0], [1], [0, 0, 1, 1], [], []>} : vector<8x32xbf16>, vector<32x64xbf16>, vector<8x64xf32> -> vector<8x64xf32>
    %67 = arith.index_cast %c0_i32_26 : i32 to index
    %c0_30 = arith.constant 0 : index
    %c0_31 = arith.constant 0 : index
    %68 = vector.load %arg13[%67, %c0_30, %c0_31] : memref<1x1x64xf32, #tpu.memory_space<vmem>>, vector<1x1x64xf32>
    %69 = vector.shape_cast %68 : vector<1x1x64xf32> to vector<1x64xf32>
    %70 = vector.broadcast %69 : vector<1x64xf32> to vector<8x64xf32>
    %71 = arith.addf %66, %70 : vector<8x64xf32>
    %cst_32 = arith.constant 0.000000e+00 : f32
    %72 = vector.broadcast %cst_32 : f32 to vector<8x64xf32>
    %73 = arith.maximumf %71, %72 : vector<8x64xf32>
    %74 = arith.truncf %73 : vector<8x64xf32> to vector<8x64xbf16>
    %75 = arith.index_cast %c0_i32_26 : i32 to index
    %c0_33 = arith.constant 0 : index
    %c0_34 = arith.constant 0 : index
    %76 = vector.load %arg14[%75, %c0_33, %c0_34] : memref<1x64x32xbf16, #tpu.memory_space<vmem>>, vector<1x64x32xbf16>
    %77 = vector.shape_cast %76 : vector<1x64x32xbf16> to vector<64x32xbf16>
    %cst_35 = arith.constant dense<0.000000e+00> : vector<8x32xf32>
    %78 = tpu.matmul %74, %77, %cst_35 {dimension_numbers = #tpu.dot_dimension_numbers<[1], [0], [0], [1], [0, 0, 1, 1], [], []>} : vector<8x64xbf16>, vector<64x32xbf16>, vector<8x32xf32> -> vector<8x32xf32>
    %79 = arith.addf %62, %78 : vector<8x32xf32>
    %c1_i32 = arith.constant 1 : i32
    %c0_36 = arith.constant 0 : index
    %c0_37 = arith.constant 0 : index
    %80 = vector.load %arg15[%c0_36, %c0_37] : memref<1x32xf32, #tpu.memory_space<vmem>>, vector<1x32xf32>
    %81 = vector.broadcast %80 : vector<1x32xf32> to vector<8x32xf32>
    %82 = arith.addf %79, %81 : vector<8x32xf32>
    %83 = arith.addf %60, %82 : vector<8x32xf32>
    %c0_38 = arith.constant 0 : index
    %c0_39 = arith.constant 0 : index
    %c0_40 = arith.constant 0 : index
    %84 = vector.load %arg5[%c0_38, %c0_39, %c0_40] : memref<1x8x1xf32, #tpu.memory_space<vmem>>, vector<1x8x1xf32>
    %85 = vector.shape_cast %84 : vector<1x8x1xf32> to vector<8x1xf32>
    %86 = vector.broadcast %85 : vector<8x1xf32> to vector<8x32xf32>
    %87 = arith.mulf %83, %86 : vector<8x32xf32>
    %c0_41 = arith.constant 0 : index
    %c0_42 = arith.constant 0 : index
    %c0_43 = arith.constant 0 : index
    %88 = vector.load %arg18[%c0_41, %c0_42, %c0_43] : memref<1x8x32xf32, #tpu.memory_space<vmem>>, vector<1x8x32xf32>
    %89 = vector.shape_cast %88 : vector<1x8x32xf32> to vector<8x32xf32>
    %90 = vector.shape_cast %87 : vector<8x32xf32> to vector<1x8x32xf32>
    tpu.vector_store %arg18[%c0_41, %c0_42, %c0_43], %90 {strides = array<i32>} : memref<1x8x32xf32, #tpu.memory_space<vmem>>, vector<1x8x32xf32>,
    return
  }
  func.func @transform_0(%arg0: i32, %arg1: i32) -> (i32, i32, i32) {
    %c0_i32 = arith.constant 0 : i32
    %c0_i32_0 = arith.constant 0 : i32
    %c0_i32_1 = arith.constant 0 : i32
    return %arg0, %c0_i32, %c0_i32_0 : i32, i32, i32
  }
  func.func @transform_1(%arg0: i32, %arg1: i32) -> (i32, i32, i32) {
    %c0_i32 = arith.constant 0 : i32
    %c0_i32_0 = arith.constant 0 : i32
    return %arg0, %arg1, %c0_i32 : i32, i32, i32
  }
  func.func @transform_2(%arg0: i32, %arg1: i32) -> (i32, i32, i32) {
    %c0_i32 = arith.constant 0 : i32
    %c0_i32_0 = arith.constant 0 : i32
    %c0_i32_1 = arith.constant 0 : i32
    return %arg0, %c0_i32, %c0_i32_0 : i32, i32, i32
  }
  func.func @transform_3(%arg0: i32, %arg1: i32) -> (i32, i32, i32) {
    %c0_i32 = arith.constant 0 : i32
    %c0_i32_0 = arith.constant 0 : i32
    return %arg0, %arg1, %c0_i32 : i32, i32, i32
  }
  func.func @transform_4(%arg0: i32, %arg1: i32) -> (i32, i32) {
    %c0_i32 = arith.constant 0 : i32
    %c0_i32_0 = arith.constant 0 : i32
    %c0_i32_1 = arith.constant 0 : i32
    return %c0_i32, %c0_i32_0 : i32, i32
  }
  func.func @transform_5(%arg0: i32, %arg1: i32) -> (i32, i32) {
    %c0_i32 = arith.constant 0 : i32
    %c0_i32_0 = arith.constant 0 : i32
    %c0_i32_1 = arith.constant 0 : i32
    return %c0_i32, %c0_i32_0 : i32, i32
  }
  func.func @transform_6(%arg0: i32, %arg1: i32) -> (i32, i32) {
    %c0_i32 = arith.constant 0 : i32
    %c0_i32_0 = arith.constant 0 : i32
    %c0_i32_1 = arith.constant 0 : i32
    return %c0_i32, %c0_i32_0 : i32, i32
  }
  func.func @transform_7(%arg0: i32, %arg1: i32) -> (i32, i32) {
    %c0_i32 = arith.constant 0 : i32
    %c0_i32_0 = arith.constant 0 : i32
    %c0_i32_1 = arith.constant 0 : i32
    return %c0_i32, %c0_i32_0 : i32, i32
  }
  func.func @transform_8(%arg0: i32, %arg1: i32) -> (i32, i32) {
    %c0_i32 = arith.constant 0 : i32
    %c0_i32_0 = arith.constant 0 : i32
    %c0_i32_1 = arith.constant 0 : i32
    return %c0_i32, %c0_i32_0 : i32, i32
  }
  func.func @transform_9(%arg0: i32, %arg1: i32) -> (i32, i32) {
    %c0_i32 = arith.constant 0 : i32
    %c0_i32_0 = arith.constant 0 : i32
    %c0_i32_1 = arith.constant 0 : i32
    return %c0_i32, %c0_i32_0 : i32, i32
  }
  func.func @transform_10(%arg0: i32, %arg1: i32) -> (i32, i32, i32) {
    %c0_i32 = arith.constant 0 : i32
    %c0_i32_0 = arith.constant 0 : i32
    %c0_i32_1 = arith.constant 0 : i32
    %c0_i32_2 = arith.constant 0 : i32
    return %c0_i32, %c0_i32_0, %c0_i32_1 : i32, i32, i32
  }
  func.func @transform_11(%arg0: i32, %arg1: i32) -> (i32, i32, i32) {
    %c0_i32 = arith.constant 0 : i32
    %c0_i32_0 = arith.constant 0 : i32
    %c0_i32_1 = arith.constant 0 : i32
    %c0_i32_2 = arith.constant 0 : i32
    return %c0_i32, %c0_i32_0, %c0_i32_1 : i32, i32, i32
  }
  func.func @transform_12(%arg0: i32, %arg1: i32) -> (i32, i32, i32) {
    %c0_i32 = arith.constant 0 : i32
    %c0_i32_0 = arith.constant 0 : i32
    %c0_i32_1 = arith.constant 0 : i32
    %c0_i32_2 = arith.constant 0 : i32
    return %c0_i32, %c0_i32_0, %c0_i32_1 : i32, i32, i32
  }
  func.func @transform_13(%arg0: i32, %arg1: i32) -> (i32, i32) {
    %c0_i32 = arith.constant 0 : i32
    %c0_i32_0 = arith.constant 0 : i32
    %c0_i32_1 = arith.constant 0 : i32
    return %c0_i32, %c0_i32_0 : i32, i32
  }
  func.func @transform_14(%arg0: i32, %arg1: i32) -> (i32, i32) {
    %c0_i32 = arith.constant 0 : i32
    %c0_i32_0 = arith.constant 0 : i32
    %c0_i32_1 = arith.constant 0 : i32
    return %c0_i32, %c0_i32_0 : i32, i32
  }
  func.func @transform_15(%arg0: i32, %arg1: i32) -> (i32, i32) {
    %c0_i32 = arith.constant 0 : i32
    %c0_i32_0 = arith.constant 0 : i32
    %c0_i32_1 = arith.constant 0 : i32
    return %c0_i32, %c0_i32_0 : i32, i32
  }
  func.func @transform_16(%arg0: i32, %arg1: i32) -> (i32, i32, i32) {
    %c0_i32 = arith.constant 0 : i32
    %c0_i32_0 = arith.constant 0 : i32
    return %arg0, %arg1, %c0_i32 : i32, i32, i32
  }
}

</mosaic_0001>

<bundles_post_ra>
// kernel: tpu_custom_call.1
= control target key start
LH: loop header
LB: loop body
LE: loop exit
PB: predicated region body
PF: predicated region fallthrough
CT: control target
= control target key end

     0   :  { %s3373_s0 = inlined_call_operand.hbm [shape: f32[2,8,32], index: 0, kind: input, shape index: {}]   ;;  %s3374_s1 = inlined_call_operand.hbm [shape: f32[2,8,32], index: 1, kind: input, shape index: {}]   ;;  %s3375_s2 = inlined_call_operand.hbm [shape: f32[2,1,8], index: 2, kind: input, shape index: {}]   ;;  %s3376_s3 = inlined_call_operand.hbm [shape: f32[2,8,1], index: 3, kind: input, shape index: {}]   ;;  %s3377_s4 = inlined_call_operand.hbm [shape: bf16[32,96], index: 4, kind: input, shape index: {}]   ;;  %s3378_s5 = inlined_call_operand.hbm [shape: f32[1,96], index: 5, kind: input, shape index: {}]   ;;  %s3379_s6 = inlined_call_operand.hbm [shape: bf16[32,32], index: 6, kind: input, shape index: {}]   ;;  %s3380_s7 = inlined_call_operand.hbm [shape: f32[1,32], index: 7, kind: input, shape index: {}]   ;;  %s3381_s8 = inlined_call_operand.hbm [shape: f32[1,32], index: 8, kind: input, shape index: {}]   ;;  %s3382_s9 = inlined_call_operand.hbm [shape: f32[1,32], index: 9, kind: input, shape index: {}]   ;;  %s3383_s10 = inlined_call_operand.hbm [shape: bf16[1,32,64], index: 10, kind: input, shape index: {}]   ;;  %s3384_s11 = inlined_call_operand.hbm [shape: f32[1,1,64], index: 11, kind: input, shape index: {}]   ;;  %s3385_s12 = inlined_call_operand.hbm [shape: bf16[1,64,32], index: 12, kind: input, shape index: {}]   ;;  %s3386_s13 = inlined_call_operand.hbm [shape: f32[1,32], index: 13, kind: input, shape index: {}]   ;;  %s3387_s14 = inlined_call_operand.hbm [shape: f32[1,32], index: 14, kind: input, shape index: {}]   ;;  %s3388_s15 = inlined_call_operand.hbm [shape: f32[1,32], index: 15, kind: input, shape index: {}]   ;;  %s3389_s16 = inlined_call_operand.hbm [shape: f32[2,8,32], index: 16, kind: output, shape index: {}]  }
   0x1   :  { %3422 = sst [smem:[#allocation48_spill]] %s3373_s0 }
   0x2   :  { %3423 = sst [smem:[#allocation49_spill]] %s3374_s1 }
   0x3   :  { %3424 = sst [smem:[#allocation50_spill]] %s3375_s2 }
   0x4   :  { %3425 = sst [smem:[#allocation51_spill]] %s3376_s3 }
   0x5   :  { %3426 = sst [smem:[#allocation52_spill]] %s3377_s4 }
   0x6   :  { %3427 = sst [smem:[#allocation53_spill]] %s3378_s5 }
   0x7   :  { %3428 = sst [smem:[#allocation54_spill]] %s3379_s6 }
   0x8   :  { %3429 = sst [smem:[#allocation55_spill]] %s3380_s7 }
   0x9   :  { %3430 = sst [smem:[#allocation56_spill]] %s3381_s8 }
   0xa   :  { %3431 = sst [smem:[#allocation57_spill]] %s3382_s9 }
   0xb   :  { %3432 = sst [smem:[#allocation58_spill]] %s3383_s10 }
   0xc   :  { %3433 = sst [smem:[#allocation59_spill]] %s3384_s11 }
   0xd   :  { %3434 = sst [smem:[#allocation60_spill]] %s3385_s12 }
   0xe   :  { %3435 = sst [smem:[#allocation61_spill]] %s3386_s13 }
   0xf   :  { %3436 = sst [smem:[#allocation62_spill]] %s3387_s14 }
  0x10   :  { %3437 = sst [smem:[#allocation63_spill]] %s3388_s15 }
  0x11   :  { %3438 = sst [smem:[#allocation64_spill]] %s3389_s16 }
  0x12   :  { %21 = vsyncpa [#allocation5], 0 }
  0x13   :  { %23 = vsyncpa [#allocation5 + $0x1], 0 }
  0x14   :  { %24 = vsyncpa [#allocation8], 0 }
  0x15   :  { %26 = vsyncpa [#allocation8 + $0x1], 0 }
  0x16   :  { %27 = vsyncpa [#allocation11], 0 }
  0x17   :  { %29 = vsyncpa [#allocation11 + $0x1], 0 }
  0x18   :  { %30 = vsyncpa [#allocation14], 0 }
  0x19   :  { %31 = vsyncpa [#allocation17], 0 }
  0x1a   :  { %32 = vsyncpa [#allocation20], 0 }
  0x1b   :  { %33 = vsyncpa [#allocation23], 0 }
  0x1c   :  { %34 = vsyncpa [#allocation26], 0 }
  0x1d   :  { %35 = vsyncpa [#allocation29], 0 }
  0x1e   :  { %36 = vsyncpa [#allocation6], 0 }
  0x1f   :  { %38 = vsyncpa [#allocation6 + $0x1], 0  ;;  %s2727_s21 = smov 0   ;;  %s2729_s22 = smov 0  }
  0x20   :  { %s2731_s23 = smov 0   ;;  %s2733_s24 = smov 0  }
  0x21   :  { %s2735_s25 = smov 0   ;;  %s2737_s26 = smov 0  }
  0x22 LB: > { %3439 = sst [smem:[#allocation42_spill]] %s2600_s23  ;;  %s2758_s27 = sadd.s32 4294967295, %s2612_s26   ;;  %s2612_s26 = sphi %s2737_s26, %s44_s26   ;;  %s2608_s25 = sphi %s2735_s25, %s3512_s25   ;;  %s2604_s24 = sphi %s2733_s24, %s3511_s24   ;;  %s2600_s23 = sphi %s2731_s23, %s3507_s23   ;;  %s2596_s22 = sphi %s2729_s22, %s3510_s22   ;;  %s2592_s21 = sphi %s2727_s21, %s3509_s21  }
  0x23   : > { %3440 = sst [smem:[#allocation43_spill]] %s2604_s24  ;;  %p1658_p0 = scmp.ge.s32.totalorder %s2612_s26, 1 }
  0x24   : > { %p3399_p1 = scmp.eq.s32.totalorder %s2758_s27, 0  ;;  %p449_p2 = scmp.lt.s32.totalorder %s2612_s26, 3 }
  0x25   : > { %s2614_s29 = smov [#allocation12]   ;;  %s2615_s17 = smov [#allocation13]  }
  0x26   : > { %p2763_p3 = pnand %p1658_p0, %p449_p2  ;;  %s461_s30 = sshll.u32 %s2614_s29, 4  ;;  %s2767_s30 = int_to_ptr.vmem [resolvable:$true] %s461_s30 }
  0x27   : > { %s475_s18 = sshll.u32 %s2615_s17, 4  ;;  %s2616_s19 = smov [#allocation16]   ;;  %s2778_s18 = int_to_ptr.vmem [resolvable:$true] %s475_s18 }
  0x28   : > { %s3441_s28 = scalar_select %p2763_p3, 1, 0 }
  0x29   : > { %p1865_p4 = pneg %p2763_p3  ;;  %s2780_s20 = sshll.u32 %s2616_s19, 4  ;;  %s500_s20 = int_to_ptr.vmem [resolvable:$true] %s2780_s20 }
  0x2a   : > { %3442 = sst [smem:[#allocation44_spill]] %s3441_s28  ;;  %s3444_s4 = sld [smem:[#allocation52_spill]] }
  0x2b   : > { %p2774_p6 = pnand %p1865_p4, %p3399_p1 }
  0x2d   : > { %s3443_s0 = scalar_select %p2774_p6, 1, 0 }
  0x2e   : > { %p2790_p8 = pneg %p2774_p6 }
  0x30   : > { %s2038_s24 = scalar_lea.hbm %s3444_s4, 256 }
  0x31   : > { %p2039_p7 = scmp.ne.s32.totalorder %s3444_s4, %s2038_s24  ;;  %p2045_p11 = scmp.lt.u32.totalorder %s2038_s24, %s3444_s4 }
  0x32   : > { %s3445_s2 = scalar_select %p2790_p8, 1, 0 }
  0x33   : > { %p2041_p9 = pnand %p2790_p8, %p2039_p7 }
  0x35   : > { %p2042_p10 = pneg %p2041_p9 }
  0x37   : > { %p2047_p12 = pnand %p2045_p11, %p2042_p10 }
  0x39   : > { %2050 = shalt.err (!%p2047_p12)
}
  0x3a   : > { %s2051_s3 = scalar_lea.vmem %s2767_s30, 256  ;;  %p2059_p4 = scmp.lt.s32.totalorder %s2767_s30, %s2767_s30 }
  0x3b   : > { %p2052_p13 = scmp.ne.s32.totalorder %s2767_s30, %s2051_s3  ;;  %p2060_p5 = scmp.lt.s32.totalorder %s2051_s3, %s2051_s3 }
  0x3d   : > { %p2054_p0 = pnand %p2052_p13, %p2790_p8  ;;  %p2061_p7 = por %p2060_p5, %p2059_p4 }
  0x3f   : > { %p2055_p2 = pneg %p2054_p0 }
  0x41   : > { %p2062_p9 = pnand %p2061_p7, %p2055_p2 }
  0x43   : > { %2065 = shalt.err (!%p2062_p9)
}
  0x44   : > { %s3401_s16 = smov 64   ;;  %s3403_s24 = smov 4  }
  0x45   : > { %1868 = dma.hbm_to_vmem [thread:$0]  (!%p2774_p6), %s3444_s4, 256, %s2767_s30, [#allocation11], %s3401_s16, %s3401_s16, %s3403_s24  }
  0x46   : > { %s3446_s5 = sld [smem:[#allocation53_spill]] }
  0x4c   : > { %s2066_s3 = scalar_lea.hbm %s3446_s5, 16 }
  0x4d   : > { %p2067_p5 = scmp.ne.s32.totalorder %s3446_s5, %s2066_s3  ;;  %p2073_p12 = scmp.lt.u32.totalorder %s2066_s3, %s3446_s5 }
  0x4f   : > { %p2069_p10 = pnand %p2067_p5, %p2790_p8 }
  0x51   : > { %p2070_p11 = pneg %p2069_p10 }
  0x53   : > { %p2075_p13 = pnand %p2073_p12, %p2070_p11 }
  0x55   : > { %2078 = shalt.err (!%p2075_p13)
}
  0x56   : > { %s2079_s30 = scalar_lea.vmem %s2778_s18, 16  ;;  %s2086_s14 = scalar_lea.vmem %s2778_s18, 32 }
  0x57   : > { %p2080_p0 = scmp.ne.s32.totalorder %s2778_s18, %s2079_s30  ;;  %p2087_p7 = scmp.lt.s32.totalorder %s2778_s18, %s2778_s18 }
  0x58   : > { %p2088_p9 = scmp.lt.s32.totalorder %s2086_s14, %s2079_s30 }
  0x59   : > { %p2082_p2 = pnand %p2080_p0, %p2790_p8 }
  0x5a   : > { %p2089_p5 = por %p2088_p9, %p2087_p7 }
  0x5b   : > { %p2083_p4 = pneg %p2082_p2 }
  0x5d   : > { %p2090_p10 = pnand %p2089_p5, %p2083_p4 }
  0x5f   : > { %2093 = shalt.err (!%p2090_p10)
}
  0x60   : > { %1871 = dma.hbm_to_vmem [thread:$0]  (!%p2774_p6), %s3446_s5, 16, %s2778_s18, [#allocation14]  }
  0x61   : > { %s3447_s7 = sld [smem:[#allocation55_spill]] }
  0x67   : > { %s2094_s29 = scalar_lea.hbm %s3447_s7, 16 }
  0x68   : > { %p2095_p11 = scmp.ne.s32.totalorder %s3447_s7, %s2094_s29  ;;  %p2101_p0 = scmp.lt.u32.totalorder %s2094_s29, %s3447_s7 }
  0x6a   : > { %p2097_p12 = pnand %p2095_p11, %p2790_p8 }
  0x6c   : > { %p2098_p13 = pneg %p2097_p12 }
  0x6e   : > { %p2103_p2 = pnand %p2101_p0, %p2098_p13 }
  0x70   : > { %2106 = shalt.err (!%p2103_p2)
}
  0x71   : > { %s2107_s14 = scalar_lea.vmem %s500_s20, 16  ;;  %s2114_s18 = scalar_lea.vmem %s500_s20, 32 }
  0x72   : > { %p2108_p4 = scmp.ne.s32.totalorder %s500_s20, %s2107_s14  ;;  %p2115_p5 = scmp.lt.s32.totalorder %s500_s20, %s500_s20 }
  0x73   : > { %p2116_p10 = scmp.lt.s32.totalorder %s2114_s18, %s2107_s14 }
  0x74   : > { %p2110_p7 = pnand %p2108_p4, %p2790_p8 }
  0x75   : > { %p2117_p1 = por %p2116_p10, %p2115_p5 }
  0x76   : > { %p2111_p9 = pneg %p2110_p7 }
  0x78   : > { %p2118_p3 = pnand %p2117_p1, %p2111_p9 }
  0x7a   : > { %2121 = shalt.err (!%p2118_p3)
}
  0x7b   : > { %1877 = dma.hbm_to_vmem [thread:$0]  (!%p2774_p6), %s3447_s7, 16, %s500_s20, [#allocation17]  }
  0x7c   : > { %s2619_s15 = smov [#allocation19]   ;;  %s2620_s29 = smov [#allocation22]  }
  0x7d   : > { %s521_s28 = sshll.u32 %s2619_s15, 4  ;;  %s545_s17 = sshll.u32 %s2620_s29, 4  ;;  %s522_s28 = int_to_ptr.vmem [resolvable:$true] %s521_s28  ;;  %s546_s17 = int_to_ptr.vmem [resolvable:$true] %s545_s17 }
  0x7e   : > { %s3448_s9 = sld [smem:[#allocation57_spill]] }
  0x84   : > { %s2122_s30 = scalar_lea.hbm %s3448_s9, 16 }
  0x85   : > { %p2123_p1 = scmp.ne.s32.totalorder %s3448_s9, %s2122_s30  ;;  %p2129_p12 = scmp.lt.u32.totalorder %s2122_s30, %s3448_s9 }
  0x87   : > { %p2125_p3 = pnand %p2123_p1, %p2790_p8 }
  0x89   : > { %p2126_p11 = pneg %p2125_p3 }
  0x8b   : > { %p2131_p13 = pnand %p2129_p12, %p2126_p11 }
  0x8d   : > { %2134 = shalt.err (!%p2131_p13)
}
  0x8e   : > { %s2135_s20 = scalar_lea.vmem %s522_s28, 16  ;;  %s2142_s12 = scalar_lea.vmem %s522_s28, 32 }
  0x8f   : > { %p2136_p0 = scmp.ne.s32.totalorder %s522_s28, %s2135_s20  ;;  %p2143_p7 = scmp.lt.s32.totalorder %s522_s28, %s522_s28 }
  0x90   : > { %p2144_p9 = scmp.lt.s32.totalorder %s2142_s12, %s2135_s20 }
  0x91   : > { %p2138_p2 = pnand %p2136_p0, %p2790_p8 }
  0x92   : > { %p2145_p5 = por %p2144_p9, %p2143_p7 }
  0x93   : > { %p2139_p4 = pneg %p2138_p2 }
  0x95   : > { %p2146_p10 = pnand %p2145_p5, %p2139_p4 }
  0x97   : > { %2149 = shalt.err (!%p2146_p10)
}
  0x98   : > { %1883 = dma.hbm_to_vmem [thread:$0]  (!%p2774_p6), %s3448_s9, 16, %s522_s28, [#allocation20]  }
  0x99   : > { %s3449_s11 = sld [smem:[#allocation59_spill]] }
  0x9f   : > { %s2150_s3 = scalar_lea.hbm %s3449_s11, 16 }
  0xa0   : > { %p2151_p1 = scmp.ne.s32.totalorder %s3449_s11, %s2150_s3  ;;  %p2157_p12 = scmp.lt.u32.totalorder %s2150_s3, %s3449_s11 }
  0xa2   : > { %p2153_p3 = pnand %p2151_p1, %p2790_p8 }
  0xa4   : > { %p2154_p11 = pneg %p2153_p3 }
  0xa6   : > { %p2159_p13 = pnand %p2157_p12, %p2154_p11 }
  0xa8   : > { %2162 = shalt.err (!%p2159_p13)
}
  0xa9   : > { %s2163_s20 = scalar_lea.vmem %s546_s17, 16  ;;  %s2170_s28 = scalar_lea.vmem %s546_s17, 32 }
  0xaa   : > { %p2164_p0 = scmp.ne.s32.totalorder %s546_s17, %s2163_s20  ;;  %p2171_p7 = scmp.lt.s32.totalorder %s546_s17, %s546_s17 }
  0xab   : > { %p2172_p9 = scmp.lt.s32.totalorder %s2170_s28, %s2163_s20 }
  0xac   : > { %p2166_p2 = pnand %p2164_p0, %p2790_p8 }
  0xad   : > { %p2173_p5 = por %p2172_p9, %p2171_p7 }
  0xae   : > { %p2167_p4 = pneg %p2166_p2 }
  0xb0   : > { %p2174_p10 = pnand %p2173_p5, %p2167_p4 }
  0xb2   : > { %2177 = shalt.err (!%p2174_p10)
}
  0xb3   : > { %1889 = dma.hbm_to_vmem [thread:$0]  (!%p2774_p6), %s3449_s11, 16, %s546_s17, [#allocation23]  }
  0xb4   : > { %s2621_s29 = smov [#allocation25]   ;;  %s3450_s13 = sld [smem:[#allocation61_spill]] }
  0xb5   : > { %s569_s16 = sshll.u32 %s2621_s29, 4  ;;  %s570_s16 = int_to_ptr.vmem [resolvable:$true] %s569_s16 }
  0xba   : > { %s2178_s30 = scalar_lea.hbm %s3450_s13, 16 }
  0xbb   : > { %p2179_p1 = scmp.ne.s32.totalorder %s3450_s13, %s2178_s30  ;;  %p2185_p12 = scmp.lt.u32.totalorder %s2178_s30, %s3450_s13 }
  0xbd   : > { %p2181_p3 = pnand %p2179_p1, %p2790_p8 }
  0xbf   : > { %p2182_p11 = pneg %p2181_p3 }
  0xc1   : > { %p2187_p13 = pnand %p2185_p12, %p2182_p11 }
  0xc3   : > { %2190 = shalt.err (!%p2187_p13)
}
  0xc4   : > { %s2191_s17 = scalar_lea.vmem %s570_s16, 16  ;;  %s2198_s28 = scalar_lea.vmem %s570_s16, 32 }
  0xc5   : > { %p2192_p0 = scmp.ne.s32.totalorder %s570_s16, %s2191_s17  ;;  %p2199_p7 = scmp.lt.s32.totalorder %s570_s16, %s570_s16 }
  0xc6   : > { %p2200_p9 = scmp.lt.s32.totalorder %s2198_s28, %s2191_s17 }
  0xc7   : > { %p2194_p2 = pnand %p2192_p0, %p2790_p8 }
  0xc8   : > { %p2201_p5 = por %p2200_p9, %p2199_p7 }
  0xc9   : > { %p2195_p4 = pneg %p2194_p2 }
  0xcb   : > { %p2202_p10 = pnand %p2201_p5, %p2195_p4 }
  0xcd   : > { %2205 = shalt.err (!%p2202_p10)
}
  0xce   : > { %1895 = dma.hbm_to_vmem [thread:$0]  (!%p2774_p6), %s3450_s13, 16, %s570_s16, [#allocation26]  }
  0xcf   : > { %s1657_s29 = sadd.s32 4294967294, %s2612_s26   ;;  %s56_s19 = sadd.s32 1, %s2608_s25 }
  0xd0   : > { %p58_p1 = scmp.ge.s32.totalorder %s56_s19, 2  ;;  %s63_s3 = sadd.s32 1, %s2600_s23 }
  0xd1   : > { %p70_p3 = scmp.ne.s32.totalorder %s2600_s23, %s2596_s22  ;;  %p71_p11 = scmp.eq.s32.totalorder %s2612_s26, 0 }
  0xd2   : > { %s3514_s19 = smov (%p58_p1, %s56_s19), 0  ;;  %p76_p13 = scmp.ne.s32.totalorder %s2596_s22, %s2592_s21 }
  0xd3   : > { %3451 = sst [smem:[#allocation45_spill]] %s3514_s19  ;;  %p2919_p12 = por %p71_p11, %p70_p3 }
  0xd4   : > { %s60_s16 = ssub.s32 %s2608_s25, %s3514_s19  ;;  %p436_p0 = scmp.eq.s32.totalorder %s2758_s27, 1 }
  0xd5   : > { %p61_p2 = scmp.eq.s32.totalorder %s60_s16, 0  ;;  %p3453_p4 = scmp.eq.s32.totalorder %s2758_s27, 0 }
  0xd6   : > { %p2934_p9 = por %p436_p0, %p70_p3  ;;  %p442_p5 = scmp.eq.s32.totalorder %s1657_s29, 1 }
  0xd7   : > { %p2930_p7 = por %p3453_p4, %p76_p13  ;;  %p1931_p1 = scmp.lt.s32.totalorder %s2612_s26, 2 }
  0xd8   : > { %s3455_s18 = scalar_select %p2934_p9, 1, 0 }
  0xd9   : > { %s3454_s14 = scalar_select %p2930_p7, 1, 0 }
  0xda   : > { %s2939_s10 = scalar_select %p61_p2, %s2600_s23, %s63_s3  }
  0xdb   : > { %p2941_p10 = por %p442_p5, %p76_p13  ;;  %s2947_s17 = sand.u32 1, %s2600_s23  }
  0xdc   : > { %3456 = sst [smem:[#allocation46_spill]] %s2939_s10  ;;  %s2950_s28 = sshll.u32 %s2608_s25, 7 }
  0xdd   : > { %s3457_s20 = scalar_select %p2941_p10, 1, 0 }
  0xde   : > { %s2953_s12 = sshll.u32 %s2947_s17, 3  ;;  %p2957_p3 = pnand %p1931_p1, %p2919_p12 }
  0xdf   : > { %3458 = sst [smem:[#allocation47_spill]] %s3457_s20  ;;  %s3406_s29 = sand.u32 1, %s2612_s26  }
  0xe0   : > { %s3459_s15 = scalar_select %p2957_p3, 1, 0 }
  0xe1   : > { %s3460_s1 = sld [smem:[#allocation49_spill]]  ;;  %s624_s4 = scalar_lea.vmem [#allocation7], %s2953_s12 }
  0xe2   : > { %s632_s5 = sshll.u32 %s624_s4, 4  ;;  %s2973_s30 = scalar_lea.sflag [#allocation8], %s3406_s29  ;;  %s2969_s5 = int_to_ptr.vmem [resolvable:$true] %s632_s5 }
  0xe3   : > { %p2979_p12 = pneg %p2957_p3 }
  0xe5   : > { %s3461_s9 = scalar_select %p2979_p12, 1, 0 }
  0xe7   : > { %s2966_s24 = scalar_lea.hbm %s3460_s1, %s2950_s28  ;;  %s2211_s4 = scalar_lea.hbm %s3460_s1, 256 }
  0xe8   : > { %s2206_s7 = scalar_lea.hbm %s2966_s24, 128  ;;  %p2212_p2 = scmp.lt.u32.totalorder %s2966_s24, %s3460_s1 }
  0xe9   : > { %p2207_p11 = scmp.ne.s32.totalorder %s2966_s24, %s2206_s7  ;;  %p2213_p4 = scmp.lt.u32.totalorder %s2211_s4, %s2206_s7 }
  0xea   : > { %p2215_p1 = scmp.lt.u32.totalorder %s2206_s7, %s2966_s24 }
  0xeb   : > { %p2209_p13 = pnand %p2979_p12, %p2207_p11  ;;  %p2214_p5 = por %p2213_p4, %p2212_p2 }
  0xed   : > { %p2210_p0 = pneg %p2209_p13  ;;  %p2216_p10 = por %p2215_p1, %p2214_p5 }
  0xef   : > { %p2217_p9 = pnand %p2216_p10, %p2210_p0 }
  0xf1   : > { %2220 = shalt.err (!%p2217_p9)
}
  0xf2   : > { %s2221_s29 = scalar_lea.vmem %s2969_s5, 128  ;;  %s2622_s3 = smov [#allocation7]  }
  0xf3   : > { %p2222_p11 = scmp.ne.s32.totalorder %s2969_s5, %s2221_s29  ;;  %s2226_s16 = sshll.u32 %s2622_s3, 4  ;;  %s2227_s16 = int_to_ptr.vmem [resolvable:$false] %s2226_s16 }
  0xf4   : > { %s2228_s11 = scalar_lea.vmem %s2227_s16, 256  ;;  %p2229_p6 = scmp.lt.s32.totalorder %s2969_s5, %s2227_s16 }
  0xf5   : > { %p2224_p13 = pnand %p2222_p11, %p2979_p12  ;;  %p2230_p8 = scmp.lt.s32.totalorder %s2228_s11, %s2221_s29 }
  0xf7   : > { %p2225_p7 = pneg %p2224_p13  ;;  %p2231_p2 = por %p2230_p8, %p2229_p6 }
  0xf9   : > { %p2232_p4 = pnand %p2231_p2, %p2225_p7 }
  0xfb   : > { %2235 = shalt.err (!%p2232_p4)
}
  0xfc   : > { %1908 = dma.hbm_to_vmem [thread:$0]  (!%p2957_p3), %s2966_s24, 128, %s2969_s5, %s2973_s30  }
  0xfd   : > { %s2623_s7 = smov [#allocation15]   ;;  %s2624_s4 = smov [#allocation18]  }
  0xfe   : > { %s485_s13 = sshll.u32 %s2623_s7, 4  ;;  %s510_s1 = sshll.u32 %s2624_s4, 4  ;;  %s486_s13 = int_to_ptr.vmem [resolvable:$true] %s485_s13  ;;  %s3003_s1 = int_to_ptr.vmem [resolvable:$true] %s510_s1 }
  0xff   : > { %s3462_s6 = sld [smem:[#allocation54_spill]]  ;;  %p3463_p8 = scmp.ne.s32.totalorder %s3445_s2, 0 }
 0x105   : > { %s2236_s29 = scalar_lea.hbm %s3462_s6, 256 }
 0x106   : > { %p2237_p6 = scmp.ne.s32.totalorder %s3462_s6, %s2236_s29  ;;  %p2243_p10 = scmp.lt.u32.totalorder %s2236_s29, %s3462_s6 }
 0x108   : > { %p2239_p7 = pnand %p2237_p6, %p3463_p8 }
 0x10a   : > { %p2240_p9 = pneg %p2239_p7 }
 0x10c   : > { %p2245_p0 = pnand %p2243_p10, %p2240_p9 }
 0x10e   : > { %2248 = shalt.err (!%p2245_p0)
}
 0x10f   : > { %s2249_s24 = scalar_lea.vmem %s486_s13, 256  ;;  %p2257_p13 = scmp.lt.s32.totalorder %s486_s13, %s486_s13 }
 0x110   : > { %p2250_p5 = scmp.ne.s32.totalorder %s486_s13, %s2249_s24  ;;  %p2258_p2 = scmp.lt.s32.totalorder %s2249_s24, %s2249_s24 }
 0x112   : > { %p2252_p1 = pnand %p2250_p5, %p3463_p8  ;;  %p2259_p4 = por %p2258_p2, %p2257_p13 }
 0x114   : > { %p2253_p11 = pneg %p2252_p1 }
 0x116   : > { %p2260_p3 = pnand %p2259_p4, %p2253_p11 }
 0x118   : > { %2263 = shalt.err (!%p2260_p3)
}
 0x119   : > { %p3464_p6 = scmp.ne.s32.totalorder %s3443_s0, 0  ;;  %s3465_s19 = smov 4  }
 0x11a   : > { %s3466_s7 = smov 64   ;;  %s3467_s8 = sld [smem:[#allocation56_spill]] }
 0x11b   : > { %1874 = dma.hbm_to_vmem [thread:$0]  (!%p3464_p6), %s3462_s6, 256, %s486_s13, [#allocation14], %s3466_s7, %s3466_s7, %s3465_s19  }
 0x120   : > { %s2264_s29 = scalar_lea.hbm %s3467_s8, 16 }
 0x121   : > { %p2265_p7 = scmp.ne.s32.totalorder %s3467_s8, %s2264_s29  ;;  %p2271_p10 = scmp.lt.u32.totalorder %s2264_s29, %s3467_s8 }
 0x123   : > { %p2267_p3 = pnand %p2265_p7, %p3463_p8 }
 0x125   : > { %p2268_p9 = pneg %p2267_p3 }
 0x127   : > { %p2273_p0 = pnand %p2271_p10, %p2268_p9 }
 0x129   : > { %2276 = shalt.err (!%p2273_p0)
}
 0x12a   : > { %s2277_s13 = scalar_lea.vmem %s3003_s1, 16  ;;  %s2284_s10 = scalar_lea.vmem %s3003_s1, 32 }
 0x12b   : > { %p2278_p5 = scmp.ne.s32.totalorder %s3003_s1, %s2277_s13  ;;  %p2285_p13 = scmp.lt.s32.totalorder %s3003_s1, %s3003_s1 }
 0x12c   : > { %p2286_p2 = scmp.lt.s32.totalorder %s2284_s10, %s2277_s13 }
 0x12d   : > { %p2280_p1 = pnand %p2278_p5, %p3463_p8 }
 0x12e   : > { %p2287_p4 = por %p2286_p2, %p2285_p13 }
 0x12f   : > { %p2281_p11 = pneg %p2280_p1 }
 0x131   : > { %p2288_p7 = pnand %p2287_p4, %p2281_p11 }
 0x133   : > { %2291 = shalt.err (!%p2288_p7)
}
 0x134   : > { %1880 = dma.hbm_to_vmem [thread:$0]  (!%p3464_p6), %s3467_s8, 16, %s3003_s1, [#allocation17]  }
 0x135   : > { %s2625_s3 = smov [#allocation21]   ;;  %s2626_s29 = smov [#allocation24]  }
 0x136   : > { %s531_s16 = sshll.u32 %s2625_s3, 4  ;;  %s555_s11 = sshll.u32 %s2626_s29, 4  ;;  %s532_s16 = int_to_ptr.vmem [resolvable:$true] %s531_s16  ;;  %s3050_s11 = int_to_ptr.vmem [resolvable:$true] %s555_s11 }
 0x137   : > { %s3468_s13 = sld [smem:[#allocation58_spill]] }
 0x13d   : > { %s2292_s10 = scalar_lea.hbm %s3468_s13, 256 }
 0x13e   : > { %p2293_p3 = scmp.ne.s32.totalorder %s3468_s13, %s2292_s10  ;;  %p2299_p0 = scmp.lt.u32.totalorder %s2292_s10, %s3468_s13 }
 0x140   : > { %p2295_p9 = pnand %p2293_p3, %p3463_p8 }
 0x142   : > { %p2296_p10 = pneg %p2295_p9 }
 0x144   : > { %p2301_p5 = pnand %p2299_p0, %p2296_p10 }
 0x146   : > { %2304 = shalt.err (!%p2301_p5)
}
 0x147   : > { %s2305_s4 = scalar_lea.vmem %s532_s16, 256  ;;  %p2313_p2 = scmp.lt.s32.totalorder %s532_s16, %s532_s16 }
 0x148   : > { %p2306_p1 = scmp.ne.s32.totalorder %s532_s16, %s2305_s4  ;;  %p2314_p4 = scmp.lt.s32.totalorder %s2305_s4, %s2305_s4 }
 0x14a   : > { %p2308_p11 = pnand %p2306_p1, %p3463_p8  ;;  %p2315_p7 = por %p2314_p4, %p2313_p2 }
 0x14c   : > { %p2309_p13 = pneg %p2308_p11 }
 0x14e   : > { %p2316_p12 = pnand %p2315_p7, %p2309_p13 }
 0x150   : > { %2319 = shalt.err (!%p2316_p12)
}
 0x151   : > { %1886 = dma.hbm_to_vmem [thread:$0]  (!%p3464_p6), %s3468_s13, 256, %s532_s16, [#allocation20], %s3466_s7, %s3466_s7, %s3465_s19  }
 0x152   : > { %s3469_s5 = sld [smem:[#allocation60_spill]] }
 0x158   : > { %s2320_s24 = scalar_lea.hbm %s3469_s5, 512 }
 0x159   : > { %p2321_p3 = scmp.ne.s32.totalorder %s3469_s5, %s2320_s24  ;;  %p2327_p10 = scmp.lt.u32.totalorder %s2320_s24, %s3469_s5 }
 0x15b   : > { %p2323_p12 = pnand %p2321_p3, %p3463_p8 }
 0x15d   : > { %p2324_p9 = pneg %p2323_p12 }
 0x15f   : > { %p2329_p0 = pnand %p2327_p10, %p2324_p9 }
 0x161   : > { %2332 = shalt.err (!%p2329_p0)
}
 0x162   : > { %s2333_s16 = scalar_lea.vmem %s3050_s11, 512  ;;  %p2341_p13 = scmp.lt.s32.totalorder %s3050_s11, %s3050_s11 }
 0x163   : > { %p2334_p5 = scmp.ne.s32.totalorder %s3050_s11, %s2333_s16  ;;  %p2342_p2 = scmp.lt.s32.totalorder %s2333_s16, %s2333_s16 }
 0x165   : > { %p2336_p1 = pnand %p2334_p5, %p3463_p8  ;;  %p2343_p4 = por %p2342_p2, %p2341_p13 }
 0x167   : > { %p2337_p11 = pneg %p2336_p1 }
 0x169   : > { %p2344_p7 = pnand %p2343_p4, %p2337_p11 }
 0x16b   : > { %2347 = shalt.err (!%p2344_p7)
}
 0x16c   : > { %1892 = dma.hbm_to_vmem [thread:$0]  (!%p3464_p6), %s3469_s5, 512, %s3050_s11, [#allocation23], %s3466_s7, %s3466_s7, %s3465_s19  }
 0x16d   : > { %s2627_s3 = smov [#allocation27]   ;;  %s2628_s24 = smov [#allocation28]  }
 0x16e   : > { %s580_s29 = sshll.u32 %s2627_s3, 4  ;;  %s591_s10 = sshll.u32 %s2628_s24, 4  ;;  %s581_s29 = int_to_ptr.vmem [resolvable:$true] %s580_s29  ;;  %s3099_s10 = int_to_ptr.vmem [resolvable:$true] %s591_s10 }
 0x16f   : > { %s3470_s4 = sld [smem:[#allocation62_spill]] }
 0x175   : > { %s2348_s16 = scalar_lea.hbm %s3470_s4, 16 }
 0x176   : > { %p2349_p3 = scmp.ne.s32.totalorder %s3470_s4, %s2348_s16  ;;  %p2355_p10 = scmp.lt.u32.totalorder %s2348_s16, %s3470_s4 }
 0x178   : > { %p2351_p12 = pnand %p2349_p3, %p3463_p8 }
 0x17a   : > { %p2352_p9 = pneg %p2351_p12 }
 0x17c   : > { %p2357_p0 = pnand %p2355_p10, %p2352_p9 }
 0x17e   : > { %2360 = shalt.err (!%p2357_p0)
}
 0x17f   : > { %s2361_s7 = scalar_lea.vmem %s581_s29, 16  ;;  %s2368_s11 = scalar_lea.vmem %s581_s29, 32 }
 0x180   : > { %p2362_p5 = scmp.ne.s32.totalorder %s581_s29, %s2361_s7  ;;  %p2369_p13 = scmp.lt.s32.totalorder %s581_s29, %s581_s29 }
 0x181   : > { %p2370_p2 = scmp.lt.s32.totalorder %s2368_s11, %s2361_s7 }
 0x182   : > { %p2364_p1 = pnand %p2362_p5, %p3463_p8 }
 0x183   : > { %p2371_p4 = por %p2370_p2, %p2369_p13 }
 0x184   : > { %p2365_p11 = pneg %p2364_p1 }
 0x186   : > { %p2372_p7 = pnand %p2371_p4, %p2365_p11 }
 0x188   : > { %2375 = shalt.err (!%p2372_p7)
}
 0x189   : > { %1898 = dma.hbm_to_vmem [thread:$0]  (!%p3464_p6), %s3470_s4, 16, %s581_s29, [#allocation26]  }
 0x18a   : > { %s3471_s24 = sld [smem:[#allocation63_spill]] }
 0x190   : > { %s3472_s1 = smov %s3471_s24  ;;  %s2376_s23 = scalar_lea.hbm %s3471_s24, 16 }
 0x191   : > { %p2377_p3 = scmp.ne.s32.totalorder %s3472_s1, %s2376_s23  ;;  %p2383_p10 = scmp.lt.u32.totalorder %s2376_s23, %s3472_s1 }
 0x193   : > { %p2379_p12 = pnand %p2377_p3, %p3463_p8 }
 0x195   : > { %p2380_p9 = pneg %p2379_p12 }
 0x197   : > { %p2385_p0 = pnand %p2383_p10, %p2380_p9 }
 0x199   : > { %2388 = shalt.err (!%p2385_p0)
}
 0x19a   : > { %s2389_s29 = scalar_lea.vmem %s3099_s10, 16  ;;  %s2396_s11 = scalar_lea.vmem %s3099_s10, 32 }
 0x19b   : > { %p2390_p5 = scmp.ne.s32.totalorder %s3099_s10, %s2389_s29  ;;  %p2397_p13 = scmp.lt.s32.totalorder %s3099_s10, %s3099_s10 }
 0x19c   : > { %p2398_p2 = scmp.lt.s32.totalorder %s2396_s11, %s2389_s29 }
 0x19d   : > { %p2392_p1 = pnand %p2390_p5, %p3463_p8 }
 0x19e   : > { %p2399_p4 = por %p2398_p2, %p2397_p13 }
 0x19f   : > { %p2393_p11 = pneg %p2392_p1 }
 0x1a1   : > { %p2400_p7 = pnand %p2399_p4, %p2393_p11 }
 0x1a3   : > { %2403 = shalt.err (!%p2400_p7)
}
 0x1a4   : > { %1901 = dma.hbm_to_vmem [thread:$0]  (!%p3464_p6), %s3472_s1, 16, %s3099_s10, [#allocation29]  }
 0x1a5   : > { %s3473_s3 = sld [smem:[#allocation48_spill]]  ;;  %s606_s23 = scalar_lea.vmem [#allocation4], %s2953_s12 }
 0x1a6   : > { %s613_s0 = sshll.u32 %s606_s23, 4  ;;  %s603_s16 = scalar_lea.sflag [#allocation5], %s2947_s17  ;;  %s614_s0 = int_to_ptr.vmem [resolvable:$true] %s613_s0 }
 0x1a7   : > { %p3474_p3 = scmp.ne.s32.totalorder %s3461_s9, 0 }
 0x1ab   : > { %s3147_s24 = scalar_lea.hbm %s3473_s3, %s2950_s28  ;;  %s2409_s7 = scalar_lea.hbm %s3473_s3, 256 }
 0x1ac   : > { %s2404_s6 = scalar_lea.hbm %s3147_s24, 128  ;;  %p2410_p6 = scmp.lt.u32.totalorder %s3147_s24, %s3473_s3 }
 0x1ad   : > { %p2405_p8 = scmp.ne.s32.totalorder %s3147_s24, %s2404_s6  ;;  %p2411_p10 = scmp.lt.u32.totalorder %s2409_s7, %s2404_s6 }
 0x1ae   : > { %p2413_p5 = scmp.lt.u32.totalorder %s2404_s6, %s3147_s24 }
 0x1af   : > { %p2407_p12 = pnand %p2405_p8, %p3474_p3  ;;  %p2412_p0 = por %p2411_p10, %p2410_p6 }
 0x1b1   : > { %p2408_p9 = pneg %p2407_p12  ;;  %p2414_p1 = por %p2413_p5, %p2412_p0 }
 0x1b3   : > { %p2415_p11 = pnand %p2414_p1, %p2408_p9 }
 0x1b5   : > { %2418 = shalt.err (!%p2415_p11)
}
 0x1b6   : > { %s2419_s8 = scalar_lea.vmem %s614_s0, 128  ;;  %s2629_s13 = smov [#allocation4]  }
 0x1b7   : > { %p2420_p13 = scmp.ne.s32.totalorder %s614_s0, %s2419_s8  ;;  %s2424_s2 = sshll.u32 %s2629_s13, 4  ;;  %s2425_s2 = int_to_ptr.vmem [resolvable:$false] %s2424_s2 }
 0x1b8   : > { %s2426_s20 = scalar_lea.vmem %s2425_s2, 256  ;;  %p2427_p7 = scmp.lt.s32.totalorder %s614_s0, %s2425_s2 }
 0x1b9   : > { %p2422_p2 = pnand %p2420_p13, %p3474_p3  ;;  %p2428_p8 = scmp.lt.s32.totalorder %s2426_s20, %s2419_s8 }
 0x1bb   : > { %p2423_p4 = pneg %p2422_p2  ;;  %p2429_p12 = por %p2428_p8, %p2427_p7 }
 0x1bd   : > { %p2430_p6 = pnand %p2429_p12, %p2423_p4 }
 0x1bf   : > { %2433 = shalt.err (!%p2430_p6)
}
 0x1c0   : > { %p3475_p10 = scmp.ne.s32.totalorder %s3459_s15, 0  ;;  %s1676_s23 = sshll.u32 %s2608_s25, 4 }
 0x1c1   : > { %s642_s6 = scalar_lea.vmem [#allocation9], %s2947_s17  ;;  %s3476_s29 = sld [smem:[#allocation50_spill]] }
 0x1c2   : > { %1905 = dma.hbm_to_vmem [thread:$0]  (!%p3475_p10), %s3147_s24, 128, %s614_s0, %s603_s16  }
 0x1c3   : > { %s649_s19 = sshll.u32 %s642_s6, 4  ;;  %s650_s19 = int_to_ptr.vmem [resolvable:$true] %s649_s19 }
 0x1c7   : > { %s647_s11 = scalar_lea.hbm %s3476_s29, %s1676_s23  ;;  %s2439_s20 = scalar_lea.hbm %s3476_s29, 32 }
 0x1c8   : > { %s2434_s13 = scalar_lea.hbm %s647_s11, 16  ;;  %p2440_p1 = scmp.lt.u32.totalorder %s647_s11, %s3476_s29 }
 0x1c9   : > { %p2435_p9 = scmp.ne.s32.totalorder %s647_s11, %s2434_s13  ;;  %p2441_p11 = scmp.lt.u32.totalorder %s2439_s20, %s2434_s13 }
 0x1ca   : > { %p2443_p2 = scmp.lt.u32.totalorder %s2434_s13, %s647_s11 }
 0x1cb   : > { %p2437_p0 = pnand %p2435_p9, %p3474_p3  ;;  %p2442_p13 = por %p2441_p11, %p2440_p1 }
 0x1cd   : > { %p2438_p5 = pneg %p2437_p0  ;;  %p2444_p4 = por %p2443_p2, %p2442_p13 }
 0x1cf   : > { %p2445_p7 = pnand %p2444_p4, %p2438_p5 }
 0x1d1   : > { %2448 = shalt.err (!%p2445_p7)
}
 0x1d2   : > { %s2449_s17 = scalar_lea.vmem %s650_s19, 16  ;;  %s2630_s24 = smov [#allocation9]  }
 0x1d3   : > { %p2450_p8 = scmp.ne.s32.totalorder %s650_s19, %s2449_s17  ;;  %s2454_s0 = sshll.u32 %s2630_s24, 4  ;;  %s2455_s0 = int_to_ptr.vmem [resolvable:$false] %s2454_s0 }
 0x1d4   : > { %s2456_s16 = scalar_lea.vmem %s2455_s0, 32  ;;  %p2457_p9 = scmp.lt.s32.totalorder %s650_s19, %s2455_s0 }
 0x1d5   : > { %p2452_p12 = pnand %p2450_p8, %p3474_p3  ;;  %p2458_p0 = scmp.lt.s32.totalorder %s2456_s16, %s2449_s17 }
 0x1d7   : > { %p2453_p6 = pneg %p2452_p12  ;;  %p2459_p10 = por %p2458_p0, %p2457_p9 }
 0x1d9   : > { %p2460_p1 = pnand %p2459_p10, %p2453_p6 }
 0x1db   : > { %2463 = shalt.err (!%p2460_p1)
}
 0x1dc   : > { %p3477_p11 = scmp.ne.s32.totalorder %s3459_s15, 0  ;;  %s3478_s23 = sld [smem:[#allocation51_spill]] }
 0x1dd   : > { %s660_s7 = scalar_lea.vmem [#allocation10], %s2953_s12  ;;  %s3480_s8 = sand.u32 1, %s2612_s26  }
 0x1de   : > { %1911 = dma.hbm_to_vmem [thread:$0]  (!%p3477_p11), %s647_s11, 16, %s650_s19, %s2973_s30  }
 0x1df   : > { %s668_s13 = sshll.u32 %s660_s7, 4  ;;  %s657_s2 = scalar_lea.sflag [#allocation11], %s3480_s8  ;;  %s669_s13 = int_to_ptr.vmem [resolvable:$true] %s668_s13 }
 0x1e2   : > { %s3479_s6 = smov %s3478_s23  ;;  %s3190_s10 = scalar_lea.hbm %s3478_s23, %s2950_s28 }
 0x1e3   : > { %s2464_s20 = scalar_lea.hbm %s3190_s10, 128  ;;  %s2469_s11 = scalar_lea.hbm %s3479_s6, 256 }
 0x1e4   : > { %p2465_p10 = scmp.ne.s32.totalorder %s3190_s10, %s2464_s20  ;;  %p2470_p2 = scmp.lt.u32.totalorder %s3190_s10, %s3479_s6 }
 0x1e5   : > { %p2471_p4 = scmp.lt.u32.totalorder %s2469_s11, %s2464_s20  ;;  %p2473_p8 = scmp.lt.u32.totalorder %s2464_s20, %s3190_s10 }
 0x1e6   : > { %p2467_p5 = pnand %p2465_p10, %p3474_p3 }
 0x1e7   : > { %p2472_p7 = por %p2471_p4, %p2470_p2 }
 0x1e8   : > { %p2468_p13 = pneg %p2467_p5 }
 0x1e9   : > { %p2474_p12 = por %p2473_p8, %p2472_p7 }
 0x1eb   : > { %p2475_p6 = pnand %p2474_p12, %p2468_p13 }
 0x1ed   : > { %2478 = shalt.err (!%p2475_p6)
}
 0x1ee   : > { %s2479_s12 = scalar_lea.vmem %s669_s13, 128  ;;  %s2631_s24 = smov [#allocation10]  }
 0x1ef   : > { %p2480_p9 = scmp.ne.s32.totalorder %s669_s13, %s2479_s12  ;;  %s2484_s0 = sshll.u32 %s2631_s24, 4  ;;  %s2485_s0 = int_to_ptr.vmem [resolvable:$false] %s2484_s0 }
 0x1f0   : > { %s2486_s16 = scalar_lea.vmem %s2485_s0, 256  ;;  %p2487_p10 = scmp.lt.s32.totalorder %s669_s13, %s2485_s0 }
 0x1f1   : > { %p2482_p0 = pnand %p2480_p9, %p3474_p3  ;;  %p2488_p5 = scmp.lt.s32.totalorder %s2486_s16, %s2479_s12 }
 0x1f3   : > { %p2483_p1 = pneg %p2482_p0  ;;  %p2489_p11 = por %p2488_p5, %p2487_p10 }
 0x1f5   : > { %p2490_p2 = pnand %p2489_p11, %p2483_p1 }
 0x1f7   : > { %2493 = shalt.err (!%p2490_p2)
}
 0x1f8   : > { %p3481_p4 = scmp.ne.s32.totalorder %s3459_s15, 0  ;;  %s3482_s1 = sld [smem:[#allocation44_spill]] }
 0x1fa   : > { %1914 = dma.hbm_to_vmem [thread:$0]  (!%p3481_p4), %s3190_s10, 128, %s669_s13, %s657_s2  }
 0x1fe   : > { %p3483_p13 = scmp.ne.s32.totalorder %s3482_s1, 0 }
 0x1ff   : > { %s3215_s9 = sand.u32 (!%p3483_p13), 1, %s2596_s22   ;;  %p3484_p3 = scmp.ne.s32.totalorder (!%p3483_p13), %s3454_s14, 0 }
 0x200   : > { %677 = sbr.rel (%p3483_p13) target bundleno = 2296 (0x8f8), region = 84  ;;  %s3218_s3 = sshll.u32 (!%p3483_p13), %s3215_s9, 3 }
 0x201   : > { %s680_s23 = scalar_lea.sflag (!%p3483_p13), [#allocation5], %s3215_s9  ;;  %s683_s7 = scalar_lea.vmem (!%p3483_p13), [#allocation4], %s3218_s3 }
 0x207   : > { %2547 = dma.done.wait (%p3484_p3), %s680_s23, 128  }
 0x208   : > { %2549 = vsyncadd (%p3484_p3), %s680_s23, 4294967168  ;;  %s688_s15 = sand.u32 1, %s2758_s27   ;;  %s692_s13 = scalar_lea.vmem [#allocation7], %s3218_s3 }
 0x209   : > { %s689_s10 = scalar_lea.sflag [#allocation8], %s688_s15 }
 0x20a   : > { %2551 = dma.done.wait (%p3484_p3), %s689_s10, 144  }
 0x20b   : > { %2553 = vsyncadd (%p3484_p3), %s689_s10, 4294967152  ;;  %s700_s8 = scalar_lea.vmem [#allocation9], %s3215_s9  ;;  %s706_s2 = scalar_lea.sflag [#allocation11], %s688_s15 }
 0x20c   : > { %s709_s20 = scalar_lea.vmem [#allocation10], %s3218_s3 }
 0x20d   : > { %2555 = dma.done.wait (%p3484_p3), %s706_s2, 128  }
 0x20e   : > { %2557 = vsyncadd (%p3484_p3), %s706_s2, 4294967168  ;;  %p3485_p11 = scmp.eq.s32.totalorder %s2758_s27, 0 }
 0x210   : > { %2559 = dma.done.wait (%p3485_p11), [#allocation11], 256   ;;  %p3486_p7 = pmov %p3485_p11 }
 0x212   : > { %2561 = vsyncadd (%p3486_p7), [#allocation11], 4294967040  ;;  %p3487_p8 = pmov %p3486_p7 }
 0x213   : > { %p3488_p12 = pmov %p3486_p7 }
 0x214   : > { %2563 = dma.done.wait (%p3487_p8), [#allocation14], 272  }
 0x215   : > { %2565 = vsyncadd (%p3488_p12), [#allocation14], 4294967024  ;;  %p3489_p6 = pmov %p3486_p7 }
 0x217   : > { %2567 = dma.done.wait (%p3489_p6), [#allocation17], 32   ;;  %p3490_p9 = pmov %p3489_p6 }
 0x218   : > { %p3491_p0 = pmov %p3489_p6 }
 0x219   : > { %2569 = vsyncadd (%p3490_p9), [#allocation17], 4294967264 }
 0x21a   : > { %2571 = dma.done.wait (%p3491_p0), [#allocation20], 272   ;;  %p3492_p1 = pmov %p3491_p0 }
 0x21b   : > { %p3493_p10 = pmov %p3491_p0 }
 0x21c   : > { %2573 = vsyncadd (%p3492_p1), [#allocation20], 4294967024 }
 0x21d   : > { %2575 = dma.done.wait (%p3493_p10), [#allocation23], 528   ;;  %p3494_p5 = pmov %p3491_p0 }
 0x21e   : > { %p3495_p2 = pmov %p3491_p0 }
 0x21f   : > { %2577 = vsyncadd (%p3494_p5), [#allocation23], 4294966768 }
 0x220   : > { %2579 = dma.done.wait (%p3495_p2), [#allocation26], 32   ;;  %p3496_p4 = pmov %p3491_p0 }
 0x221   : > { %p3497_p13 = pmov %p3491_p0 }
 0x222   : > { %2581 = vsyncadd (%p3496_p4), [#allocation26], 4294967264 }
 0x223   : > { %2583 = dma.done.wait (%p3497_p13), [#allocation29], 16   ;;  %p3498_p3 = pmov %p3491_p0 }
 0x224   : > { %v2632_v0 = vmov 0.0   ;;  %vm2633_vm0 = vmmov 0   ;;  %v2018_v1 = vld [vmem:[#allocation12] sm:$0xff]   ;;  %v2019_v2 = vld [vmem:[#allocation12 + $0x8] sm:$0xff]   ;;  %vm850_vm1 = vcmask 261120   ;;  %vm895_vm2 = vcmask 781312  }
 0x225   : > { %2585 = vsyncadd (%p3498_p3), [#allocation29], 4294967280  ;;  %1747 = vmatprep.subr.bf16.mxu0 %v2632_v0  ;;  %1751 = vmatprep.mubr.msk.bf16.mxu0 %vm2633_vm0, %v2632_v0  ;;  %v825_v3 = vld [vmem:[%s683_s7] sm:$0xff]  ;;  %s2634_s27 = smov 96   ;;  %s2635_s14 = smov 112   ;;  %vm916_vm3 = vcmask 130048  }
 0x226   : > { %1755 = vmatprep.subr.bf16.mxu1 %v2632_v0  ;;  %1757 = vmatprep.mubr.msk.bf16.mxu1 %vm2633_vm0, %v2632_v0  ;;  %v826_v4 = vpack.c.bf16 %v825_v3, %v825_v3  ;;  %v1696_v5 = vld [vmem:[#allocation13] ss:$0 sm:$0xff]  ;;  %s2636_s30 = smov 80   ;;  %v1700_v20 = vld [vmem:[%s700_s8] ss:$0 sm:$0xff]  ;;  %vm963_vm4 = vcmask 64512  }
 0x227   : > { %1748 = vmatpush3.bf16.msra.mxu0 %v2018_v1  ;;  %s2637_s19 = smov 48   ;;  %s2638_s11 = smov 64   ;;  %vm982_vm5 = vcmask 1043456   ;;  %v2022_v54 = vld [vmem:[#allocation15] sm:$0xff]   ;;  %v2023_v57 = vld [vmem:[#allocation15 + $0x8] sm:$0xff]   ;;  %vm1148_vm6 = vcmask 257024  }
 0x228   : > { %1749 = vmatprep.subr.bf16.mxu0 %v2632_v0  ;;  %s2639_s28 = smov 16   ;;  %s3499_s17 = sld [smem:[#allocation43_spill]]  ;;  %vm1328_vm7 = vcmask 523264  }
 0x229   : > { %s819_s24 = scalar_lea.vmem [#allocation30], %s3218_s3  ;;  %s3500_s23 = sld [smem:[#allocation64_spill]] }
 0x22a   : > { %s1396_s0 = sshll.u32 %s819_s24, 4  ;;  %s1382_s10 = scalar_lea.sflag [#allocation6], %s3215_s9  ;;  %s3325_s0 = int_to_ptr.vmem [resolvable:$true] %s1396_s0 }
 0x22b   : > { %1750 = vmatpush3.bf16.msra.mxu0 %v2019_v2  ;;  %p3502_p7 = scmp.ne.s32.totalorder %s3455_s18, 0  ;;  %s2641_s3 = smov [#allocation30]  }
 0x22c   : > { %1761 = vmatprep.subr.bf16.mxu0 %v2632_v0  ;;  %s2498_s8 = sshll.u32 %s2641_s3, 4  ;;  %s2499_s8 = int_to_ptr.vmem [resolvable:$false] %s2498_s8 }
 0x22d   : > { %s2500_s2 = scalar_lea.vmem %s2499_s8, 256  ;;  %p2501_p6 = scmp.lt.s32.totalorder %s3325_s0, %s2499_s8 }
 0x22e   : > { %1752 = vmatmul.mubr.msk.bf16.vlgmr.msra.gmra.mrb[0].mxu0 %vm850_vm1, %v826_v4  ;;  %s1722_s12 = sshll.u32 %s3499_s17, 7 }
 0x22f   : > { %1763 = vmatprep.mubr.msk.bf16.mxu0 %vm2633_vm0, %v2632_v0  ;;  %s3501_s7 = smov %s3500_s23  ;;  %s3323_s15 = scalar_lea.hbm %s3500_s23, %s1722_s12 }
 0x301   : > { %v888_v6 = vpop.f32.mrb[0].mxu0 }
 0x302   : > { %v889_v7 = vadd.f32 %v1696_v5, %v888_v6  ;;  %v1753_v8 = vpop.f32.mrb[1].mxu0 }
 0x303   : > { %v891_v9 = vpop.f32.mrb[2].mxu0  ;;  %v2024_v8 = vld [vmem:[#allocation21] sm:$0xff]  }
 0x304   : > { %v894_v10 = vpack.c.bf16 %v889_v7, %v889_v7  ;;  %v1754_v11 = vpop.f32.mrb[3].mxu0  ;;  %v2025_v9 = vld [vmem:[#allocation21 + $0x8] sm:$0xff]  }
 0x305   : > { %v2027_v11 = vld [vmem:[#allocation24 + $0x8] sm:$0xff]  }
 0x306   : > { %896 = vst.msk [vmem:[#allocation2] sm:$0xf] %vm895_vm2, %v894_v10  ;;  %v2026_v10 = vld [vmem:[#allocation24] sm:$0xff]  }
 0x30d   : > { %v2020_v12 = vld [vmem:[#allocation2] ss:$0 sps:$4 sm:$0xff]  }
 0x30e   : > { %v903_v13 = vld [vmem:[#allocation2] sm:$0xf]  ;;  %914 = vrot.lane.b32.xlu0 %v2020_v12, %s2634_s27 }
 0x30f   : > { %v1704_v14 = vcombine.low %v903_v13, %v903_v13 }
 0x311   : > { %1030 = vrot.lane.b32.xlu1 %v1704_v14, %s2635_s14  ;;  %v1218_v14 = vld [vmem:[%s692_s13] sm:$0xff]  ;;  %s2494_s13 = scalar_lea.vmem %s3325_s0, 128 }
 0x312   : > { %1032 = vrot.lane.b32.xlu0 %v2020_v12, %s2636_s30  ;;  %p2495_p11 = scmp.ne.s32.totalorder %s3325_s0, %s2494_s13  ;;  %p2502_p9 = scmp.lt.s32.totalorder %s2500_s2, %s2494_s13 }
 0x314   : > { %p2496_p8 = pnand %p2495_p11, %p3502_p7  ;;  %p2503_p0 = por %p2502_p9, %p2501_p6 }
 0x316   : > { %p2497_p12 = pneg %p2496_p8 }
 0x318   : > { %p2504_p1 = pnand %p2503_p0, %p2497_p12 }
 0x380   : > { %v915_v15 = vpop.permute.xlu0 %914 }
 0x381   : > { %v921_v16 = vsel %vm916_vm3, %v915_v15, 0 }
 0x382   : > { %1756 = vmatpush3.bf16.xpose.msra.mxu1 %v921_v16 }
 0x383   : > { %1767 = vmatprep.subr.bf16.mxu1 %v2632_v0  ;;  %v1031_v19 = vpop.permute.xlu1 %1030 }
 0x384   : > { %v1033_v17 = vpop.permute.xlu0 %1032 }
 0x385   : > { %v1038_v18 = vsel %vm916_vm3, %v1033_v17, 0 }
 0x389   : > { %1758 = vmatmul.mubr.msk.bf16.vlgmr.msra.gmra.mrb[0].mxu1 %vm916_vm3, %v903_v13 }
 0x38a   : > { %1768 = vmatpush3.bf16.xpose.msra.mxu1 %v1038_v18  ;;  %1769 = vmatprep.mubr.msk.bf16.mxu1 %vm2633_vm0, %v2632_v0 }
 0x38b   : > { %1779 = vmatprep.subr.bf16.mxu1 %v2632_v0 }
 0x391   : > { %1770 = vmatmul.mubr.msk.bf16.vlgmr.msra.gmra.mrb[4].mxu1 %vm916_vm3, %v1031_v19 }
 0x392   : > { %1783 = vmatprep.mubr.msk.bf16.mxu1 %vm2633_vm0, %v2632_v0  ;;  %1780 = vmatpush3.bf16.msra.mxu1 %v2022_v54 }
 0x393   : > { %1781 = vmatprep.subr.bf16.mxu1 %v2632_v0 }
 0x396   : > { %1782 = vmatpush3.bf16.msra.mxu1 %v2023_v57 }
 0x397   : > { %1795 = vmatprep.subr.bf16.mxu1 %v2632_v0 }
 0x45c   : > { %v957_v21 = vpop.f32.mrb[0].mxu1 }
 0x45d   : > { %v958_v22 = vadd.f32 %v1700_v20, %v957_v21  ;;  %v1759_v23 = vpop.f32.mrb[1].mxu1  ;;  %v2028_v21 = vld [vmem:[#allocation24 + $0x10] sm:$0xff]  }
 0x45e   : > { %v960_v24 = vpop.f32.mrb[2].mxu1  ;;  %v1373_v23 = vld [vmem:[%s709_s20] sm:$0xff] }
 0x45f   : > { %v1760_v25 = vpop.f32.mrb[3].mxu1  ;;  %v964_v26 = vsel %vm963_vm4, %v958_v22, -inf  ;;  %v2640_v24 = vmov 0  }
 0x460   : > { %965 = vmax.xlane.f32.xlu1 %v964_v26  ;;  %2017 = vset.pattern.permute.xlu0 %v2640_v24  ;;  %v1711_v25 = vld [vmem:[#allocation22] ss:$0 sm:$0xff] }
 0x461   : > { %2016 = vset.pattern.permute.xlu1 %v2640_v24 }
 0x464   : > { %v1074_v27 = vpop.f32.mrb[4].mxu1 }
 0x465   : > { %v1075_v28 = vadd.f32 %v1700_v20, %v1074_v27  ;;  %v1771_v29 = vpop.f32.mrb[5].mxu1 }
 0x466   : > { %v1077_v30 = vpop.f32.mrb[6].mxu1 }
 0x467   : > { %v1772_v31 = vpop.f32.mrb[7].mxu1  ;;  %v1080_v32 = vsel %vm963_vm4, %v1075_v28, -inf }
 0x468   : > { %1081 = vmax.xlane.f32.xlu0 %v1080_v32 }
 0x471   : > { %1093 = vrot.lane.b32.xlu1 %v2020_v12, %s2637_s19 }
 0x47e   : > { %977 = vrot.lane.b32.xlu0 %v2020_v12, %s2638_s11  ;;  %v1707_v12 = vld [vmem:[#allocation16] ss:$0 sm:$0xff] }
 0x4ed   : > { %v966_v33 = vpop.xlane.xlu1 %965 }
 0x4ee   : > { %v967_v34 = vsub.f32 %v958_v22, %v966_v33  ;;  %v2029_v22 = vld [vmem:[#allocation24 + $0x18] sm:$0xff]  }
 0x4f0   : > { %v968_v35 = vpack.c.bf16 %v967_v34, %v967_v34 }
 0x4f1   : > { %v1094_v43 = vpop.permute.xlu1 %1093 }
 0x4f2   : > { %v970_v36 = vmul.bf16 1069105081, %v968_v35  ;;  %v1099_v45 = vsel %vm982_vm5, %v1094_v43, 0 }
 0x4f4   : > { %2030 = vpow.bf16 %v970_v36 }
 0x4f5   : > { %v1082_v37 = vpop.xlane.xlu0 %1081 }
 0x4f6   : > { %v1083_v38 = vsub.f32 %v1075_v28, %v1082_v37 }
 0x4f8   : > { %v1084_v39 = vpack.c.bf16 %v1083_v38, %v1083_v38 }
 0x4f9   : > { %v978_v40 = vpop.permute.xlu0 %977 }
 0x4fa   : > { %v1086_v41 = vmul.bf16 1069105081, %v1084_v39  ;;  %v984_v42 = vsel %vm982_vm5, %v978_v40, 0 }
 0x4fb   : > { %1762 = vmatpush3.bf16.msra.mxu0 %v984_v42 }
 0x4fc   : > { %2032 = vpow.bf16 %v1086_v41  ;;  %1773 = vmatprep.subr.bf16.mxu0 %v2632_v0 }
 0x4ff   : > { %v2031_v44 = vpop.eup %2030 }
 0x500   : > { %1764 = vmatmul.mubr.msk.bf16.vlgmr.msra.gmra.mrb[4].mxu0 %vm963_vm4, %v2031_v44  ;;  %v972_v46 = vunpack.c.l.bf16 %v2031_v44 }
 0x501   : > { %1774 = vmatpush3.bf16.msra.mxu0 %v1099_v45  ;;  %1775 = vmatprep.mubr.msk.bf16.mxu0 %vm2633_vm0, %v2632_v0 }
 0x502   : > { %v973_v47 = vsel %vm963_vm4, %v972_v46, 0.0  ;;  %1787 = vmatprep.subr.bf16.mxu0 %v2632_v0 }
 0x503   : > { %974 = vadd.xlane.f32.xlu0 %v973_v47 }
 0x507   : > { %v2033_v48 = vpop.eup %2032 }
 0x508   : > { %1776 = vmatmul.mubr.msk.bf16.vlgmr.msra.gmra.mrb[8].mxu0 %vm963_vm4, %v2033_v48  ;;  %v1088_v49 = vunpack.c.l.bf16 %v2033_v48 }
 0x509   : > { %1791 = vmatprep.mubr.msk.bf16.mxu0 %vm2633_vm0, %v2632_v0  ;;  %1788 = vmatpush3.bf16.msra.mxu0 %v2024_v8 }
 0x50a   : > { %v1089_v50 = vsel %vm963_vm4, %v1088_v49, 0.0  ;;  %1789 = vmatprep.subr.bf16.mxu0 %v2632_v0 }
 0x50b   : > { %1090 = vadd.xlane.f32.xlu1 %v1089_v50 }
 0x50d   : > { %1790 = vmatpush3.bf16.msra.mxu0 %v2025_v9 }
 0x51c   : > { %1376 = vperm.xlu1 %2016, %v1373_v23  }
 0x590   : > { %v975_v1 = vpop.xlane.xlu0 %974 }
 0x598   : > { %v1091_v51 = vpop.xlane.xlu1 %1090 }
 0x599   : > { %2034 = vrcp.f32 %v1091_v51 }
 0x59a   : > { %2036 = vrcp.f32 %v975_v1 }
 0x59c   : > { %v1377_v37 = vpop.permute.xlu1 %1376 }
 0x5a3   : > { %v2035_v58 = vpop.eup %2034 }
 0x5a4   : > { %v2037_v2 = vpop.eup %2036 }
 0x5d3   : > { %v1020_v52 = vpop.f32.mrb[4].mxu0 }
 0x5d4   : > { %v1765_v53 = vpop.f32.mrb[5].mxu0  ;;  %v1026_v3 = vmul.f32 %v2037_v2, %v1020_v52 }
 0x5d5   : > { %v1023_v55 = vpop.f32.mrb[6].mxu0 }
 0x5d6   : > { %v1766_v56 = vpop.f32.mrb[7].mxu0 }
 0x5db   : > { %v1135_v59 = vpop.f32.mrb[8].mxu0 }
 0x5dc   : > { %v1141_v60 = vmul.f32 %v2035_v58, %v1135_v59  ;;  %v1777_v61 = vpop.f32.mrb[9].mxu0 }
 0x5dd   : > { %v1138_v62 = vpop.f32.mrb[10].mxu0 }
 0x5de   : > { %1143 = vrot.lane.b32.xlu0 %v1141_v60, %s2639_s28  ;;  %v1778_v63 = vpop.f32.mrb[11].mxu0 }
 0x650   : > { %v1144_v4 = vpop.permute.xlu0 %1143 }
 0x651   : > { %v1146_v5 = vsel %vm916_vm3, %v1026_v3, %v1144_v4 }
 0x652   : > { %v1147_v6 = vpack.c.bf16 %v1146_v5, %v1146_v5 }
 0x654   : > { %1149 = vst.msk [vmem:[#allocation3] sm:$0xf] %vm1148_vm6, %v1147_v6 }
 0x65b   : > { %v1150_v7 = vld [vmem:[#allocation3] sm:$0xf] }
 0x65c   : > { %1784 = vmatmul.mubr.msk.bf16.vlgmr.msra.gmra.mrb[8].mxu1 %vm850_vm1, %v1150_v7 }
 0x65d   : > { %1803 = vmatprep.mubr.msk.bf16.mxu1 %vm2633_vm0, %v2632_v0  ;;  %1796 = vmatpush3.bf16.msra.mxu1 %v2026_v10 }
 0x65e   : > { %1797 = vmatprep.subr.bf16.mxu1 %v2632_v0 }
 0x661   : > { %1798 = vmatpush3.bf16.msra.mxu1 %v2027_v11 }
 0x662   : > { %1799 = vmatprep.subr.bf16.mxu1 %v2632_v0 }
 0x665   : > { %1800 = vmatpush3.bf16.msra.mxu1 %v2028_v21 }
 0x666   : > { %1801 = vmatprep.subr.bf16.mxu1 %v2632_v0  ;;  %v1715_v0 = vld [vmem:[#allocation25] ss:$0 sm:$0xff] }
 0x669   : > { %1802 = vmatpush3.bf16.msra.mxu1 %v2029_v22 }
 0x72f   : > { %v1212_v13 = vpop.f32.mrb[8].mxu1 }
 0x730   : > { %v1213_v15 = vadd.f32 %v1707_v12, %v1212_v13  ;;  %v1785_v16 = vpop.f32.mrb[9].mxu1 }
 0x731   : > { %v1215_v17 = vpop.f32.mrb[10].mxu1 }
 0x732   : > { %v1219_v18 = vadd.f32 %v1218_v14, %v1213_v15  ;;  %v1786_v19 = vpop.f32.mrb[11].mxu1 }
 0x734   : > { %v1220_v20 = vpack.c.bf16 %v1219_v18, %v1219_v18 }
 0x736   : > { %1792 = vmatmul.mubr.msk.bf16.vlgmr.msra.gmra.mrb[12].mxu0 %vm850_vm1, %v1220_v20 }
 0x809   : > { %v1281_v26 = vpop.f32.mrb[12].mxu0 }
 0x80a   : > { %v1282_v27 = vadd.f32 %v1711_v25, %v1281_v26  ;;  %v1793_v28 = vpop.f32.mrb[13].mxu0 }
 0x80b   : > { %v1284_v29 = vpop.f32.mrb[14].mxu0 }
 0x80c   : > { %v1287_v30 = vmax.f32 %v1282_v27, 0.0  ;;  %v1794_v31 = vpop.f32.mrb[15].mxu0 }
 0x80e   : > { %v1288_v32 = vpack.c.bf16 %v1287_v30, %v1287_v30 }
 0x810   : > { %1804 = vmatmul.mubr.msk.bf16.vlgmr.msra.gmra.mrb[12].mxu1 %vm1328_vm7, %v1288_v32 }
 0x8e3   : > { %v1366_v33 = vpop.f32.mrb[12].mxu1 }
 0x8e4   : > { %v1367_v34 = vadd.f32 %v1715_v0, %v1366_v33  ;;  %v1805_v35 = vpop.f32.mrb[13].mxu1 }
 0x8e5   : > { %v1369_v36 = vpop.f32.mrb[14].mxu1 }
 0x8e6   : > { %v1806_v38 = vpop.f32.mrb[15].mxu1  ;;  %v1372_v39 = vadd.f32 %v1367_v34, %v1219_v18 }
 0x8e8   : > { %v1379_v40 = vmul.f32 %v1377_v37, %v1372_v39 }
 0x8ea   : > { %1380 = vst.msk [vmem:[%s819_s24] sm:$0xff] %vm850_vm1, %v1379_v40 }
 0x8eb   : > { %2507 = shalt.err (!%p2504_p1)
}
 0x8ec   : > { %s2508_s9 = scalar_lea.hbm %s3323_s15, 128  ;;  %s2512_s14 = scalar_lea.hbm %s3501_s7, 256 }
 0x8ed   : > { %p2509_p10 = scmp.ne.s32.totalorder %s3323_s15, %s2508_s9  ;;  %p2513_p4 = scmp.lt.u32.totalorder %s3323_s15, %s3501_s7 }
 0x8ee   : > { %p2514_p13 = scmp.lt.u32.totalorder %s2512_s14, %s2508_s9  ;;  %p2516_p11 = scmp.lt.u32.totalorder %s2508_s9, %s3323_s15 }
 0x8ef   : > { %p2510_p5 = pnand %p2509_p10, %p3502_p7 }
 0x8f0   : > { %p2515_p3 = por %p2514_p13, %p2513_p4 }
 0x8f1   : > { %p2511_p2 = pneg %p2510_p5 }
 0x8f2   : > { %p2517_p8 = por %p2516_p11, %p2515_p3 }
 0x8f4   : > { %p2518_p12 = pnand %p2517_p8, %p2511_p2 }
 0x8f6   : > { %2521 = shalt.err (!%p2518_p12)
}
 0x8f7   : > { %1863 = dma.vmem_to_hbm [thread:$0]  (%p3502_p7), %s3325_s0, 128, %s3323_s15, %s1382_s10  }
 0x8f8 PF: > { %s3503_s11 = sld [smem:[#allocation47_spill]]  ;;  %s1408_s28 = sand.u32 1, %s2592_s21  }
 0x8f9   : > { %p3505_p9 = scmp.ge.s32.totalorder %s2612_s26, 2  ;;  %s1409_s17 = scalar_lea.sflag [#allocation6], %s1408_s28 }
 0x8fe   : > { %p3504_p6 = scmp.ne.s32.totalorder %s3503_s11, 0 }
 0x900   : > { %p1916_p0 = pnand %p3505_p9, %p3504_p6 }
 0x902   : > { %2587 = dma.done.wait (!%p1916_p0), %s1409_s17, 128  }
 0x903   : > { %2589 = vsyncadd (!%p1916_p0), %s1409_s17, 4294967168  ;;  %s44_s26 = sadd.s32 1, %s2612_s26   ;;  %s3506_s12 = sld [smem:[#allocation42_spill]] }
 0x904   : > { %p41_p1 = scmp.ge.s32.totalorder %s44_s26, 4   ;;  %s3507_s23 = sld [smem:[#allocation46_spill]] }
 0x905   : > { %s3508_s18 = sld [smem:[#allocation45_spill]]  ;;  %s3509_s21 = smov %s2596_s22 }
 0x906   : > { %s3511_s24 = smov %s2608_s25  ;;  %43 = sbr.rel (!%p41_p1) target bundleno = 34 (0x22), region = 219 }
 0x909   : > { %s3510_s22 = smov %s3506_s12 }
 0x90b   : > { %s3512_s25 = smov %s3508_s18 }
 0x90d   :  { %1414 = vsyncpa [#allocation5], 1 }
 0x90e   :  { %1416 = vsyncpa [#allocation5 + $0x1], 1 }
 0x90f   :  { %1417 = vsyncpa [#allocation8], 1 }
 0x910   :  { %1419 = vsyncpa [#allocation8 + $0x1], 1 }
 0x911   :  { %1420 = vsyncpa [#allocation11], 1 }
 0x912   :  { %1422 = vsyncpa [#allocation11 + $0x1], 1 }
 0x913   :  { %1423 = vsyncpa [#allocation14], 1 }
 0x914   :  { %1424 = vsyncpa [#allocation17], 1 }
 0x915   :  { %1425 = vsyncpa [#allocation20], 1 }
 0x916   :  { %1426 = vsyncpa [#allocation23], 1 }
 0x917   :  { %1427 = vsyncpa [#allocation26], 1 }
 0x918   :  { %1428 = vsyncpa [#allocation29], 1 }
 0x919   :  { %1429 = vsyncpa [#allocation6], 1 }
 0x91a   :  { %1431 = vsyncpa [#allocation6 + $0x1], 1 }

// kernel: tpu_custom_call.1
= control target key start
LH: loop header
LB: loop body
LE: loop exit
PB: predicated region body
PF: predicated region fallthrough
CT: control target
= control target key end

     0   :  { %s3373_s0 = inlined_call_operand.hbm [shape: f32[2,8,32], index: 0, kind: input, shape index: {}]   ;;  %s3374_s1 = inlined_call_operand.hbm [shape: f32[2,8,32], index: 1, kind: input, shape index: {}]   ;;  %s3375_s2 = inlined_call_operand.hbm [shape: f32[2,1,8], index: 2, kind: input, shape index: {}]   ;;  %s3376_s3 = inlined_call_operand.hbm [shape: f32[2,8,1], index: 3, kind: input, shape index: {}]   ;;  %s3377_s4 = inlined_call_operand.hbm [shape: bf16[32,96], index: 4, kind: input, shape index: {}]   ;;  %s3378_s5 = inlined_call_operand.hbm [shape: f32[1,96], index: 5, kind: input, shape index: {}]   ;;  %s3379_s6 = inlined_call_operand.hbm [shape: bf16[32,32], index: 6, kind: input, shape index: {}]   ;;  %s3380_s7 = inlined_call_operand.hbm [shape: f32[1,32], index: 7, kind: input, shape index: {}]   ;;  %s3381_s8 = inlined_call_operand.hbm [shape: f32[1,32], index: 8, kind: input, shape index: {}]   ;;  %s3382_s9 = inlined_call_operand.hbm [shape: f32[1,32], index: 9, kind: input, shape index: {}]   ;;  %s3383_s10 = inlined_call_operand.hbm [shape: bf16[1,32,64], index: 10, kind: input, shape index: {}]   ;;  %s3384_s11 = inlined_call_operand.hbm [shape: f32[1,1,64], index: 11, kind: input, shape index: {}]   ;;  %s3385_s12 = inlined_call_operand.hbm [shape: bf16[1,64,32], index: 12, kind: input, shape index: {}]   ;;  %s3386_s13 = inlined_call_operand.hbm [shape: f32[1,32], index: 13, kind: input, shape index: {}]   ;;  %s3387_s14 = inlined_call_operand.hbm [shape: f32[1,32], index: 14, kind: input, shape index: {}]   ;;  %s3388_s15 = inlined_call_operand.hbm [shape: f32[1,32], index: 15, kind: input, shape index: {}]   ;;  %s3389_s16 = inlined_call_operand.hbm [shape: f32[2,8,32], index: 16, kind: output, shape index: {}]  }
   0x1   :  { %3422 = sst [smem:[#allocation48_spill]] %s3373_s0 }
   0x2   :  { %3423 = sst [smem:[#allocation49_spill]] %s3374_s1 }
   0x3   :  { %3424 = sst [smem:[#allocation50_spill]] %s3375_s2 }
   0x4   :  { %3425 = sst [smem:[#allocation51_spill]] %s3376_s3 }
   0x5   :  { %3426 = sst [smem:[#allocation52_spill]] %s3377_s4 }
   0x6   :  { %3427 = sst [smem:[#allocation53_spill]] %s3378_s5 }
   0x7   :  { %3428 = sst [smem:[#allocation54_spill]] %s3379_s6 }
   0x8   :  { %3429 = sst [smem:[#allocation55_spill]] %s3380_s7 }
   0x9   :  { %3430 = sst [smem:[#allocation56_spill]] %s3381_s8 }
   0xa   :  { %3431 = sst [smem:[#allocation57_spill]] %s3382_s9 }
   0xb   :  { %3432 = sst [smem:[#allocation58_spill]] %s3383_s10 }
   0xc   :  { %3433 = sst [smem:[#allocation59_spill]] %s3384_s11 }
   0xd   :  { %3434 = sst [smem:[#allocation60_spill]] %s3385_s12 }
   0xe   :  { %3435 = sst [smem:[#allocation61_spill]] %s3386_s13 }
   0xf   :  { %3436 = sst [smem:[#allocation62_spill]] %s3387_s14 }
  0x10   :  { %3437 = sst [smem:[#allocation63_spill]] %s3388_s15 }
  0x11   :  { %3438 = sst [smem:[#allocation64_spill]] %s3389_s16 }
  0x12   :  { %21 = vsyncpa [#allocation5], 0 }
  0x13   :  { %23 = vsyncpa [#allocation5 + $0x1], 0 }
  0x14   :  { %24 = vsyncpa [#allocation8], 0 }
  0x15   :  { %26 = vsyncpa [#allocation8 + $0x1], 0 }
  0x16   :  { %27 = vsyncpa [#allocation11], 0 }
  0x17   :  { %29 = vsyncpa [#allocation11 + $0x1], 0 }
  0x18   :  { %30 = vsyncpa [#allocation14], 0 }
  0x19   :  { %31 = vsyncpa [#allocation17], 0 }
  0x1a   :  { %32 = vsyncpa [#allocation20], 0 }
  0x1b   :  { %33 = vsyncpa [#allocation23], 0 }
  0x1c   :  { %34 = vsyncpa [#allocation26], 0 }
  0x1d   :  { %35 = vsyncpa [#allocation29], 0 }
  0x1e   :  { %36 = vsyncpa [#allocation6], 0 }
  0x1f   :  { %38 = vsyncpa [#allocation6 + $0x1], 0  ;;  %s2727_s21 = smov 0   ;;  %s2729_s22 = smov 0  }
  0x20   :  { %s2731_s23 = smov 0   ;;  %s2733_s24 = smov 0  }
  0x21   :  { %s2735_s25 = smov 0   ;;  %s2737_s26 = smov 0  }
  0x22 LB: > { %3439 = sst [smem:[#allocation42_spill]] %s2600_s23  ;;  %s2758_s27 = sadd.s32 4294967295, %s2612_s26   ;;  %s2612_s26 = sphi %s2737_s26, %s44_s26   ;;  %s2608_s25 = sphi %s2735_s25, %s3512_s25   ;;  %s2604_s24 = sphi %s2733_s24, %s3511_s24   ;;  %s2600_s23 = sphi %s2731_s23, %s3507_s23   ;;  %s2596_s22 = sphi %s2729_s22, %s3510_s22   ;;  %s2592_s21 = sphi %s2727_s21, %s3509_s21  }
  0x23   : > { %3440 = sst [smem:[#allocation43_spill]] %s2604_s24  ;;  %p1658_p0 = scmp.ge.s32.totalorder %s2612_s26, 1 }
  0x24   : > { %p3399_p1 = scmp.eq.s32.totalorder %s2758_s27, 0  ;;  %p449_p2 = scmp.lt.s32.totalorder %s2612_s26, 3 }
  0x25   : > { %s2614_s29 = smov [#allocation12]   ;;  %s2615_s17 = smov [#allocation13]  }
  0x26   : > { %p2763_p3 = pnand %p1658_p0, %p449_p2  ;;  %s461_s30 = sshll.u32 %s2614_s29, 4  ;;  %s2767_s30 = int_to_ptr.vmem [resolvable:$true] %s461_s30 }
  0x27   : > { %s475_s18 = sshll.u32 %s2615_s17, 4  ;;  %s2616_s19 = smov [#allocation16]   ;;  %s2778_s18 = int_to_ptr.vmem [resolvable:$true] %s475_s18 }
  0x28   : > { %s3441_s28 = scalar_select %p2763_p3, 1, 0 }
  0x29   : > { %p1865_p4 = pneg %p2763_p3  ;;  %s2780_s20 = sshll.u32 %s2616_s19, 4  ;;  %s500_s20 = int_to_ptr.vmem [resolvable:$true] %s2780_s20 }
  0x2a   : > { %3442 = sst [smem:[#allocation44_spill]] %s3441_s28  ;;  %s3444_s4 = sld [smem:[#allocation52_spill]] }
  0x2b   : > { %p2774_p6 = pnand %p1865_p4, %p3399_p1 }
  0x2d   : > { %s3443_s0 = scalar_select %p2774_p6, 1, 0 }
  0x2e   : > { %p2790_p8 = pneg %p2774_p6 }
  0x30   : > { %s2038_s24 = scalar_lea.hbm %s3444_s4, 256 }
  0x31   : > { %p2039_p7 = scmp.ne.s32.totalorder %s3444_s4, %s2038_s24  ;;  %p2045_p11 = scmp.lt.u32.totalorder %s2038_s24, %s3444_s4 }
  0x32   : > { %s3445_s2 = scalar_select %p2790_p8, 1, 0 }
  0x33   : > { %p2041_p9 = pnand %p2790_p8, %p2039_p7 }
  0x35   : > { %p2042_p10 = pneg %p2041_p9 }
  0x37   : > { %p2047_p12 = pnand %p2045_p11, %p2042_p10 }
  0x39   : > { %2050 = shalt.err (!%p2047_p12)
}
  0x3a   : > { %s2051_s3 = scalar_lea.vmem %s2767_s30, 256  ;;  %p2059_p4 = scmp.lt.s32.totalorder %s2767_s30, %s2767_s30 }
  0x3b   : > { %p2052_p13 = scmp.ne.s32.totalorder %s2767_s30, %s2051_s3  ;;  %p2060_p5 = scmp.lt.s32.totalorder %s2051_s3, %s2051_s3 }
  0x3d   : > { %p2054_p0 = pnand %p2052_p13, %p2790_p8  ;;  %p2061_p7 = por %p2060_p5, %p2059_p4 }
  0x3f   : > { %p2055_p2 = pneg %p2054_p0 }
  0x41   : > { %p2062_p9 = pnand %p2061_p7, %p2055_p2 }
  0x43   : > { %2065 = shalt.err (!%p2062_p9)
}
  0x44   : > { %s3401_s16 = smov 64   ;;  %s3403_s24 = smov 4  }
  0x45   : > { %1868 = dma.hbm_to_vmem [thread:$0]  (!%p2774_p6), %s3444_s4, 256, %s2767_s30, [#allocation11], %s3401_s16, %s3401_s16, %s3403_s24  }
  0x46   : > { %s3446_s5 = sld [smem:[#allocation53_spill]] }
  0x4c   : > { %s2066_s3 = scalar_lea.hbm %s3446_s5, 16 }
  0x4d   : > { %p2067_p5 = scmp.ne.s32.totalorder %s3446_s5, %s2066_s3  ;;  %p2073_p12 = scmp.lt.u32.totalorder %s2066_s3, %s3446_s5 }
  0x4f   : > { %p2069_p10 = pnand %p2067_p5, %p2790_p8 }
  0x51   : > { %p2070_p11 = pneg %p2069_p10 }
  0x53   : > { %p2075_p13 = pnand %p2073_p12, %p2070_p11 }
  0x55   : > { %2078 = shalt.err (!%p2075_p13)
}
  0x56   : > { %s2079_s30 = scalar_lea.vmem %s2778_s18, 16  ;;  %s2086_s14 = scalar_lea.vmem %s2778_s18, 32 }
  0x57   : > { %p2080_p0 = scmp.ne.s32.totalorder %s2778_s18, %s2079_s30  ;;  %p2087_p7 = scmp.lt.s32.totalorder %s2778_s18, %s2778_s18 }
  0x58   : > { %p2088_p9 = scmp.lt.s32.totalorder %s2086_s14, %s2079_s30 }
  0x59   : > { %p2082_p2 = pnand %p2080_p0, %p2790_p8 }
  0x5a   : > { %p2089_p5 = por %p2088_p9, %p2087_p7 }
  0x5b   : > { %p2083_p4 = pneg %p2082_p2 }
  0x5d   : > { %p2090_p10 = pnand %p2089_p5, %p2083_p4 }
  0x5f   : > { %2093 = shalt.err (!%p2090_p10)
}
  0x60   : > { %1871 = dma.hbm_to_vmem [thread:$0]  (!%p2774_p6), %s3446_s5, 16, %s2778_s18, [#allocation14]  }
  0x61   : > { %s3447_s7 = sld [smem:[#allocation55_spill]] }
  0x67   : > { %s2094_s29 = scalar_lea.hbm %s3447_s7, 16 }
  0x68   : > { %p2095_p11 = scmp.ne.s32.totalorder %s3447_s7, %s2094_s29  ;;  %p2101_p0 = scmp.lt.u32.totalorder %s2094_s29, %s3447_s7 }
  0x6a   : > { %p2097_p12 = pnand %p2095_p11, %p2790_p8 }
  0x6c   : > { %p2098_p13 = pneg %p2097_p12 }
  0x6e   : > { %p2103_p2 = pnand %p2101_p0, %p2098_p13 }
  0x70   : > { %2106 = shalt.err (!%p2103_p2)
}
  0x71   : > { %s2107_s14 = scalar_lea.vmem %s500_s20, 16  ;;  %s2114_s18 = scalar_lea.vmem %s500_s20, 32 }
  0x72   : > { %p2108_p4 = scmp.ne.s32.totalorder %s500_s20, %s2107_s14  ;;  %p2115_p5 = scmp.lt.s32.totalorder %s500_s20, %s500_s20 }
  0x73   : > { %p2116_p10 = scmp.lt.s32.totalorder %s2114_s18, %s2107_s14 }
  0x74   : > { %p2110_p7 = pnand %p2108_p4, %p2790_p8 }
  0x75   : > { %p2117_p1 = por %p2116_p10, %p2115_p5 }
  0x76   : > { %p2111_p9 = pneg %p2110_p7 }
  0x78   : > { %p2118_p3 = pnand %p2117_p1, %p2111_p9 }
  0x7a   : > { %2121 = shalt.err (!%p2118_p3)
}
  0x7b   : > { %1877 = dma.hbm_to_vmem [thread:$0]  (!%p2774_p6), %s3447_s7, 16, %s500_s20, [#allocation17]  }
  0x7c   : > { %s2619_s15 = smov [#allocation19]   ;;  %s2620_s29 = smov [#allocation22]  }
  0x7d   : > { %s521_s28 = sshll.u32 %s2619_s15, 4  ;;  %s545_s17 = sshll.u32 %s2620_s29, 4  ;;  %s522_s28 = int_to_ptr.vmem [resolvable:$true] %s521_s28  ;;  %s546_s17 = int_to_ptr.vmem [resolvable:$true] %s545_s17 }
  0x7e   : > { %s3448_s9 = sld [smem:[#allocation57_spill]] }
  0x84   : > { %s2122_s30 = scalar_lea.hbm %s3448_s9, 16 }
  0x85   : > { %p2123_p1 = scmp.ne.s32.totalorder %s3448_s9, %s2122_s30  ;;  %p2129_p12 = scmp.lt.u32.totalorder %s2122_s30, %s3448_s9 }
  0x87   : > { %p2125_p3 = pnand %p2123_p1, %p2790_p8 }
  0x89   : > { %p2126_p11 = pneg %p2125_p3 }
  0x8b   : > { %p2131_p13 = pnand %p2129_p12, %p2126_p11 }
  0x8d   : > { %2134 = shalt.err (!%p2131_p13)
}
  0x8e   : > { %s2135_s20 = scalar_lea.vmem %s522_s28, 16  ;;  %s2142_s12 = scalar_lea.vmem %s522_s28, 32 }
  0x8f   : > { %p2136_p0 = scmp.ne.s32.totalorder %s522_s28, %s2135_s20  ;;  %p2143_p7 = scmp.lt.s32.totalorder %s522_s28, %s522_s28 }
  0x90   : > { %p2144_p9 = scmp.lt.s32.totalorder %s2142_s12, %s2135_s20 }
  0x91   : > { %p2138_p2 = pnand %p2136_p0, %p2790_p8 }
  0x92   : > { %p2145_p5 = por %p2144_p9, %p2143_p7 }
  0x93   : > { %p2139_p4 = pneg %p2138_p2 }
  0x95   : > { %p2146_p10 = pnand %p2145_p5, %p2139_p4 }
  0x97   : > { %2149 = shalt.err (!%p2146_p10)
}
  0x98   : > { %1883 = dma.hbm_to_vmem [thread:$0]  (!%p2774_p6), %s3448_s9, 16, %s522_s28, [#allocation20]  }
  0x99   : > { %s3449_s11 = sld [smem:[#allocation59_spill]] }
  0x9f   : > { %s2150_s3 = scalar_lea.hbm %s3449_s11, 16 }
  0xa0   : > { %p2151_p1 = scmp.ne.s32.totalorder %s3449_s11, %s2150_s3  ;;  %p2157_p12 = scmp.lt.u32.totalorder %s2150_s3, %s3449_s11 }
  0xa2   : > { %p2153_p3 = pnand %p2151_p1, %p2790_p8 }
  0xa4   : > { %p2154_p11 = pneg %p2153_p3 }
  0xa6   : > { %p2159_p13 = pnand %p2157_p12, %p2154_p11 }
  0xa8   : > { %2162 = shalt.err (!%p2159_p13)
}
  0xa9   : > { %s2163_s20 = scalar_lea.vmem %s546_s17, 16  ;;  %s2170_s28 = scalar_lea.vmem %s546_s17, 32 }
  0xaa   : > { %p2164_p0 = scmp.ne.s32.totalorder %s546_s17, %s2163_s20  ;;  %p2171_p7 = scmp.lt.s32.totalorder %s546_s17, %s546_s17 }
  0xab   : > { %p2172_p9 = scmp.lt.s32.totalorder %s2170_s28, %s2163_s20 }
  0xac   : > { %p2166_p2 = pnand %p2164_p0, %p2790_p8 }
  0xad   : > { %p2173_p5 = por %p2172_p9, %p2171_p7 }
  0xae   : > { %p2167_p4 = pneg %p2166_p2 }
  0xb0   : > { %p2174_p10 = pnand %p2173_p5, %p2167_p4 }
  0xb2   : > { %2177 = shalt.err (!%p2174_p10)
}
  0xb3   : > { %1889 = dma.hbm_to_vmem [thread:$0]  (!%p2774_p6), %s3449_s11, 16, %s546_s17, [#allocation23]  }
  0xb4   : > { %s2621_s29 = smov [#allocation25]   ;;  %s3450_s13 = sld [smem:[#allocation61_spill]] }
  0xb5   : > { %s569_s16 = sshll.u32 %s2621_s29, 4  ;;  %s570_s16 = int_to_ptr.vmem [resolvable:$true] %s569_s16 }
  0xba   : > { %s2178_s30 = scalar_lea.hbm %s3450_s13, 16 }
  0xbb   : > { %p2179_p1 = scmp.ne.s32.totalorder %s3450_s13, %s2178_s30  ;;  %p2185_p12 = scmp.lt.u32.totalorder %s2178_s30, %s3450_s13 }
  0xbd   : > { %p2181_p3 = pnand %p2179_p1, %p2790_p8 }
  0xbf   : > { %p2182_p11 = pneg %p2181_p3 }
  0xc1   : > { %p2187_p13 = pnand %p2185_p12, %p2182_p11 }
  0xc3   : > { %2190 = shalt.err (!%p2187_p13)
}
  0xc4   : > { %s2191_s17 = scalar_lea.vmem %s570_s16, 16  ;;  %s2198_s28 = scalar_lea.vmem %s570_s16, 32 }
  0xc5   : > { %p2192_p0 = scmp.ne.s32.totalorder %s570_s16, %s2191_s17  ;;  %p2199_p7 = scmp.lt.s32.totalorder %s570_s16, %s570_s16 }
  0xc6   : > { %p2200_p9 = scmp.lt.s32.totalorder %s2198_s28, %s2191_s17 }
  0xc7   : > { %p2194_p2 = pnand %p2192_p0, %p2790_p8 }
  0xc8   : > { %p2201_p5 = por %p2200_p9, %p2199_p7 }
  0xc9   : > { %p2195_p4 = pneg %p2194_p2 }
  0xcb   : > { %p2202_p10 = pnand %p2201_p5, %p2195_p4 }
  0xcd   : > { %2205 = shalt.err (!%p2202_p10)
}
  0xce   : > { %1895 = dma.hbm_to_vmem [thread:$0]  (!%p2774_p6), %s3450_s13, 16, %s570_s16, [#allocation26]  }
  0xcf   : > { %s1657_s29 = sadd.s32 4294967294, %s2612_s26   ;;  %s56_s19 = sadd.s32 1, %s2608_s25 }
  0xd0   : > { %p58_p1 = scmp.ge.s32.totalorder %s56_s19, 2  ;;  %s63_s3 = sadd.s32 1, %s2600_s23 }
  0xd1   : > { %p70_p3 = scmp.ne.s32.totalorder %s2600_s23, %s2596_s22  ;;  %p71_p11 = scmp.eq.s32.totalorder %s2612_s26, 0 }
  0xd2   : > { %s3514_s19 = smov (%p58_p1, %s56_s19), 0  ;;  %p76_p13 = scmp.ne.s32.totalorder %s2596_s22, %s2592_s21 }
  0xd3   : > { %3451 = sst [smem:[#allocation45_spill]] %s3514_s19  ;;  %p2919_p12 = por %p71_p11, %p70_p3 }
  0xd4   : > { %s60_s16 = ssub.s32 %s2608_s25, %s3514_s19  ;;  %p436_p0 = scmp.eq.s32.totalorder %s2758_s27, 1 }
  0xd5   : > { %p61_p2 = scmp.eq.s32.totalorder %s60_s16, 0  ;;  %p3453_p4 = scmp.eq.s32.totalorder %s2758_s27, 0 }
  0xd6   : > { %p2934_p9 = por %p436_p0, %p70_p3  ;;  %p442_p5 = scmp.eq.s32.totalorder %s1657_s29, 1 }
  0xd7   : > { %p2930_p7 = por %p3453_p4, %p76_p13  ;;  %p1931_p1 = scmp.lt.s32.totalorder %s2612_s26, 2 }
  0xd8   : > { %s3455_s18 = scalar_select %p2934_p9, 1, 0 }
  0xd9   : > { %s3454_s14 = scalar_select %p2930_p7, 1, 0 }
  0xda   : > { %s2939_s10 = scalar_select %p61_p2, %s2600_s23, %s63_s3  }
  0xdb   : > { %p2941_p10 = por %p442_p5, %p76_p13  ;;  %s2947_s17 = sand.u32 1, %s2600_s23  }
  0xdc   : > { %3456 = sst [smem:[#allocation46_spill]] %s2939_s10  ;;  %s2950_s28 = sshll.u32 %s2608_s25, 7 }
  0xdd   : > { %s3457_s20 = scalar_select %p2941_p10, 1, 0 }
  0xde   : > { %s2953_s12 = sshll.u32 %s2947_s17, 3  ;;  %p2957_p3 = pnand %p1931_p1, %p2919_p12 }
  0xdf   : > { %3458 = sst [smem:[#allocation47_spill]] %s3457_s20  ;;  %s3406_s29 = sand.u32 1, %s2612_s26  }
  0xe0   : > { %s3459_s15 = scalar_select %p2957_p3, 1, 0 }
  0xe1   : > { %s3460_s1 = sld [smem:[#allocation49_spill]]  ;;  %s624_s4 = scalar_lea.vmem [#allocation7], %s2953_s12 }
  0xe2   : > { %s632_s5 = sshll.u32 %s624_s4, 4  ;;  %s2973_s30 = scalar_lea.sflag [#allocation8], %s3406_s29  ;;  %s2969_s5 = int_to_ptr.vmem [resolvable:$true] %s632_s5 }
  0xe3   : > { %p2979_p12 = pneg %p2957_p3 }
  0xe5   : > { %s3461_s9 = scalar_select %p2979_p12, 1, 0 }
  0xe7   : > { %s2966_s24 = scalar_lea.hbm %s3460_s1, %s2950_s28  ;;  %s2211_s4 = scalar_lea.hbm %s3460_s1, 256 }
  0xe8   : > { %s2206_s7 = scalar_lea.hbm %s2966_s24, 128  ;;  %p2212_p2 = scmp.lt.u32.totalorder %s2966_s24, %s3460_s1 }
  0xe9   : > { %p2207_p11 = scmp.ne.s32.totalorder %s2966_s24, %s2206_s7  ;;  %p2213_p4 = scmp.lt.u32.totalorder %s2211_s4, %s2206_s7 }
  0xea   : > { %p2215_p1 = scmp.lt.u32.totalorder %s2206_s7, %s2966_s24 }
  0xeb   : > { %p2209_p13 = pnand %p2979_p12, %p2207_p11  ;;  %p2214_p5 = por %p2213_p4, %p2212_p2 }
  0xed   : > { %p2210_p0 = pneg %p2209_p13  ;;  %p2216_p10 = por %p2215_p1, %p2214_p5 }
  0xef   : > { %p2217_p9 = pnand %p2216_p10, %p2210_p0 }
  0xf1   : > { %2220 = shalt.err (!%p2217_p9)
}
  0xf2   : > { %s2221_s29 = scalar_lea.vmem %s2969_s5, 128  ;;  %s2622_s3 = smov [#allocation7]  }
  0xf3   : > { %p2222_p11 = scmp.ne.s32.totalorder %s2969_s5, %s2221_s29  ;;  %s2226_s16 = sshll.u32 %s2622_s3, 4  ;;  %s2227_s16 = int_to_ptr.vmem [resolvable:$false] %s2226_s16 }
  0xf4   : > { %s2228_s11 = scalar_lea.vmem %s2227_s16, 256  ;;  %p2229_p6 = scmp.lt.s32.totalorder %s2969_s5, %s2227_s16 }
  0xf5   : > { %p2224_p13 = pnand %p2222_p11, %p2979_p12  ;;  %p2230_p8 = scmp.lt.s32.totalorder %s2228_s11, %s2221_s29 }
  0xf7   : > { %p2225_p7 = pneg %p2224_p13  ;;  %p2231_p2 = por %p2230_p8, %p2229_p6 }
  0xf9   : > { %p2232_p4 = pnand %p2231_p2, %p2225_p7 }
  0xfb   : > { %2235 = shalt.err (!%p2232_p4)
}
  0xfc   : > { %1908 = dma.hbm_to_vmem [thread:$0]  (!%p2957_p3), %s2966_s24, 128, %s2969_s5, %s2973_s30  }
  0xfd   : > { %s2623_s7 = smov [#allocation15]   ;;  %s2624_s4 = smov [#allocation18]  }
  0xfe   : > { %s485_s13 = sshll.u32 %s2623_s7, 4  ;;  %s510_s1 = sshll.u32 %s2624_s4, 4  ;;  %s486_s13 = int_to_ptr.vmem [resolvable:$true] %s485_s13  ;;  %s3003_s1 = int_to_ptr.vmem [resolvable:$true] %s510_s1 }
  0xff   : > { %s3462_s6 = sld [smem:[#allocation54_spill]]  ;;  %p3463_p8 = scmp.ne.s32.totalorder %s3445_s2, 0 }
 0x105   : > { %s2236_s29 = scalar_lea.hbm %s3462_s6, 256 }
 0x106   : > { %p2237_p6 = scmp.ne.s32.totalorder %s3462_s6, %s2236_s29  ;;  %p2243_p10 = scmp.lt.u32.totalorder %s2236_s29, %s3462_s6 }
 0x108   : > { %p2239_p7 = pnand %p2237_p6, %p3463_p8 }
 0x10a   : > { %p2240_p9 = pneg %p2239_p7 }
 0x10c   : > { %p2245_p0 = pnand %p2243_p10, %p2240_p9 }
 0x10e   : > { %2248 = shalt.err (!%p2245_p0)
}
 0x10f   : > { %s2249_s24 = scalar_lea.vmem %s486_s13, 256  ;;  %p2257_p13 = scmp.lt.s32.totalorder %s486_s13, %s486_s13 }
 0x110   : > { %p2250_p5 = scmp.ne.s32.totalorder %s486_s13, %s2249_s24  ;;  %p2258_p2 = scmp.lt.s32.totalorder %s2249_s24, %s2249_s24 }
 0x112   : > { %p2252_p1 = pnand %p2250_p5, %p3463_p8  ;;  %p2259_p4 = por %p2258_p2, %p2257_p13 }
 0x114   : > { %p2253_p11 = pneg %p2252_p1 }
 0x116   : > { %p2260_p3 = pnand %p2259_p4, %p2253_p11 }
 0x118   : > { %2263 = shalt.err (!%p2260_p3)
}
 0x119   : > { %p3464_p6 = scmp.ne.s32.totalorder %s3443_s0, 0  ;;  %s3465_s19 = smov 4  }
 0x11a   : > { %s3466_s7 = smov 64   ;;  %s3467_s8 = sld [smem:[#allocation56_spill]] }
 0x11b   : > { %1874 = dma.hbm_to_vmem [thread:$0]  (!%p3464_p6), %s3462_s6, 256, %s486_s13, [#allocation14], %s3466_s7, %s3466_s7, %s3465_s19  }
 0x120   : > { %s2264_s29 = scalar_lea.hbm %s3467_s8, 16 }
 0x121   : > { %p2265_p7 = scmp.ne.s32.totalorder %s3467_s8, %s2264_s29  ;;  %p2271_p10 = scmp.lt.u32.totalorder %s2264_s29, %s3467_s8 }
 0x123   : > { %p2267_p3 = pnand %p2265_p7, %p3463_p8 }
 0x125   : > { %p2268_p9 = pneg %p2267_p3 }
 0x127   : > { %p2273_p0 = pnand %p2271_p10, %p2268_p9 }
 0x129   : > { %2276 = shalt.err (!%p2273_p0)
}
 0x12a   : > { %s2277_s13 = scalar_lea.vmem %s3003_s1, 16  ;;  %s2284_s10 = scalar_lea.vmem %s3003_s1, 32 }
 0x12b   : > { %p2278_p5 = scmp.ne.s32.totalorder %s3003_s1, %s2277_s13  ;;  %p2285_p13 = scmp.lt.s32.totalorder %s3003_s1, %s3003_s1 }
 0x12c   : > { %p2286_p2 = scmp.lt.s32.totalorder %s2284_s10, %s2277_s13 }
 0x12d   : > { %p2280_p1 = pnand %p2278_p5, %p3463_p8 }
 0x12e   : > { %p2287_p4 = por %p2286_p2, %p2285_p13 }
 0x12f   : > { %p2281_p11 = pneg %p2280_p1 }
 0x131   : > { %p2288_p7 = pnand %p2287_p4, %p2281_p11 }
 0x133   : > { %2291 = shalt.err (!%p2288_p7)
}
 0x134   : > { %1880 = dma.hbm_to_vmem [thread:$0]  (!%p3464_p6), %s3467_s8, 16, %s3003_s1, [#allocation17]  }
 0x135   : > { %s2625_s3 = smov [#allocation21]   ;;  %s2626_s29 = smov [#allocation24]  }
 0x136   : > { %s531_s16 = sshll.u32 %s2625_s3, 4  ;;  %s555_s11 = sshll.u32 %s2626_s29, 4  ;;  %s532_s16 = int_to_ptr.vmem [resolvable:$true] %s531_s16  ;;  %s3050_s11 = int_to_ptr.vmem [resolvable:$true] %s555_s11 }
 0x137   : > { %s3468_s13 = sld [smem:[#allocation58_spill]] }
 0x13d   : > { %s2292_s10 = scalar_lea.hbm %s3468_s13, 256 }
 0x13e   : > { %p2293_p3 = scmp.ne.s32.totalorder %s3468_s13, %s2292_s10  ;;  %p2299_p0 = scmp.lt.u32.totalorder %s2292_s10, %s3468_s13 }
 0x140   : > { %p2295_p9 = pnand %p2293_p3, %p3463_p8 }
 0x142   : > { %p2296_p10 = pneg %p2295_p9 }
 0x144   : > { %p2301_p5 = pnand %p2299_p0, %p2296_p10 }
 0x146   : > { %2304 = shalt.err (!%p2301_p5)
}
 0x147   : > { %s2305_s4 = scalar_lea.vmem %s532_s16, 256  ;;  %p2313_p2 = scmp.lt.s32.totalorder %s532_s16, %s532_s16 }
 0x148   : > { %p2306_p1 = scmp.ne.s32.totalorder %s532_s16, %s2305_s4  ;;  %p2314_p4 = scmp.lt.s32.totalorder %s2305_s4, %s2305_s4 }
 0x14a   : > { %p2308_p11 = pnand %p2306_p1, %p3463_p8  ;;  %p2315_p7 = por %p2314_p4, %p2313_p2 }
 0x14c   : > { %p2309_p13 = pneg %p2308_p11 }
 0x14e   : > { %p2316_p12 = pnand %p2315_p7, %p2309_p13 }
 0x150   : > { %2319 = shalt.err (!%p2316_p12)
}
 0x151   : > { %1886 = dma.hbm_to_vmem [thread:$0]  (!%p3464_p6), %s3468_s13, 256, %s532_s16, [#allocation20], %s3466_s7, %s3466_s7, %s3465_s19  }
 0x152   : > { %s3469_s5 = sld [smem:[#allocation60_spill]] }
 0x158   : > { %s2320_s24 = scalar_lea.hbm %s3469_s5, 512 }
 0x159   : > { %p2321_p3 = scmp.ne.s32.totalorder %s3469_s5, %s2320_s24  ;;  %p2327_p10 = scmp.lt.u32.totalorder %s2320_s24, %s3469_s5 }
 0x15b   : > { %p2323_p12 = pnand %p2321_p3, %p3463_p8 }
 0x15d   : > { %p2324_p9 = pneg %p2323_p12 }
 0x15f   : > { %p2329_p0 = pnand %p2327_p10, %p2324_p9 }
 0x161   : > { %2332 = shalt.err (!%p2329_p0)
}
 0x162   : > { %s2333_s16 = scalar_lea.vmem %s3050_s11, 512  ;;  %p2341_p13 = scmp.lt.s32.totalorder %s3050_s11, %s3050_s11 }
 0x163   : > { %p2334_p5 = scmp.ne.s32.totalorder %s3050_s11, %s2333_s16  ;;  %p2342_p2 = scmp.lt.s32.totalorder %s2333_s16, %s2333_s16 }
 0x165   : > { %p2336_p1 = pnand %p2334_p5, %p3463_p8  ;;  %p2343_p4 = por %p2342_p2, %p2341_p13 }
 0x167   : > { %p2337_p11 = pneg %p2336_p1 }
 0x169   : > { %p2344_p7 = pnand %p2343_p4, %p2337_p11 }
 0x16b   : > { %2347 = shalt.err (!%p2344_p7)
}
 0x16c   : > { %1892 = dma.hbm_to_vmem [thread:$0]  (!%p3464_p6), %s3469_s5, 512, %s3050_s11, [#allocation23], %s3466_s7, %s3466_s7, %s3465_s19  }
 0x16d   : > { %s2627_s3 = smov [#allocation27]   ;;  %s2628_s24 = smov [#allocation28]  }
 0x16e   : > { %s580_s29 = sshll.u32 %s2627_s3, 4  ;;  %s591_s10 = sshll.u32 %s2628_s24, 4  ;;  %s581_s29 = int_to_ptr.vmem [resolvable:$true] %s580_s29  ;;  %s3099_s10 = int_to_ptr.vmem [resolvable:$true] %s591_s10 }
 0x16f   : > { %s3470_s4 = sld [smem:[#allocation62_spill]] }
 0x175   : > { %s2348_s16 = scalar_lea.hbm %s3470_s4, 16 }
 0x176   : > { %p2349_p3 = scmp.ne.s32.totalorder %s3470_s4, %s2348_s16  ;;  %p2355_p10 = scmp.lt.u32.totalorder %s2348_s16, %s3470_s4 }
 0x178   : > { %p2351_p12 = pnand %p2349_p3, %p3463_p8 }
 0x17a   : > { %p2352_p9 = pneg %p2351_p12 }
 0x17c   : > { %p2357_p0 = pnand %p2355_p10, %p2352_p9 }
 0x17e   : > { %2360 = shalt.err (!%p2357_p0)
}
 0x17f   : > { %s2361_s7 = scalar_lea.vmem %s581_s29, 16  ;;  %s2368_s11 = scalar_lea.vmem %s581_s29, 32 }
 0x180   : > { %p2362_p5 = scmp.ne.s32.totalorder %s581_s29, %s2361_s7  ;;  %p2369_p13 = scmp.lt.s32.totalorder %s581_s29, %s581_s29 }
 0x181   : > { %p2370_p2 = scmp.lt.s32.totalorder %s2368_s11, %s2361_s7 }
 0x182   : > { %p2364_p1 = pnand %p2362_p5, %p3463_p8 }
 0x183   : > { %p2371_p4 = por %p2370_p2, %p2369_p13 }
 0x184   : > { %p2365_p11 = pneg %p2364_p1 }
 0x186   : > { %p2372_p7 = pnand %p2371_p4, %p2365_p11 }
 0x188   : > { %2375 = shalt.err (!%p2372_p7)
}
 0x189   : > { %1898 = dma.hbm_to_vmem [thread:$0]  (!%p3464_p6), %s3470_s4, 16, %s581_s29, [#allocation26]  }
 0x18a   : > { %s3471_s24 = sld [smem:[#allocation63_spill]] }
 0x190   : > { %s3472_s1 = smov %s3471_s24  ;;  %s2376_s23 = scalar_lea.hbm %s3471_s24, 16 }
 0x191   : > { %p2377_p3 = scmp.ne.s32.totalorder %s3472_s1, %s2376_s23  ;;  %p2383_p10 = scmp.lt.u32.totalorder %s2376_s23, %s3472_s1 }
 0x193   : > { %p2379_p12 = pnand %p2377_p3, %p3463_p8 }
 0x195   : > { %p2380_p9 = pneg %p2379_p12 }
 0x197   : > { %p2385_p0 = pnand %p2383_p10, %p2380_p9 }
 0x199   : > { %2388 = shalt.err (!%p2385_p0)
}
 0x19a   : > { %s2389_s29 = scalar_lea.vmem %s3099_s10, 16  ;;  %s2396_s11 = scalar_lea.vmem %s3099_s10, 32 }
 0x19b   : > { %p2390_p5 = scmp.ne.s32.totalorder %s3099_s10, %s2389_s29  ;;  %p2397_p13 = scmp.lt.s32.totalorder %s3099_s10, %s3099_s10 }
 0x19c   : > { %p2398_p2 = scmp.lt.s32.totalorder %s2396_s11, %s2389_s29 }
 0x19d   : > { %p2392_p1 = pnand %p2390_p5, %p3463_p8 }
 0x19e   : > { %p2399_p4 = por %p2398_p2, %p2397_p13 }
 0x19f   : > { %p2393_p11 = pneg %p2392_p1 }
 0x1a1   : > { %p2400_p7 = pnand %p2399_p4, %p2393_p11 }
 0x1a3   : > { %2403 = shalt.err (!%p2400_p7)
}
 0x1a4   : > { %1901 = dma.hbm_to_vmem [thread:$0]  (!%p3464_p6), %s3472_s1, 16, %s3099_s10, [#allocation29]  }
 0x1a5   : > { %s3473_s3 = sld [smem:[#allocation48_spill]]  ;;  %s606_s23 = scalar_lea.vmem [#allocation4], %s2953_s12 }
 0x1a6   : > { %s613_s0 = sshll.u32 %s606_s23, 4  ;;  %s603_s16 = scalar_lea.sflag [#allocation5], %s2947_s17  ;;  %s614_s0 = int_to_ptr.vmem [resolvable:$true] %s613_s0 }
 0x1a7   : > { %p3474_p3 = scmp.ne.s32.totalorder %s3461_s9, 0 }
 0x1ab   : > { %s3147_s24 = scalar_lea.hbm %s3473_s3, %s2950_s28  ;;  %s2409_s7 = scalar_lea.hbm %s3473_s3, 256 }
 0x1ac   : > { %s2404_s6 = scalar_lea.hbm %s3147_s24, 128  ;;  %p2410_p6 = scmp.lt.u32.totalorder %s3147_s24, %s3473_s3 }
 0x1ad   : > { %p2405_p8 = scmp.ne.s32.totalorder %s3147_s24, %s2404_s6  ;;  %p2411_p10 = scmp.lt.u32.totalorder %s2409_s7, %s2404_s6 }
 0x1ae   : > { %p2413_p5 = scmp.lt.u32.totalorder %s2404_s6, %s3147_s24 }
 0x1af   : > { %p2407_p12 = pnand %p2405_p8, %p3474_p3  ;;  %p2412_p0 = por %p2411_p10, %p2410_p6 }
 0x1b1   : > { %p2408_p9 = pneg %p2407_p12  ;;  %p2414_p1 = por %p2413_p5, %p2412_p0 }
 0x1b3   : > { %p2415_p11 = pnand %p2414_p1, %p2408_p9 }
 0x1b5   : > { %2418 = shalt.err (!%p2415_p11)
}
 0x1b6   : > { %s2419_s8 = scalar_lea.vmem %s614_s0, 128  ;;  %s2629_s13 = smov [#allocation4]  }
 0x1b7   : > { %p2420_p13 = scmp.ne.s32.totalorder %s614_s0, %s2419_s8  ;;  %s2424_s2 = sshll.u32 %s2629_s13, 4  ;;  %s2425_s2 = int_to_ptr.vmem [resolvable:$false] %s2424_s2 }
 0x1b8   : > { %s2426_s20 = scalar_lea.vmem %s2425_s2, 256  ;;  %p2427_p7 = scmp.lt.s32.totalorder %s614_s0, %s2425_s2 }
 0x1b9   : > { %p2422_p2 = pnand %p2420_p13, %p3474_p3  ;;  %p2428_p8 = scmp.lt.s32.totalorder %s2426_s20, %s2419_s8 }
 0x1bb   : > { %p2423_p4 = pneg %p2422_p2  ;;  %p2429_p12 = por %p2428_p8, %p2427_p7 }
 0x1bd   : > { %p2430_p6 = pnand %p2429_p12, %p2423_p4 }
 0x1bf   : > { %2433 = shalt.err (!%p2430_p6)
}
 0x1c0   : > { %p3475_p10 = scmp.ne.s32.totalorder %s3459_s15, 0  ;;  %s1676_s23 = sshll.u32 %s2608_s25, 4 }
 0x1c1   : > { %s642_s6 = scalar_lea.vmem [#allocation9], %s2947_s17  ;;  %s3476_s29 = sld [smem:[#allocation50_spill]] }
 0x1c2   : > { %1905 = dma.hbm_to_vmem [thread:$0]  (!%p3475_p10), %s3147_s24, 128, %s614_s0, %s603_s16  }
 0x1c3   : > { %s649_s19 = sshll.u32 %s642_s6, 4  ;;  %s650_s19 = int_to_ptr.vmem [resolvable:$true] %s649_s19 }
 0x1c7   : > { %s647_s11 = scalar_lea.hbm %s3476_s29, %s1676_s23  ;;  %s2439_s20 = scalar_lea.hbm %s3476_s29, 32 }
 0x1c8   : > { %s2434_s13 = scalar_lea.hbm %s647_s11, 16  ;;  %p2440_p1 = scmp.lt.u32.totalorder %s647_s11, %s3476_s29 }
 0x1c9   : > { %p2435_p9 = scmp.ne.s32.totalorder %s647_s11, %s2434_s13  ;;  %p2441_p11 = scmp.lt.u32.totalorder %s2439_s20, %s2434_s13 }
 0x1ca   : > { %p2443_p2 = scmp.lt.u32.totalorder %s2434_s13, %s647_s11 }
 0x1cb   : > { %p2437_p0 = pnand %p2435_p9, %p3474_p3  ;;  %p2442_p13 = por %p2441_p11, %p2440_p1 }
 0x1cd   : > { %p2438_p5 = pneg %p2437_p0  ;;  %p2444_p4 = por %p2443_p2, %p2442_p13 }
 0x1cf   : > { %p2445_p7 = pnand %p2444_p4, %p2438_p5 }
 0x1d1   : > { %2448 = shalt.err (!%p2445_p7)
}
 0x1d2   : > { %s2449_s17 = scalar_lea.vmem %s650_s19, 16  ;;  %s2630_s24 = smov [#allocation9]  }
 0x1d3   : > { %p2450_p8 = scmp.ne.s32.totalorder %s650_s19, %s2449_s17  ;;  %s2454_s0 = sshll.u32 %s2630_s24, 4  ;;  %s2455_s0 = int_to_ptr.vmem [resolvable:$false] %s2454_s0 }
 0x1d4   : > { %s2456_s16 = scalar_lea.vmem %s2455_s0, 32  ;;  %p2457_p9 = scmp.lt.s32.totalorder %s650_s19, %s2455_s0 }
 0x1d5   : > { %p2452_p12 = pnand %p2450_p8, %p3474_p3  ;;  %p2458_p0 = scmp.lt.s32.totalorder %s2456_s16, %s2449_s17 }
 0x1d7   : > { %p2453_p6 = pneg %p2452_p12  ;;  %p2459_p10 = por %p2458_p0, %p2457_p9 }
 0x1d9   : > { %p2460_p1 = pnand %p2459_p10, %p2453_p6 }
 0x1db   : > { %2463 = shalt.err (!%p2460_p1)
}
 0x1dc   : > { %p3477_p11 = scmp.ne.s32.totalorder %s3459_s15, 0  ;;  %s3478_s23 = sld [smem:[#allocation51_spill]] }
 0x1dd   : > { %s660_s7 = scalar_lea.vmem [#allocation10], %s2953_s12  ;;  %s3480_s8 = sand.u32 1, %s2612_s26  }
 0x1de   : > { %1911 = dma.hbm_to_vmem [thread:$0]  (!%p3477_p11), %s647_s11, 16, %s650_s19, %s2973_s30  }
 0x1df   : > { %s668_s13 = sshll.u32 %s660_s7, 4  ;;  %s657_s2 = scalar_lea.sflag [#allocation11], %s3480_s8  ;;  %s669_s13 = int_to_ptr.vmem [resolvable:$true] %s668_s13 }
 0x1e2   : > { %s3479_s6 = smov %s3478_s23  ;;  %s3190_s10 = scalar_lea.hbm %s3478_s23, %s2950_s28 }
 0x1e3   : > { %s2464_s20 = scalar_lea.hbm %s3190_s10, 128  ;;  %s2469_s11 = scalar_lea.hbm %s3479_s6, 256 }
 0x1e4   : > { %p2465_p10 = scmp.ne.s32.totalorder %s3190_s10, %s2464_s20  ;;  %p2470_p2 = scmp.lt.u32.totalorder %s3190_s10, %s3479_s6 }
 0x1e5   : > { %p2471_p4 = scmp.lt.u32.totalorder %s2469_s11, %s2464_s20  ;;  %p2473_p8 = scmp.lt.u32.totalorder %s2464_s20, %s3190_s10 }
 0x1e6   : > { %p2467_p5 = pnand %p2465_p10, %p3474_p3 }
 0x1e7   : > { %p2472_p7 = por %p2471_p4, %p2470_p2 }
 0x1e8   : > { %p2468_p13 = pneg %p2467_p5 }
 0x1e9   : > { %p2474_p12 = por %p2473_p8, %p2472_p7 }
 0x1eb   : > { %p2475_p6 = pnand %p2474_p12, %p2468_p13 }
 0x1ed   : > { %2478 = shalt.err (!%p2475_p6)
}
 0x1ee   : > { %s2479_s12 = scalar_lea.vmem %s669_s13, 128  ;;  %s2631_s24 = smov [#allocation10]  }
 0x1ef   : > { %p2480_p9 = scmp.ne.s32.totalorder %s669_s13, %s2479_s12  ;;  %s2484_s0 = sshll.u32 %s2631_s24, 4  ;;  %s2485_s0 = int_to_ptr.vmem [resolvable:$false] %s2484_s0 }
 0x1f0   : > { %s2486_s16 = scalar_lea.vmem %s2485_s0, 256  ;;  %p2487_p10 = scmp.lt.s32.totalorder %s669_s13, %s2485_s0 }
 0x1f1   : > { %p2482_p0 = pnand %p2480_p9, %p3474_p3  ;;  %p2488_p5 = scmp.lt.s32.totalorder %s2486_s16, %s2479_s12 }
 0x1f3   : > { %p2483_p1 = pneg %p2482_p0  ;;  %p2489_p11 = por %p2488_p5, %p2487_p10 }
 0x1f5   : > { %p2490_p2 = pnand %p2489_p11, %p2483_p1 }
 0x1f7   : > { %2493 = shalt.err (!%p2490_p2)
}
 0x1f8   : > { %p3481_p4 = scmp.ne.s32.totalorder %s3459_s15, 0  ;;  %s3482_s1 = sld [smem:[#allocation44_spill]] }
 0x1fa   : > { %1914 = dma.hbm_to_vmem [thread:$0]  (!%p3481_p4), %s3190_s10, 128, %s669_s13, %s657_s2  }
 0x1fe   : > { %p3483_p13 = scmp.ne.s32.totalorder %s3482_s1, 0 }
 0x1ff   : > { %s3215_s9 = sand.u32 (!%p3483_p13), 1, %s2596_s22   ;;  %p3484_p3 = scmp.ne.s32.totalorder (!%p3483_p13), %s3454_s14, 0 }
 0x200   : > { %677 = sbr.rel (%p3483_p13) target bundleno = 2296 (0x8f8), region = 84  ;;  %s3218_s3 = sshll.u32 (!%p3483_p13), %s3215_s9, 3 }
 0x201   : > { %s680_s23 = scalar_lea.sflag (!%p3483_p13), [#allocation5], %s3215_s9  ;;  %s683_s7 = scalar_lea.vmem (!%p3483_p13), [#allocation4], %s3218_s3 }
 0x207   : > { %2547 = dma.done.wait (%p3484_p3), %s680_s23, 128  }
 0x208   : > { %2549 = vsyncadd (%p3484_p3), %s680_s23, 4294967168  ;;  %s688_s15 = sand.u32 1, %s2758_s27   ;;  %s692_s13 = scalar_lea.vmem [#allocation7], %s3218_s3 }
 0x209   : > { %s689_s10 = scalar_lea.sflag [#allocation8], %s688_s15 }
 0x20a   : > { %2551 = dma.done.wait (%p3484_p3), %s689_s10, 144  }
 0x20b   : > { %2553 = vsyncadd (%p3484_p3), %s689_s10, 4294967152  ;;  %s700_s8 = scalar_lea.vmem [#allocation9], %s3215_s9  ;;  %s706_s2 = scalar_lea.sflag [#allocation11], %s688_s15 }
 0x20c   : > { %s709_s20 = scalar_lea.vmem [#allocation10], %s3218_s3 }
 0x20d   : > { %2555 = dma.done.wait (%p3484_p3), %s706_s2, 128  }
 0x20e   : > { %2557 = vsyncadd (%p3484_p3), %s706_s2, 4294967168  ;;  %p3485_p11 = scmp.eq.s32.totalorder %s2758_s27, 0 }
 0x210   : > { %2559 = dma.done.wait (%p3485_p11), [#allocation11], 256   ;;  %p3486_p7 = pmov %p3485_p11 }
 0x212   : > { %2561 = vsyncadd (%p3486_p7), [#allocation11], 4294967040  ;;  %p3487_p8 = pmov %p3486_p7 }
 0x213   : > { %p3488_p12 = pmov %p3486_p7 }
 0x214   : > { %2563 = dma.done.wait (%p3487_p8), [#allocation14], 272  }
 0x215   : > { %2565 = vsyncadd (%p3488_p12), [#allocation14], 4294967024  ;;  %p3489_p6 = pmov %p3486_p7 }
 0x217   : > { %2567 = dma.done.wait (%p3489_p6), [#allocation17], 32   ;;  %p3490_p9 = pmov %p3489_p6 }
 0x218   : > { %p3491_p0 = pmov %p3489_p6 }
 0x219   : > { %2569 = vsyncadd (%p3490_p9), [#allocation17], 4294967264 }
 0x21a   : > { %2571 = dma.done.wait (%p3491_p0), [#allocation20], 272   ;;  %p3492_p1 = pmov %p3491_p0 }
 0x21b   : > { %p3493_p10 = pmov %p3491_p0 }
 0x21c   : > { %2573 = vsyncadd (%p3492_p1), [#allocation20], 4294967024 }
 0x21d   : > { %2575 = dma.done.wait (%p3493_p10), [#allocation23], 528   ;;  %p3494_p5 = pmov %p3491_p0 }
 0x21e   : > { %p3495_p2 = pmov %p3491_p0 }
 0x21f   : > { %2577 = vsyncadd (%p3494_p5), [#allocation23], 4294966768 }
 0x220   : > { %2579 = dma.done.wait (%p3495_p2), [#allocation26], 32   ;;  %p3496_p4 = pmov %p3491_p0 }
 0x221   : > { %p3497_p13 = pmov %p3491_p0 }
 0x222   : > { %2581 = vsyncadd (%p3496_p4), [#allocation26], 4294967264 }
 0x223   : > { %2583 = dma.done.wait (%p3497_p13), [#allocation29], 16   ;;  %p3498_p3 = pmov %p3491_p0 }
 0x224   : > { %v2632_v0 = vmov 0.0   ;;  %vm2633_vm0 = vmmov 0   ;;  %v2018_v1 = vld [vmem:[#allocation12] sm:$0xff]   ;;  %v2019_v2 = vld [vmem:[#allocation12 + $0x8] sm:$0xff]   ;;  %vm850_vm1 = vcmask 261120   ;;  %vm895_vm2 = vcmask 781312  }
 0x225   : > { %2585 = vsyncadd (%p3498_p3), [#allocation29], 4294967280  ;;  %1747 = vmatprep.subr.bf16.mxu0 %v2632_v0  ;;  %1751 = vmatprep.mubr.msk.bf16.mxu0 %vm2633_vm0, %v2632_v0  ;;  %v825_v3 = vld [vmem:[%s683_s7] sm:$0xff]  ;;  %s2634_s27 = smov 96   ;;  %s2635_s14 = smov 112   ;;  %vm916_vm3 = vcmask 130048  }
 0x226   : > { %1755 = vmatprep.subr.bf16.mxu1 %v2632_v0  ;;  %1757 = vmatprep.mubr.msk.bf16.mxu1 %vm2633_vm0, %v2632_v0  ;;  %v826_v4 = vpack.c.bf16 %v825_v3, %v825_v3  ;;  %v1696_v5 = vld [vmem:[#allocation13] ss:$0 sm:$0xff]  ;;  %s2636_s30 = smov 80   ;;  %v1700_v20 = vld [vmem:[%s700_s8] ss:$0 sm:$0xff]  ;;  %vm963_vm4 = vcmask 64512  }
 0x227   : > { %1748 = vmatpush3.bf16.msra.mxu0 %v2018_v1  ;;  %s2637_s19 = smov 48   ;;  %s2638_s11 = smov 64   ;;  %vm982_vm5 = vcmask 1043456   ;;  %v2022_v54 = vld [vmem:[#allocation15] sm:$0xff]   ;;  %v2023_v57 = vld [vmem:[#allocation15 + $0x8] sm:$0xff]   ;;  %vm1148_vm6 = vcmask 257024  }
 0x228   : > { %1749 = vmatprep.subr.bf16.mxu0 %v2632_v0  ;;  %s2639_s28 = smov 16   ;;  %s3499_s17 = sld [smem:[#allocation43_spill]]  ;;  %vm1328_vm7 = vcmask 523264  }
 0x229   : > { %s819_s24 = scalar_lea.vmem [#allocation30], %s3218_s3  ;;  %s3500_s23 = sld [smem:[#allocation64_spill]] }
 0x22a   : > { %s1396_s0 = sshll.u32 %s819_s24, 4  ;;  %s1382_s10 = scalar_lea.sflag [#allocation6], %s3215_s9  ;;  %s3325_s0 = int_to_ptr.vmem [resolvable:$true] %s1396_s0 }
 0x22b   : > { %1750 = vmatpush3.bf16.msra.mxu0 %v2019_v2  ;;  %p3502_p7 = scmp.ne.s32.totalorder %s3455_s18, 0  ;;  %s2641_s3 = smov [#allocation30]  }
 0x22c   : > { %1761 = vmatprep.subr.bf16.mxu0 %v2632_v0  ;;  %s2498_s8 = sshll.u32 %s2641_s3, 4  ;;  %s2499_s8 = int_to_ptr.vmem [resolvable:$false] %s2498_s8 }
 0x22d   : > { %s2500_s2 = scalar_lea.vmem %s2499_s8, 256  ;;  %p2501_p6 = scmp.lt.s32.totalorder %s3325_s0, %s2499_s8 }
 0x22e   : > { %1752 = vmatmul.mubr.msk.bf16.vlgmr.msra.gmra.mrb[0].mxu0 %vm850_vm1, %v826_v4  ;;  %s1722_s12 = sshll.u32 %s3499_s17, 7 }
 0x22f   : > { %1763 = vmatprep.mubr.msk.bf16.mxu0 %vm2633_vm0, %v2632_v0  ;;  %s3501_s7 = smov %s3500_s23  ;;  %s3323_s15 = scalar_lea.hbm %s3500_s23, %s1722_s12 }
 0x301   : > { %v888_v6 = vpop.f32.mrb[0].mxu0 }
 0x302   : > { %v889_v7 = vadd.f32 %v1696_v5, %v888_v6  ;;  %v1753_v8 = vpop.f32.mrb[1].mxu0 }
 0x303   : > { %v891_v9 = vpop.f32.mrb[2].mxu0  ;;  %v2024_v8 = vld [vmem:[#allocation21] sm:$0xff]  }
 0x304   : > { %v894_v10 = vpack.c.bf16 %v889_v7, %v889_v7  ;;  %v1754_v11 = vpop.f32.mrb[3].mxu0  ;;  %v2025_v9 = vld [vmem:[#allocation21 + $0x8] sm:$0xff]  }
 0x305   : > { %v2027_v11 = vld [vmem:[#allocation24 + $0x8] sm:$0xff]  }
 0x306   : > { %896 = vst.msk [vmem:[#allocation2] sm:$0xf] %vm895_vm2, %v894_v10  ;;  %v2026_v10 = vld [vmem:[#allocation24] sm:$0xff]  }
 0x30d   : > { %v2020_v12 = vld [vmem:[#allocation2] ss:$0 sps:$4 sm:$0xff]  }
 0x30e   : > { %v903_v13 = vld [vmem:[#allocation2] sm:$0xf]  ;;  %914 = vrot.lane.b32.xlu0 %v2020_v12, %s2634_s27 }
 0x30f   : > { %v1704_v14 = vcombine.low %v903_v13, %v903_v13 }
 0x311   : > { %1030 = vrot.lane.b32.xlu1 %v1704_v14, %s2635_s14  ;;  %v1218_v14 = vld [vmem:[%s692_s13] sm:$0xff]  ;;  %s2494_s13 = scalar_lea.vmem %s3325_s0, 128 }
 0x312   : > { %1032 = vrot.lane.b32.xlu0 %v2020_v12, %s2636_s30  ;;  %p2495_p11 = scmp.ne.s32.totalorder %s3325_s0, %s2494_s13  ;;  %p2502_p9 = scmp.lt.s32.totalorder %s2500_s2, %s2494_s13 }
 0x314   : > { %p2496_p8 = pnand %p2495_p11, %p3502_p7  ;;  %p2503_p0 = por %p2502_p9, %p2501_p6 }
 0x316   : > { %p2497_p12 = pneg %p2496_p8 }
 0x318   : > { %p2504_p1 = pnand %p2503_p0, %p2497_p12 }
 0x380   : > { %v915_v15 = vpop.permute.xlu0 %914 }
 0x381   : > { %v921_v16 = vsel %vm916_vm3, %v915_v15, 0 }
 0x382   : > { %1756 = vmatpush3.bf16.xpose.msra.mxu1 %v921_v16 }
 0x383   : > { %1767 = vmatprep.subr.bf16.mxu1 %v2632_v0  ;;  %v1031_v19 = vpop.permute.xlu1 %1030 }
 0x384   : > { %v1033_v17 = vpop.permute.xlu0 %1032 }
 0x385   : > { %v1038_v18 = vsel %vm916_vm3, %v1033_v17, 0 }
 0x389   : > { %1758 = vmatmul.mubr.msk.bf16.vlgmr.msra.gmra.mrb[0].mxu1 %vm916_vm3, %v903_v13 }
 0x38a   : > { %1768 = vmatpush3.bf16.xpose.msra.mxu1 %v1038_v18  ;;  %1769 = vmatprep.mubr.msk.bf16.mxu1 %vm2633_vm0, %v2632_v0 }
 0x38b   : > { %1779 = vmatprep.subr.bf16.mxu1 %v2632_v0 }
 0x391   : > { %1770 = vmatmul.mubr.msk.bf16.vlgmr.msra.gmra.mrb[4].mxu1 %vm916_vm3, %v1031_v19 }
 0x392   : > { %1783 = vmatprep.mubr.msk.bf16.mxu1 %vm2633_vm0, %v2632_v0  ;;  %1780 = vmatpush3.bf16.msra.mxu1 %v2022_v54 }
 0x393   : > { %1781 = vmatprep.subr.bf16.mxu1 %v2632_v0 }
 0x396   : > { %1782 = vmatpush3.bf16.msra.mxu1 %v2023_v57 }
 0x397   : > { %1795 = vmatprep.subr.bf16.mxu1 %v2632_v0 }
 0x45c   : > { %v957_v21 = vpop.f32.mrb[0].mxu1 }
 0x45d   : > { %v958_v22 = vadd.f32 %v1700_v20, %v957_v21  ;;  %v1759_v23 = vpop.f32.mrb[1].mxu1  ;;  %v2028_v21 = vld [vmem:[#allocation24 + $0x10] sm:$0xff]  }
 0x45e   : > { %v960_v24 = vpop.f32.mrb[2].mxu1  ;;  %v1373_v23 = vld [vmem:[%s709_s20] sm:$0xff] }
 0x45f   : > { %v1760_v25 = vpop.f32.mrb[3].mxu1  ;;  %v964_v26 = vsel %vm963_vm4, %v958_v22, -inf  ;;  %v2640_v24 = vmov 0  }
 0x460   : > { %965 = vmax.xlane.f32.xlu1 %v964_v26  ;;  %2017 = vset.pattern.permute.xlu0 %v2640_v24  ;;  %v1711_v25 = vld [vmem:[#allocation22] ss:$0 sm:$0xff] }
 0x461   : > { %2016 = vset.pattern.permute.xlu1 %v2640_v24 }
 0x464   : > { %v1074_v27 = vpop.f32.mrb[4].mxu1 }
 0x465   : > { %v1075_v28 = vadd.f32 %v1700_v20, %v1074_v27  ;;  %v1771_v29 = vpop.f32.mrb[5].mxu1 }
 0x466   : > { %v1077_v30 = vpop.f32.mrb[6].mxu1 }
 0x467   : > { %v1772_v31 = vpop.f32.mrb[7].mxu1  ;;  %v1080_v32 = vsel %vm963_vm4, %v1075_v28, -inf }
 0x468   : > { %1081 = vmax.xlane.f32.xlu0 %v1080_v32 }
 0x471   : > { %1093 = vrot.lane.b32.xlu1 %v2020_v12, %s2637_s19 }
 0x47e   : > { %977 = vrot.lane.b32.xlu0 %v2020_v12, %s2638_s11  ;;  %v1707_v12 = vld [vmem:[#allocation16] ss:$0 sm:$0xff] }
 0x4ed   : > { %v966_v33 = vpop.xlane.xlu1 %965 }
 0x4ee   : > { %v967_v34 = vsub.f32 %v958_v22, %v966_v33  ;;  %v2029_v22 = vld [vmem:[#allocation24 + $0x18] sm:$0xff]  }
 0x4f0   : > { %v968_v35 = vpack.c.bf16 %v967_v34, %v967_v34 }
 0x4f1   : > { %v1094_v43 = vpop.permute.xlu1 %1093 }
 0x4f2   : > { %v970_v36 = vmul.bf16 1069105081, %v968_v35  ;;  %v1099_v45 = vsel %vm982_vm5, %v1094_v43, 0 }
 0x4f4   : > { %2030 = vpow.bf16 %v970_v36 }
 0x4f5   : > { %v1082_v37 = vpop.xlane.xlu0 %1081 }
 0x4f6   : > { %v1083_v38 = vsub.f32 %v1075_v28, %v1082_v37 }
 0x4f8   : > { %v1084_v39 = vpack.c.bf16 %v1083_v38, %v1083_v38 }
 0x4f9   : > { %v978_v40 = vpop.permute.xlu0 %977 }
 0x4fa   : > { %v1086_v41 = vmul.bf16 1069105081, %v1084_v39  ;;  %v984_v42 = vsel %vm982_vm5, %v978_v40, 0 }
 0x4fb   : > { %1762 = vmatpush3.bf16.msra.mxu0 %v984_v42 }
 0x4fc   : > { %2032 = vpow.bf16 %v1086_v41  ;;  %1773 = vmatprep.subr.bf16.mxu0 %v2632_v0 }
 0x4ff   : > { %v2031_v44 = vpop.eup %2030 }
 0x500   : > { %1764 = vmatmul.mubr.msk.bf16.vlgmr.msra.gmra.mrb[4].mxu0 %vm963_vm4, %v2031_v44  ;;  %v972_v46 = vunpack.c.l.bf16 %v2031_v44 }
 0x501   : > { %1774 = vmatpush3.bf16.msra.mxu0 %v1099_v45  ;;  %1775 = vmatprep.mubr.msk.bf16.mxu0 %vm2633_vm0, %v2632_v0 }
 0x502   : > { %v973_v47 = vsel %vm963_vm4, %v972_v46, 0.0  ;;  %1787 = vmatprep.subr.bf16.mxu0 %v2632_v0 }
 0x503   : > { %974 = vadd.xlane.f32.xlu0 %v973_v47 }
 0x507   : > { %v2033_v48 = vpop.eup %2032 }
 0x508   : > { %1776 = vmatmul.mubr.msk.bf16.vlgmr.msra.gmra.mrb[8].mxu0 %vm963_vm4, %v2033_v48  ;;  %v1088_v49 = vunpack.c.l.bf16 %v2033_v48 }
 0x509   : > { %1791 = vmatprep.mubr.msk.bf16.mxu0 %vm2633_vm0, %v2632_v0  ;;  %1788 = vmatpush3.bf16.msra.mxu0 %v2024_v8 }
 0x50a   : > { %v1089_v50 = vsel %vm963_vm4, %v1088_v49, 0.0  ;;  %1789 = vmatprep.subr.bf16.mxu0 %v2632_v0 }
 0x50b   : > { %1090 = vadd.xlane.f32.xlu1 %v1089_v50 }
 0x50d   : > { %1790 = vmatpush3.bf16.msra.mxu0 %v2025_v9 }
 0x51c   : > { %1376 = vperm.xlu1 %2016, %v1373_v23  }
 0x590   : > { %v975_v1 = vpop.xlane.xlu0 %974 }
 0x598   : > { %v1091_v51 = vpop.xlane.xlu1 %1090 }
 0x599   : > { %2034 = vrcp.f32 %v1091_v51 }
 0x59a   : > { %2036 = vrcp.f32 %v975_v1 }
 0x59c   : > { %v1377_v37 = vpop.permute.xlu1 %1376 }
 0x5a3   : > { %v2035_v58 = vpop.eup %2034 }
 0x5a4   : > { %v2037_v2 = vpop.eup %2036 }
 0x5d3   : > { %v1020_v52 = vpop.f32.mrb[4].mxu0 }
 0x5d4   : > { %v1765_v53 = vpop.f32.mrb[5].mxu0  ;;  %v1026_v3 = vmul.f32 %v2037_v2, %v1020_v52 }
 0x5d5   : > { %v1023_v55 = vpop.f32.mrb[6].mxu0 }
 0x5d6   : > { %v1766_v56 = vpop.f32.mrb[7].mxu0 }
 0x5db   : > { %v1135_v59 = vpop.f32.mrb[8].mxu0 }
 0x5dc   : > { %v1141_v60 = vmul.f32 %v2035_v58, %v1135_v59  ;;  %v1777_v61 = vpop.f32.mrb[9].mxu0 }
 0x5dd   : > { %v1138_v62 = vpop.f32.mrb[10].mxu0 }
 0x5de   : > { %1143 = vrot.lane.b32.xlu0 %v1141_v60, %s2639_s28  ;;  %v1778_v63 = vpop.f32.mrb[11].mxu0 }
 0x650   : > { %v1144_v4 = vpop.permute.xlu0 %1143 }
 0x651   : > { %v1146_v5 = vsel %vm916_vm3, %v1026_v3, %v1144_v4 }
 0x652   : > { %v1147_v6 = vpack.c.bf16 %v1146_v5, %v1146_v5 }
 0x654   : > { %1149 = vst.msk [vmem:[#allocation3] sm:$0xf] %vm1148_vm6, %v1147_v6 }
 0x65b   : > { %v1150_v7 = vld [vmem:[#allocation3] sm:$0xf] }
 0x65c   : > { %1784 = vmatmul.mubr.msk.bf16.vlgmr.msra.gmra.mrb[8].mxu1 %vm850_vm1, %v1150_v7 }
 0x65d   : > { %1803 = vmatprep.mubr.msk.bf16.mxu1 %vm2633_vm0, %v2632_v0  ;;  %1796 = vmatpush3.bf16.msra.mxu1 %v2026_v10 }
 0x65e   : > { %1797 = vmatprep.subr.bf16.mxu1 %v2632_v0 }
 0x661   : > { %1798 = vmatpush3.bf16.msra.mxu1 %v2027_v11 }
 0x662   : > { %1799 = vmatprep.subr.bf16.mxu1 %v2632_v0 }
 0x665   : > { %1800 = vmatpush3.bf16.msra.mxu1 %v2028_v21 }
 0x666   : > { %1801 = vmatprep.subr.bf16.mxu1 %v2632_v0  ;;  %v1715_v0 = vld [vmem:[#allocation25] ss:$0 sm:$0xff] }
 0x669   : > { %1802 = vmatpush3.bf16.msra.mxu1 %v2029_v22 }
 0x72f   : > { %v1212_v13 = vpop.f32.mrb[8].mxu1 }
 0x730   : > { %v1213_v15 = vadd.f32 %v1707_v12, %v1212_v13  ;;  %v1785_v16 = vpop.f32.mrb[9].mxu1 }
 0x731   : > { %v1215_v17 = vpop.f32.mrb[10].mxu1 }
 0x732   : > { %v1219_v18 = vadd.f32 %v1218_v14, %v1213_v15  ;;  %v1786_v19 = vpop.f32.mrb[11].mxu1 }
 0x734   : > { %v1220_v20 = vpack.c.bf16 %v1219_v18, %v1219_v18 }
 0x736   : > { %1792 = vmatmul.mubr.msk.bf16.vlgmr.msra.gmra.mrb[12].mxu0 %vm850_vm1, %v1220_v20 }
 0x809   : > { %v1281_v26 = vpop.f32.mrb[12].mxu0 }
 0x80a   : > { %v1282_v27 = vadd.f32 %v1711_v25, %v1281_v26  ;;  %v1793_v28 = vpop.f32.mrb[13].mxu0 }
 0x80b   : > { %v1284_v29 = vpop.f32.mrb[14].mxu0 }
 0x80c   : > { %v1287_v30 = vmax.f32 %v1282_v27, 0.0  ;;  %v1794_v31 = vpop.f32.mrb[15].mxu0 }
 0x80e   : > { %v1288_v32 = vpack.c.bf16 %v1287_v30, %v1287_v30 }
 0x810   : > { %1804 = vmatmul.mubr.msk.bf16.vlgmr.msra.gmra.mrb[12].mxu1 %vm1328_vm7, %v1288_v32 }
 0x8e3   : > { %v1366_v33 = vpop.f32.mrb[12].mxu1 }
 0x8e4   : > { %v1367_v34 = vadd.f32 %v1715_v0, %v1366_v33  ;;  %v1805_v35 = vpop.f32.mrb[13].mxu1 }
 0x8e5   : > { %v1369_v36 = vpop.f32.mrb[14].mxu1 }
 0x8e6   : > { %v1806_v38 = vpop.f32.mrb[15].mxu1  ;;  %v1372_v39 = vadd.f32 %v1367_v34, %v1219_v18 }
 0x8e8   : > { %v1379_v40 = vmul.f32 %v1377_v37, %v1372_v39 }
 0x8ea   : > { %1380 = vst.msk [vmem:[%s819_s24] sm:$0xff] %vm850_vm1, %v1379_v40 }
 0x8eb   : > { %2507 = shalt.err (!%p2504_p1)
}
 0x8ec   : > { %s2508_s9 = scalar_lea.hbm %s3323_s15, 128  ;;  %s2512_s14 = scalar_lea.hbm %s3501_s7, 256 }
 0x8ed   : > { %p2509_p10 = scmp.ne.s32.totalorder %s3323_s15, %s2508_s9  ;;  %p2513_p4 = scmp.lt.u32.totalorder %s3323_s15, %s3501_s7 }
 0x8ee   : > { %p2514_p13 = scmp.lt.u32.totalorder %s2512_s14, %s2508_s9  ;;  %p2516_p11 = scmp.lt.u32.totalorder %s2508_s9, %s3323_s15 }
 0x8ef   : > { %p2510_p5 = pnand %p2509_p10, %p3502_p7 }
 0x8f0   : > { %p2515_p3 = por %p2514_p13, %p2513_p4 }
 0x8f1   : > { %p2511_p2 = pneg %p2510_p5 }
 0x8f2   : > { %p2517_p8 = por %p2516_p11, %p2515_p3 }
 0x8f4   : > { %p2518_p12 = pnand %p2517_p8, %p2511_p2 }
 0x8f6   : > { %2521 = shalt.err (!%p2518_p12)
}
 0x8f7   : > { %1863 = dma.vmem_to_hbm [thread:$0]  (%p3502_p7), %s3325_s0, 128, %s3323_s15, %s1382_s10  }
 0x8f8 PF: > { %s3503_s11 = sld [smem:[#allocation47_spill]]  ;;  %s1408_s28 = sand.u32 1, %s2592_s21  }
 0x8f9   : > { %p3505_p9 = scmp.ge.s32.totalorder %s2612_s26, 2  ;;  %s1409_s17 = scalar_lea.sflag [#allocation6], %s1408_s28 }
 0x8fe   : > { %p3504_p6 = scmp.ne.s32.totalorder %s3503_s11, 0 }
 0x900   : > { %p1916_p0 = pnand %p3505_p9, %p3504_p6 }
 0x902   : > { %2587 = dma.done.wait (!%p1916_p0), %s1409_s17, 128  }
 0x903   : > { %2589 = vsyncadd (!%p1916_p0), %s1409_s17, 4294967168  ;;  %s44_s26 = sadd.s32 1, %s2612_s26   ;;  %s3506_s12 = sld [smem:[#allocation42_spill]] }
 0x904   : > { %p41_p1 = scmp.ge.s32.totalorder %s44_s26, 4   ;;  %s3507_s23 = sld [smem:[#allocation46_spill]] }
 0x905   : > { %s3508_s18 = sld [smem:[#allocation45_spill]]  ;;  %s3509_s21 = smov %s2596_s22 }
 0x906   : > { %s3511_s24 = smov %s2608_s25  ;;  %43 = sbr.rel (!%p41_p1) target bundleno = 34 (0x22), region = 219 }
 0x909   : > { %s3510_s22 = smov %s3506_s12 }
 0x90b   : > { %s3512_s25 = smov %s3508_s18 }
 0x90d   :  { %1414 = vsyncpa [#allocation5], 1 }
 0x90e   :  { %1416 = vsyncpa [#allocation5 + $0x1], 1 }
 0x90f   :  { %1417 = vsyncpa [#allocation8], 1 }
 0x910   :  { %1419 = vsyncpa [#allocation8 + $0x1], 1 }
 0x911   :  { %1420 = vsyncpa [#allocation11], 1 }
 0x912   :  { %1422 = vsyncpa [#allocation11 + $0x1], 1 }
 0x913   :  { %1423 = vsyncpa [#allocation14], 1 }
 0x914   :  { %1424 = vsyncpa [#allocation17], 1 }
 0x915   :  { %1425 = vsyncpa [#allocation20], 1 }
 0x916   :  { %1426 = vsyncpa [#allocation23], 1 }
 0x917   :  { %1427 = vsyncpa [#allocation26], 1 }
 0x918   :  { %1428 = vsyncpa [#allocation29], 1 }
 0x919   :  { %1429 = vsyncpa [#allocation6], 1 }
 0x91a   :  { %1431 = vsyncpa [#allocation6 + $0x1], 1 }

</bundles_post_ra>
